<compile_context>
chip_gen: v5e
topology: v5e:2x2
jax: 0.10.0
libtpu: 0.0.40
codegen_flags: <defaults>
</compile_context>

<pallas_src>
import math
from functools import partial

import numpy as np
import jax
import jax.numpy as jnp
from jax.experimental import pallas as pl
from jax.experimental.pallas import tpu as pltpu


_ENC_KEYS = ("wqkv", "bqkv", "wo", "bo", "n1g", "n1b",
             "c1w", "c1b", "c2w", "c2b", "n2g", "n2b")
_DEC_KEYS = ("swqkv", "sbqkv", "swo", "sbo", "n1g", "n1b",
             "cwq", "cbq", "cwkv", "cbkv", "cwo", "cbo", "n2g", "n2b",
             "c1w", "c1b", "c2w", "c2b", "n3g", "n3b")


# ----------------------------- BlockSpec helpers -----------------------------

def _full_spec(a):
    """Whole-array block, same block every grid step (weights; DMA'd once)."""
    zeros = (0,) * a.ndim
    return pl.BlockSpec(a.shape, lambda i, _z=zeros: _z)


def _batch_spec(a):
    """(B, ...) array -> one batch row per grid step."""
    rest = tuple(a.shape[1:])
    zeros = (0,) * (a.ndim - 1)
    return pl.BlockSpec((1,) + rest, lambda i, _z=zeros: (i,) + _z)


# ----------------------------- in-kernel math helpers -----------------------------

def _ln(x, g, b, eps=1e-5):
    mean = jnp.mean(x, axis=-1, keepdims=True)
    xc = x - mean
    var = jnp.mean(xc * xc, axis=-1, keepdims=True)
    return xc * jax.lax.rsqrt(var + eps) * g + b


def _gelu(x):
    # TODO(synk): PyTorch F.gelu uses the exact erf form; tanh approximation is
    # used here for Mosaic lowering safety (max abs diff ~1e-3).
    return jax.nn.gelu(x, approximate=True)


# ----------------------------- Mega-fused forward kernel -----------------------------

def _forward_kernel(*refs, n_heads, e_layers, d_layers, n_hidden, scale):
    it = iter(refs)

    def nxt():
        return next(it)

    # --- per-batch inputs ---
    pxcat_ref = nxt()    # (1, 3S, c_in)   projector series_conv input (circular taps)
    std_ref = nxt()      # (1, 1, c_in)
    mean_ref = nxt()     # (1, 1, c_in)
    xe_ref = nxt()       # (1, S, 3*c_in)  encoder token-conv input (normalized, shifted)
    tpee_ref = nxt()     # (1, S, D)       temporal + positional embedding (encoder)
    xd_ref = nxt()       # (1, Ld, 3*c_in) decoder token-conv input
    tped_ref = nxt()     # (1, Ld, D)      temporal + positional embedding (decoder)

    # --- weights ---
    def read_projector():
        sw = nxt()
        hidden = [(nxt(), nxt()) for _ in range(n_hidden)]
        ow = nxt()
        return sw, hidden, ow

    tau_p = read_projector()
    delta_p = read_projector()
    enc_tok_ref = nxt()
    dec_tok_ref = nxt()
    enc_w = {k: nxt() for k in _ENC_KEYS}      # stacked along leading e_layers axis
    encn_g, encn_b = nxt(), nxt()
    dec_w = {k: nxt() for k in _DEC_KEYS}      # stacked along leading d_layers axis
    decn_g, decn_b, proj_w, proj_b = nxt(), nxt(), nxt(), nxt()

    # --- outputs ---
    out_ref = nxt()      # (1, Ld, c_out)
    attn_ref = nxt()     # (1, e_layers, S, H*S)  lane-dense attention maps

    pxcat = pxcat_ref[0]
    std = std_ref[0]
    mean = mean_ref[0]
    D = enc_tok_ref.shape[1]
    E = D // n_heads

    # ---- De-stationary factor projectors (tau, delta), fully in-register ----
    def run_projector(p, stats):
        sw, hidden, ow = p
        h = jnp.dot(sw[...], pxcat, preferred_element_type=jnp.float32)   # (1, c_in)
        h = jnp.concatenate([h, stats], axis=-1)                          # (1, 2*c_in)
        for (w, b) in hidden:
            h = jnp.maximum(
                jnp.dot(h, w[...], preferred_element_type=jnp.float32) + b[...], 0.0)
        return jnp.dot(h, ow[...], preferred_element_type=jnp.float32)

    tau = jnp.exp(run_projector(tau_p, std))          # (1, 1)
    delta = run_projector(delta_p, mean)              # (1, S_enc)
    tau_scale = tau * scale                            # fold tau and scale into q
    delta_scaled = delta * scale                       # pre-scale delta once

    # ---- De-stationary multi-head attention (heads unrolled, single wo matmul) ----
    def mha(q, k, v, wo, bo, dscaled, causal, attn_slot=None):
        L, S = q.shape[0], k.shape[0]
        qs = q * tau_scale
        if causal:
            row = jax.lax.broadcasted_iota(jnp.int32, (L, S), 0)
            col = jax.lax.broadcasted_iota(jnp.int32, (L, S), 1)
        heads, amaps = [], []
        for h in range(n_heads):
            qh = qs[:, h * E:(h + 1) * E]
            kh = k[:, h * E:(h + 1) * E]
            vh = v[:, h * E:(h + 1) * E]
            s = jnp.dot(qh, kh.T, preferred_element_type=jnp.float32)
            if dscaled is not None:
                s = s + dscaled
            if causal:
                s = jnp.where(col > row, jnp.float32(-1e30), s)
            m = jnp.max(s, axis=-1, keepdims=True)
            e = jnp.exp(s - m)
            a = e * pl.reciprocal(jnp.sum(e, axis=-1, keepdims=True), approx=True)
            if attn_slot is not None:
                amaps.append(a)
            heads.append(jnp.dot(a, vh, preferred_element_type=jnp.float32))
        o = jnp.concatenate(heads, axis=-1)                               # (L, D)
        out = jnp.dot(o, wo, preferred_element_type=jnp.float32) + bo     # single wo matmul
        if attn_slot is not None:
            attn_ref[0, attn_slot] = jnp.concatenate(amaps, axis=-1)      # (L, H*S) one store
        return out

    # ---- Encoder ----
    x = (jnp.dot(xe_ref[0], enc_tok_ref[...], preferred_element_type=jnp.float32)
         + tpee_ref[0])
    for li in range(e_layers):
        qkv = (jnp.dot(x, enc_w["wqkv"][li], preferred_element_type=jnp.float32)
               + enc_w["bqkv"][li])
        att = mha(qkv[:, :D], qkv[:, D:2 * D], qkv[:, 2 * D:],
                  enc_w["wo"][li], enc_w["bo"][li], delta_scaled,
                  causal=False, attn_slot=li)
        x1 = _ln(x + att, enc_w["n1g"][li], enc_w["n1b"][li])
        h = _gelu(jnp.dot(x1, enc_w["c1w"][li], preferred_element_type=jnp.float32)
                  + enc_w["c1b"][li])
        h = jnp.dot(h, enc_w["c2w"][li], preferred_element_type=jnp.float32) + enc_w["c2b"][li]
        x = _ln(x1 + h, enc_w["n2g"][li], enc_w["n2b"][li])
    cross = _ln(x, encn_g[...], encn_b[...])

    # ---- Decoder ----
    y = (jnp.dot(xd_ref[0], dec_tok_ref[...], preferred_element_type=jnp.float32)
         + tped_ref[0])
    for li in range(d_layers):
        # causal self-attention (delta = None)
        qkv = (jnp.dot(y, dec_w["swqkv"][li], preferred_element_type=jnp.float32)
               + dec_w["sbqkv"][li])
        sa = mha(qkv[:, :D], qkv[:, D:2 * D], qkv[:, 2 * D:],
                 dec_w["swo"][li], dec_w["sbo"][li], None, causal=True)
        y1 = _ln(y + sa, dec_w["n1g"][li], dec_w["n1b"][li])
        # cross attention (delta applied)
        q = jnp.dot(y1, dec_w["cwq"][li], preferred_element_type=jnp.float32) + dec_w["cbq"][li]
        kv = (jnp.dot(cross, dec_w["cwkv"][li], preferred_element_type=jnp.float32)
              + dec_w["cbkv"][li])
        ca = mha(q, kv[:, :D], kv[:, D:],
                 dec_w["cwo"][li], dec_w["cbo"][li], delta_scaled, causal=False)
        y2 = _ln(y1 + ca, dec_w["n2g"][li], dec_w["n2b"][li])
        # FFN
        h = _gelu(jnp.dot(y2, dec_w["c1w"][li], preferred_element_type=jnp.float32)
                  + dec_w["c1b"][li])
        h = jnp.dot(h, dec_w["c2w"][li], preferred_element_type=jnp.float32) + dec_w["c2b"][li]
        y = _ln(y2 + h, dec_w["n3g"][li], dec_w["n3b"][li])

    # ---- final LN + output projection + de-normalization ----
    yf = _ln(y, decn_g[...], decn_b[...])
    out = jnp.dot(yf, proj_w[...], preferred_element_type=jnp.float32) + proj_b[...]
    out_ref[0] = out * std + mean


# ----------------------------- Model forward -----------------------------

def positional_embedding(max_len, d_model):
    pe = np.zeros((max_len, d_model), dtype=np.float32)
    position = np.arange(0, max_len, dtype=np.float32)[:, None]
    div_term = np.exp(np.arange(0, d_model, 2, dtype=np.float32)
                      * -(math.log(10000.0) / d_model))
    pe[:, 0::2] = np.sin(position * div_term)
    pe[:, 1::2] = np.cos(position * div_term)
    return jnp.asarray(pe)


def model_forward(params, cfg, x_enc, x_mark_enc, x_dec, x_mark_dec):
    B, S, c_in = x_enc.shape
    label_len, pred_len = cfg["label_len"], cfg["pred_len"]
    Ld = x_dec.shape[1]
    d_model, n_heads = cfg["d_model"], cfg["n_heads"]
    e_layers, d_layers = cfg["e_layers"], cfg["d_layers"]
    c_out = cfg["c_out"]
    n_hidden = len(params["tau"]["hidden"])
    scale = 1.0 / math.sqrt(d_model // n_heads)

    x_enc = x_enc.astype(jnp.float32)

    # ---- tiny layout glue kept in XLA (normalization stats, circular-shift taps,
    #      temporal/positional embedding gathers); all heavy math is in one pallas_call.
    mean_enc = jnp.mean(x_enc, axis=1, keepdims=True)                     # (B, 1, c_in)
    xc = x_enc - mean_enc
    std_enc = jnp.sqrt(jnp.var(xc, axis=1, keepdims=True) + 1e-5)         # (B, 1, c_in)
    x_norm = xc / std_enc
    x_dec_new = jnp.concatenate(
        [x_norm[:, -label_len:, :],
         jnp.zeros((B, pred_len, x_dec.shape[2]), jnp.float32)], axis=1)  # (B, Ld, c_in)

    # Projector series_conv taps laid out as [x[:,j-1] | x[:,j] | x[:,j+1]] row blocks.
    px_cat = jnp.concatenate([jnp.roll(x_enc, 1, axis=-1), x_enc,
                              jnp.roll(x_enc, -1, axis=-1)], axis=1)      # (B, 3S, c_in)
    # Token conv (k=3 circular over time) taps along the feature axis.
    xe_cat = jnp.concatenate([jnp.roll(x_norm, 1, axis=1), x_norm,
                              jnp.roll(x_norm, -1, axis=1)], axis=-1)     # (B, S, 3c_in)
    xd_cat = jnp.concatenate([jnp.roll(x_dec_new, 1, axis=1), x_dec_new,
                              jnp.roll(x_dec_new, -1, axis=1)], axis=-1)  # (B, Ld, 3c_in)

    pe = params["pe"]

    def temp_pe(emb, x_mark, L):
        return (jnp.take(emb["month_emb"], x_mark[:, :, 0], axis=0)
                + jnp.take(emb["hour_emb"], x_mark[:, :, 1], axis=0)
                + pe[None, :L, :]).astype(jnp.float32)

    tpe_enc = temp_pe(params["enc_emb"], x_mark_enc, S)                   # (B, S, D)
    tpe_dec = temp_pe(params["dec_emb"], x_mark_dec, Ld)                  # (B, Ld, D)

    batch_inputs = [px_cat, std_enc, mean_enc, xe_cat, tpe_enc, xd_cat, tpe_dec]
    batch_inputs = [a.astype(jnp.float32) for a in batch_inputs]

    weights = []
    for pname in ("tau", "delta"):
        pp = params[pname]
        weights.append(pp["series_w"])
        for (w, b) in pp["hidden"]:
            weights += [w, b]
        weights.append(pp["out_w"])
    weights += [params["enc_emb"]["token_w"], params["dec_emb"]["token_w"]]
    weights += [params["enc"][k] for k in _ENC_KEYS]
    weights += [params["enc_norm_g"], params["enc_norm_b"]]
    weights += [params["dec"][k] for k in _DEC_KEYS]
    weights += [params["dec_norm_g"], params["dec_norm_b"],
                params["proj_w"], params["proj_b"]]
    weights = [w.astype(jnp.float32) for w in weights]

    out_full, attn_all = pl.pallas_call(
        partial(_forward_kernel, n_heads=n_heads, e_layers=e_layers,
                d_layers=d_layers, n_hidden=n_hidden, scale=scale),
        out_shape=(jax.ShapeDtypeStruct((B, Ld, c_out), jnp.float32),
                   jax.ShapeDtypeStruct((B, e_layers, S, n_heads * S), jnp.float32)),
        grid=(B,),
        in_specs=[_batch_spec(a) for a in batch_inputs]
                 + [_full_spec(w) for w in weights],
        out_specs=(pl.BlockSpec((1, Ld, c_out), lambda i: (i, 0, 0)),
                   pl.BlockSpec((1, e_layers, S, n_heads * S), lambda i: (i, 0, 0, 0))),
        compiler_params=pltpu.CompilerParams(dimension_semantics=("parallel",)),
    )(*batch_inputs, *weights)

    output = out_full[:, -pred_len:, :]
    # (B, e_layers, L, H*S) -> list of per-layer (B, H, L, S) like the torch module
    attn_all = attn_all.reshape(B, e_layers, S, n_heads, S).transpose(0, 1, 3, 2, 4)
    attns = [attn_all[:, li] for li in range(e_layers)]
    return output, attns     # output_attention is truthy in the reference module


# ----------------------------- Deterministic parameter init -----------------------------

def init_params(key, cfg):
    d_model, d_ff = cfg["d_model"], cfg["d_ff"]
    enc_in, dec_in, c_out = cfg["enc_in"], cfg["dec_in"], cfg["c_out"]
    seq_len = cfg["seq_len"]
    e_layers, d_layers = cfg["e_layers"], cfg["d_layers"]

    keys = iter(jax.random.split(key, 512))

    def nk():
        return next(keys)

    def dense(fan_in, fan_out, bias=True, scale=0.05):
        w = jax.random.normal(nk(), (fan_in, fan_out), jnp.float32) * scale
        b = (jax.random.normal(nk(), (1, fan_out), jnp.float32) * scale) if bias else None
        return w, b

    ones_row = lambda n: jnp.ones((1, n), jnp.float32)
    zeros_row = lambda n: jnp.zeros((1, n), jnp.float32)

    def enc_layer():
        wqkv, bqkv = dense(d_model, 3 * d_model)     # fused q/k/v projection
        wo, bo = dense(d_model, d_model)
        c1w, c1b = dense(d_model, d_ff)
        c2w, c2b = dense(d_ff, d_model)
        return dict(wqkv=wqkv, bqkv=bqkv, wo=wo, bo=bo,
                    n1g=ones_row(d_model), n1b=zeros_row(d_model),
                    c1w=c1w, c1b=c1b, c2w=c2w, c2b=c2b,
                    n2g=ones_row(d_model), n2b=zeros_row(d_model))

    def dec_layer():
        swqkv, sbqkv = dense(d_model, 3 * d_model)
        swo, sbo = dense(d_model, d_model)
        cwq, cbq = dense(d_model, d_model)
        cwkv, cbkv = dense(d_model, 2 * d_model)     # fused k/v projection
        cwo, cbo = dense(d_model, d_model)
        c1w, c1b = dense(d_model, d_ff)
        c2w, c2b = dense(d_ff, d_model)
        return dict(swqkv=swqkv, sbqkv=sbqkv, swo=swo, sbo=sbo,
                    n1g=ones_row(d_model), n1b=zeros_row(d_model),
                    cwq=cwq, cbq=cbq, cwkv=cwkv, cbkv=cbkv, cwo=cwo, cbo=cbo,
                    n2g=ones_row(d_model), n2b=zeros_row(d_model),
                    c1w=c1w, c1b=c1b, c2w=c2w, c2b=c2b,
                    n3g=ones_row(d_model), n3b=zeros_row(d_model))

    def stack_layers(make, n):
        layers = [make() for _ in range(n)]
        return {k: jnp.stack([l[k] for l in layers], axis=0) for k in layers[0]}

    def emb(c_in):
        return dict(
            token_w=jax.random.normal(nk(), (3 * c_in, d_model), jnp.float32) * 0.1,
            month_emb=jax.random.normal(nk(), (13, d_model), jnp.float32) * 0.05,
            hour_emb=jax.random.normal(nk(), (25, d_model), jnp.float32) * 0.05)

    def projector(output_dim):
        # series_w row layout = [k=0 taps | k=1 | k=2] over the seq_len channels,
        # matching the px_cat construction in model_forward (random init here).
        series_w = jax.random.normal(nk(), (1, 3 * seq_len), jnp.float32) * 0.05
        dims = [2 * enc_in] + list(cfg["p_hidden_dims"])
        hidden = [dense(dims[i], dims[i + 1]) for i in range(len(cfg["p_hidden_dims"]))]
        out_w, _ = dense(cfg["p_hidden_dims"][-1], output_dim, bias=False)
        return dict(series_w=series_w, hidden=hidden, out_w=out_w)

    proj_w, proj_b = dense(d_model, c_out)
    return dict(
        pe=positional_embedding(cfg["max_len"], d_model),
        enc_emb=emb(enc_in), dec_emb=emb(dec_in),
        enc=stack_layers(enc_layer, e_layers),
        enc_norm_g=ones_row(d_model), enc_norm_b=zeros_row(d_model),
        dec=stack_layers(dec_layer, d_layers),
        dec_norm_g=ones_row(d_model), dec_norm_b=zeros_row(d_model),
        proj_w=proj_w, proj_b=proj_b,
        tau=projector(1), delta=projector(seq_len))


# ----------------------------- Main -----------------------------

if __name__ == "__main__":
    cfg = dict(seq_len=16, label_len=8, pred_len=8,
               enc_in=4, dec_in=4, c_out=4,
               d_model=32, n_heads=4, d_ff=64,
               e_layers=2, d_layers=1,
               p_hidden_dims=(16, 16), max_len=64)

    key = jax.random.PRNGKey(0)
    pkey, kx, kd, km = jax.random.split(key, 4)
    params = init_params(pkey, cfg)

    B = 2
    L_dec = cfg["label_len"] + cfg["pred_len"]
    x_enc = jax.random.normal(kx, (B, cfg["seq_len"], cfg["enc_in"]), jnp.float32)
    x_dec = jax.random.normal(kd, (B, L_dec, cfg["dec_in"]), jnp.float32)
    km1, km2, km3, km4 = jax.random.split(km, 4)
    x_mark_enc = jnp.stack(
        [jax.random.randint(km1, (B, cfg["seq_len"]), 0, 13),
         jax.random.randint(km2, (B, cfg["seq_len"]), 0, 25)], axis=-1)
    x_mark_dec = jnp.stack(
        [jax.random.randint(km3, (B, L_dec), 0, 13),
         jax.random.randint(km4, (B, L_dec), 0, 25)], axis=-1)

    fwd = jax.jit(lambda xe, xme, xd, xmd: model_forward(params, cfg, xe, xme, xd, xmd))
    output, attns = fwd(x_enc, x_mark_enc, x_dec, x_mark_dec)
    jax.block_until_ready(output)
    assert output.shape == (B, cfg["pred_len"], cfg["c_out"])
    assert len(attns) == cfg["e_layers"]
    assert attns[0].shape == (B, cfg["n_heads"], cfg["seq_len"], cfg["seq_len"])
    assert bool(jnp.all(jnp.isfinite(output)))
    print("KERNEL_OK")
</pallas_src>

<mosaic_0001>
module attributes {stable_mosaic.version = 11 : i64} {
  func.func @_forward_kernel(%arg0: i32, %arg1: memref<1x48x4xf32, #tpu.memory_space<vmem>>, %arg2: memref<1x1x4xf32, #tpu.memory_space<vmem>>, %arg3: memref<1x1x4xf32, #tpu.memory_space<vmem>>, %arg4: memref<1x16x12xf32, #tpu.memory_space<vmem>>, %arg5: memref<1x16x32xf32, #tpu.memory_space<vmem>>, %arg6: memref<1x16x12xf32, #tpu.memory_space<vmem>>, %arg7: memref<1x16x32xf32, #tpu.memory_space<vmem>>, %arg8: memref<1x48xf32, #tpu.memory_space<vmem>>, %arg9: memref<8x16xf32, #tpu.memory_space<vmem>>, %arg10: memref<1x16xf32, #tpu.memory_space<vmem>>, %arg11: memref<16x16xf32, #tpu.memory_space<vmem>>, %arg12: memref<1x16xf32, #tpu.memory_space<vmem>>, %arg13: memref<16x1xf32, #tpu.memory_space<vmem>>, %arg14: memref<1x48xf32, #tpu.memory_space<vmem>>, %arg15: memref<8x16xf32, #tpu.memory_space<vmem>>, %arg16: memref<1x16xf32, #tpu.memory_space<vmem>>, %arg17: memref<16x16xf32, #tpu.memory_space<vmem>>, %arg18: memref<1x16xf32, #tpu.memory_space<vmem>>, %arg19: memref<16x16xf32, #tpu.memory_space<vmem>>, %arg20: memref<12x32xf32, #tpu.memory_space<vmem>>, %arg21: memref<12x32xf32, #tpu.memory_space<vmem>>, %arg22: memref<2x32x96xf32, #tpu.memory_space<vmem>>, %arg23: memref<2x1x96xf32, #tpu.memory_space<vmem>>, %arg24: memref<2x32x32xf32, #tpu.memory_space<vmem>>, %arg25: memref<2x1x32xf32, #tpu.memory_space<vmem>>, %arg26: memref<2x1x32xf32, #tpu.memory_space<vmem>>, %arg27: memref<2x1x32xf32, #tpu.memory_space<vmem>>, %arg28: memref<2x32x64xf32, #tpu.memory_space<vmem>>, %arg29: memref<2x1x64xf32, #tpu.memory_space<vmem>>, %arg30: memref<2x64x32xf32, #tpu.memory_space<vmem>>, %arg31: memref<2x1x32xf32, #tpu.memory_space<vmem>>, %arg32: memref<2x1x32xf32, #tpu.memory_space<vmem>>, %arg33: memref<2x1x32xf32, #tpu.memory_space<vmem>>, %arg34: memref<1x32xf32, #tpu.memory_space<vmem>>, %arg35: memref<1x32xf32, #tpu.memory_space<vmem>>, %arg36: memref<1x32x96xf32, #tpu.memory_space<vmem>>, %arg37: memref<1x1x96xf32, #tpu.memory_space<vmem>>, %arg38: memref<1x32x32xf32, #tpu.memory_space<vmem>>, %arg39: memref<1x1x32xf32, #tpu.memory_space<vmem>>, %arg40: memref<1x1x32xf32, #tpu.memory_space<vmem>>, %arg41: memref<1x1x32xf32, #tpu.memory_space<vmem>>, %arg42: memref<1x32x32xf32, #tpu.memory_space<vmem>>, %arg43: memref<1x1x32xf32, #tpu.memory_space<vmem>>, %arg44: memref<1x32x64xf32, #tpu.memory_space<vmem>>, %arg45: memref<1x1x64xf32, #tpu.memory_space<vmem>>, %arg46: memref<1x32x32xf32, #tpu.memory_space<vmem>>, %arg47: memref<1x1x32xf32, #tpu.memory_space<vmem>>, %arg48: memref<1x1x32xf32, #tpu.memory_space<vmem>>, %arg49: memref<1x1x32xf32, #tpu.memory_space<vmem>>, %arg50: memref<1x32x64xf32, #tpu.memory_space<vmem>>, %arg51: memref<1x1x64xf32, #tpu.memory_space<vmem>>, %arg52: memref<1x64x32xf32, #tpu.memory_space<vmem>>, %arg53: memref<1x1x32xf32, #tpu.memory_space<vmem>>, %arg54: memref<1x1x32xf32, #tpu.memory_space<vmem>>, %arg55: memref<1x1x32xf32, #tpu.memory_space<vmem>>, %arg56: memref<1x32xf32, #tpu.memory_space<vmem>>, %arg57: memref<1x32xf32, #tpu.memory_space<vmem>>, %arg58: memref<32x4xf32, #tpu.memory_space<vmem>>, %arg59: memref<1x4xf32, #tpu.memory_space<vmem>>, %arg60: memref<1x16x4xf32, #tpu.memory_space<vmem>>, %arg61: memref<1x2x16x64xf32, #tpu.memory_space<vmem>>) attributes {dimension_semantics = [#tpu.dimension_semantics<parallel>], iteration_bounds = array<i64: 2>, scalar_prefetch = 0 : i64, scratch_operands = 0 : i64, tpu.core_type = #tpu.core_type<tc>, window_params = [{transform_indices = @transform_0, window_bounds = array<i64: 1, 48, 4>}, {transform_indices = @transform_1, window_bounds = array<i64: 1, 1, 4>}, {transform_indices = @transform_2, window_bounds = array<i64: 1, 1, 4>}, {transform_indices = @transform_3, window_bounds = array<i64: 1, 16, 12>}, {transform_indices = @transform_4, window_bounds = array<i64: 1, 16, 32>}, {transform_indices = @transform_5, window_bounds = array<i64: 1, 16, 12>}, {transform_indices = @transform_6, window_bounds = array<i64: 1, 16, 32>}, {pipeline_mode = #tpu.pipeline_mode<synchronous>, transform_indices = @transform_7, window_bounds = array<i64: 1, 48>}, {pipeline_mode = #tpu.pipeline_mode<synchronous>, transform_indices = @transform_8, window_bounds = array<i64: 8, 16>}, {pipeline_mode = #tpu.pipeline_mode<synchronous>, transform_indices = @transform_9, window_bounds = array<i64: 1, 16>}, {pipeline_mode = #tpu.pipeline_mode<synchronous>, transform_indices = @transform_10, window_bounds = array<i64: 16, 16>}, {pipeline_mode = #tpu.pipeline_mode<synchronous>, transform_indices = @transform_11, window_bounds = array<i64: 1, 16>}, {pipeline_mode = #tpu.pipeline_mode<synchronous>, transform_indices = @transform_12, window_bounds = array<i64: 16, 1>}, {pipeline_mode = #tpu.pipeline_mode<synchronous>, transform_indices = @transform_13, window_bounds = array<i64: 1, 48>}, {pipeline_mode = #tpu.pipeline_mode<synchronous>, transform_indices = @transform_14, window_bounds = array<i64: 8, 16>}, {pipeline_mode = #tpu.pipeline_mode<synchronous>, transform_indices = @transform_15, window_bounds = array<i64: 1, 16>}, {pipeline_mode = #tpu.pipeline_mode<synchronous>, transform_indices = @transform_16, window_bounds = array<i64: 16, 16>}, {pipeline_mode = #tpu.pipeline_mode<synchronous>, transform_indices = @transform_17, window_bounds = array<i64: 1, 16>}, {pipeline_mode = #tpu.pipeline_mode<synchronous>, transform_indices = @transform_18, window_bounds = array<i64: 16, 16>}, {pipeline_mode = #tpu.pipeline_mode<synchronous>, transform_indices = @transform_19, window_bounds = array<i64: 12, 32>}, {pipeline_mode = #tpu.pipeline_mode<synchronous>, transform_indices = @transform_20, window_bounds = array<i64: 12, 32>}, {pipeline_mode = #tpu.pipeline_mode<synchronous>, transform_indices = @transform_21, window_bounds = array<i64: 2, 32, 96>}, {pipeline_mode = #tpu.pipeline_mode<synchronous>, transform_indices = @transform_22, window_bounds = array<i64: 2, 1, 96>}, {pipeline_mode = #tpu.pipeline_mode<synchronous>, transform_indices = @transform_23, window_bounds = array<i64: 2, 32, 32>}, {pipeline_mode = #tpu.pipeline_mode<synchronous>, transform_indices = @transform_24, window_bounds = array<i64: 2, 1, 32>}, {pipeline_mode = #tpu.pipeline_mode<synchronous>, transform_indices = @transform_25, window_bounds = array<i64: 2, 1, 32>}, {pipeline_mode = #tpu.pipeline_mode<synchronous>, transform_indices = @transform_26, window_bounds = array<i64: 2, 1, 32>}, {pipeline_mode = #tpu.pipeline_mode<synchronous>, transform_indices = @transform_27, window_bounds = array<i64: 2, 32, 64>}, {pipeline_mode = #tpu.pipeline_mode<synchronous>, transform_indices = @transform_28, window_bounds = array<i64: 2, 1, 64>}, {pipeline_mode = #tpu.pipeline_mode<synchronous>, transform_indices = @transform_29, window_bounds = array<i64: 2, 64, 32>}, {pipeline_mode = #tpu.pipeline_mode<synchronous>, transform_indices = @transform_30, window_bounds = array<i64: 2, 1, 32>}, {pipeline_mode = #tpu.pipeline_mode<synchronous>, transform_indices = @transform_31, window_bounds = array<i64: 2, 1, 32>}, {pipeline_mode = #tpu.pipeline_mode<synchronous>, transform_indices = @transform_32, window_bounds = array<i64: 2, 1, 32>}, {pipeline_mode = #tpu.pipeline_mode<synchronous>, transform_indices = @transform_33, window_bounds = array<i64: 1, 32>}, {pipeline_mode = #tpu.pipeline_mode<synchronous>, transform_indices = @transform_34, window_bounds = array<i64: 1, 32>}, {pipeline_mode = #tpu.pipeline_mode<synchronous>, transform_indices = @transform_35, window_bounds = array<i64: 1, 32, 96>}, {pipeline_mode = #tpu.pipeline_mode<synchronous>, transform_indices = @transform_36, window_bounds = array<i64: 1, 1, 96>}, {pipeline_mode = #tpu.pipeline_mode<synchronous>, transform_indices = @transform_37, window_bounds = array<i64: 1, 32, 32>}, {pipeline_mode = #tpu.pipeline_mode<synchronous>, transform_indices = @transform_38, window_bounds = array<i64: 1, 1, 32>}, {pipeline_mode = #tpu.pipeline_mode<synchronous>, transform_indices = @transform_39, window_bounds = array<i64: 1, 1, 32>}, {pipeline_mode = #tpu.pipeline_mode<synchronous>, transform_indices = @transform_40, window_bounds = array<i64: 1, 1, 32>}, {pipeline_mode = #tpu.pipeline_mode<synchronous>, transform_indices = @transform_41, window_bounds = array<i64: 1, 32, 32>}, {pipeline_mode = #tpu.pipeline_mode<synchronous>, transform_indices = @transform_42, window_bounds = array<i64: 1, 1, 32>}, {pipeline_mode = #tpu.pipeline_mode<synchronous>, transform_indices = @transform_43, window_bounds = array<i64: 1, 32, 64>}, {pipeline_mode = #tpu.pipeline_mode<synchronous>, transform_indices = @transform_44, window_bounds = array<i64: 1, 1, 64>}, {pipeline_mode = #tpu.pipeline_mode<synchronous>, transform_indices = @transform_45, window_bounds = array<i64: 1, 32, 32>}, {pipeline_mode = #tpu.pipeline_mode<synchronous>, transform_indices = @transform_46, window_bounds = array<i64: 1, 1, 32>}, {pipeline_mode = #tpu.pipeline_mode<synchronous>, transform_indices = @transform_47, window_bounds = array<i64: 1, 1, 32>}, {pipeline_mode = #tpu.pipeline_mode<synchronous>, transform_indices = @transform_48, window_bounds = array<i64: 1, 1, 32>}, {pipeline_mode = #tpu.pipeline_mode<synchronous>, transform_indices = @transform_49, window_bounds = array<i64: 1, 32, 64>}, {pipeline_mode = #tpu.pipeline_mode<synchronous>, transform_indices = @transform_50, window_bounds = array<i64: 1, 1, 64>}, {pipeline_mode = #tpu.pipeline_mode<synchronous>, transform_indices = @transform_51, window_bounds = array<i64: 1, 64, 32>}, {pipeline_mode = #tpu.pipeline_mode<synchronous>, transform_indices = @transform_52, window_bounds = array<i64: 1, 1, 32>}, {pipeline_mode = #tpu.pipeline_mode<synchronous>, transform_indices = @transform_53, window_bounds = array<i64: 1, 1, 32>}, {pipeline_mode = #tpu.pipeline_mode<synchronous>, transform_indices = @transform_54, window_bounds = array<i64: 1, 1, 32>}, {pipeline_mode = #tpu.pipeline_mode<synchronous>, transform_indices = @transform_55, window_bounds = array<i64: 1, 32>}, {pipeline_mode = #tpu.pipeline_mode<synchronous>, transform_indices = @transform_56, window_bounds = array<i64: 1, 32>}, {pipeline_mode = #tpu.pipeline_mode<synchronous>, transform_indices = @transform_57, window_bounds = array<i64: 32, 4>}, {pipeline_mode = #tpu.pipeline_mode<synchronous>, transform_indices = @transform_58, window_bounds = array<i64: 1, 4>}, {transform_indices = @transform_59, window_bounds = array<i64: 1, 16, 4>}, {transform_indices = @transform_60, window_bounds = array<i64: 1, 2, 16, 64>}]} {
    %c0 = arith.constant 0 : index
    %c0_0 = arith.constant 0 : index
    %c0_1 = arith.constant 0 : index
    %0 = vector.load %arg1[%c0, %c0_0, %c0_1] : memref<1x48x4xf32, #tpu.memory_space<vmem>>, vector<1x48x4xf32>
    %1 = vector.shape_cast %0 : vector<1x48x4xf32> to vector<48x4xf32>
    %c0_2 = arith.constant 0 : index
    %c0_3 = arith.constant 0 : index
    %c0_4 = arith.constant 0 : index
    %2 = vector.load %arg2[%c0_2, %c0_3, %c0_4] : memref<1x1x4xf32, #tpu.memory_space<vmem>>, vector<1x1x4xf32>
    %3 = vector.shape_cast %2 : vector<1x1x4xf32> to vector<1x4xf32>
    %c0_5 = arith.constant 0 : index
    %c0_6 = arith.constant 0 : index
    %c0_7 = arith.constant 0 : index
    %4 = vector.load %arg3[%c0_5, %c0_6, %c0_7] : memref<1x1x4xf32, #tpu.memory_space<vmem>>, vector<1x1x4xf32>
    %5 = vector.shape_cast %4 : vector<1x1x4xf32> to vector<1x4xf32>
    %c0_8 = arith.constant 0 : index
    %c0_9 = arith.constant 0 : index
    %6 = vector.load %arg8[%c0_8, %c0_9] : memref<1x48xf32, #tpu.memory_space<vmem>>, vector<1x48xf32>
    %cst = arith.constant dense<0.000000e+00> : vector<1x4xf32>
    %7 = tpu.matmul %6, %1, %cst {dimension_numbers = #tpu.dot_dimension_numbers<[1], [0], [0], [1], [0, 0, 1, 1], [], []>} : vector<1x48xf32>, vector<48x4xf32>, vector<1x4xf32> -> vector<1x4xf32>
    %8 = tpu.concatenate %7, %3 in 1 : vector<1x4xf32>, vector<1x4xf32> -> vector<1x8xf32>
    %c0_10 = arith.constant 0 : index
    %c0_11 = arith.constant 0 : index
    %9 = vector.load %arg9[%c0_10, %c0_11] : memref<8x16xf32, #tpu.memory_space<vmem>>, vector<8x16xf32>
    %cst_12 = arith.constant dense<0.000000e+00> : vector<1x16xf32>
    %10 = tpu.matmul %8, %9, %cst_12 {dimension_numbers = #tpu.dot_dimension_numbers<[1], [0], [0], [1], [0, 0, 1, 1], [], []>} : vector<1x8xf32>, vector<8x16xf32>, vector<1x16xf32> -> vector<1x16xf32>
    %c0_13 = arith.constant 0 : index
    %c0_14 = arith.constant 0 : index
    %11 = vector.load %arg10[%c0_13, %c0_14] : memref<1x16xf32, #tpu.memory_space<vmem>>, vector<1x16xf32>
    %12 = arith.addf %10, %11 : vector<1x16xf32>
    %cst_15 = arith.constant 0.000000e+00 : f32
    %13 = vector.broadcast %cst_15 : f32 to vector<1x16xf32>
    %14 = arith.maximumf %12, %13 : vector<1x16xf32>
    %c0_16 = arith.constant 0 : index
    %c0_17 = arith.constant 0 : index
    %15 = vector.load %arg11[%c0_16, %c0_17] : memref<16x16xf32, #tpu.memory_space<vmem>>, vector<16x16xf32>
    %cst_18 = arith.constant dense<0.000000e+00> : vector<1x16xf32>
    %16 = tpu.matmul %14, %15, %cst_18 {dimension_numbers = #tpu.dot_dimension_numbers<[1], [0], [0], [1], [0, 0, 1, 1], [], []>} : vector<1x16xf32>, vector<16x16xf32>, vector<1x16xf32> -> vector<1x16xf32>
    %c0_19 = arith.constant 0 : index
    %c0_20 = arith.constant 0 : index
    %17 = vector.load %arg12[%c0_19, %c0_20] : memref<1x16xf32, #tpu.memory_space<vmem>>, vector<1x16xf32>
    %18 = arith.addf %16, %17 : vector<1x16xf32>
    %cst_21 = arith.constant 0.000000e+00 : f32
    %19 = vector.broadcast %cst_21 : f32 to vector<1x16xf32>
    %20 = arith.maximumf %18, %19 : vector<1x16xf32>
    %c0_22 = arith.constant 0 : index
    %c0_23 = arith.constant 0 : index
    %21 = vector.load %arg13[%c0_22, %c0_23] : memref<16x1xf32, #tpu.memory_space<vmem>>, vector<16x1xf32>
    %cst_24 = arith.constant dense<0.000000e+00> : vector<1x1xf32>
    %22 = tpu.matmul %20, %21, %cst_24 {dimension_numbers = #tpu.dot_dimension_numbers<[1], [0], [0], [1], [0, 0, 1, 1], [], []>} : vector<1x16xf32>, vector<16x1xf32>, vector<1x1xf32> -> vector<1x1xf32>
    %23 = math.exp %22 : vector<1x1xf32>
    %c0_25 = arith.constant 0 : index
    %c0_26 = arith.constant 0 : index
    %24 = vector.load %arg14[%c0_25, %c0_26] : memref<1x48xf32, #tpu.memory_space<vmem>>, vector<1x48xf32>
    %cst_27 = arith.constant dense<0.000000e+00> : vector<1x4xf32>
    %25 = tpu.matmul %24, %1, %cst_27 {dimension_numbers = #tpu.dot_dimension_numbers<[1], [0], [0], [1], [0, 0, 1, 1], [], []>} : vector<1x48xf32>, vector<48x4xf32>, vector<1x4xf32> -> vector<1x4xf32>
    %26 = tpu.concatenate %25, %5 in 1 : vector<1x4xf32>, vector<1x4xf32> -> vector<1x8xf32>
    %c0_28 = arith.constant 0 : index
    %c0_29 = arith.constant 0 : index
    %27 = vector.load %arg15[%c0_28, %c0_29] : memref<8x16xf32, #tpu.memory_space<vmem>>, vector<8x16xf32>
    %cst_30 = arith.constant dense<0.000000e+00> : vector<1x16xf32>
    %28 = tpu.matmul %26, %27, %cst_30 {dimension_numbers = #tpu.dot_dimension_numbers<[1], [0], [0], [1], [0, 0, 1, 1], [], []>} : vector<1x8xf32>, vector<8x16xf32>, vector<1x16xf32> -> vector<1x16xf32>
    %c0_31 = arith.constant 0 : index
    %c0_32 = arith.constant 0 : index
    %29 = vector.load %arg16[%c0_31, %c0_32] : memref<1x16xf32, #tpu.memory_space<vmem>>, vector<1x16xf32>
    %30 = arith.addf %28, %29 : vector<1x16xf32>
    %cst_33 = arith.constant 0.000000e+00 : f32
    %31 = vector.broadcast %cst_33 : f32 to vector<1x16xf32>
    %32 = arith.maximumf %30, %31 : vector<1x16xf32>
    %c0_34 = arith.constant 0 : index
    %c0_35 = arith.constant 0 : index
    %33 = vector.load %arg17[%c0_34, %c0_35] : memref<16x16xf32, #tpu.memory_space<vmem>>, vector<16x16xf32>
    %cst_36 = arith.constant dense<0.000000e+00> : vector<1x16xf32>
    %34 = tpu.matmul %32, %33, %cst_36 {dimension_numbers = #tpu.dot_dimension_numbers<[1], [0], [0], [1], [0, 0, 1, 1], [], []>} : vector<1x16xf32>, vector<16x16xf32>, vector<1x16xf32> -> vector<1x16xf32>
    %c0_37 = arith.constant 0 : index
    %c0_38 = arith.constant 0 : index
    %35 = vector.load %arg18[%c0_37, %c0_38] : memref<1x16xf32, #tpu.memory_space<vmem>>, vector<1x16xf32>
    %36 = arith.addf %34, %35 : vector<1x16xf32>
    %cst_39 = arith.constant 0.000000e+00 : f32
    %37 = vector.broadcast %cst_39 : f32 to vector<1x16xf32>
    %38 = arith.maximumf %36, %37 : vector<1x16xf32>
    %c0_40 = arith.constant 0 : index
    %c0_41 = arith.constant 0 : index
    %39 = vector.load %arg19[%c0_40, %c0_41] : memref<16x16xf32, #tpu.memory_space<vmem>>, vector<16x16xf32>
    %cst_42 = arith.constant dense<0.000000e+00> : vector<1x16xf32>
    %40 = tpu.matmul %38, %39, %cst_42 {dimension_numbers = #tpu.dot_dimension_numbers<[1], [0], [0], [1], [0, 0, 1, 1], [], []>} : vector<1x16xf32>, vector<16x16xf32>, vector<1x16xf32> -> vector<1x16xf32>
    %cst_43 = arith.constant 0.353553385 : f32
    %41 = vector.broadcast %cst_43 : f32 to vector<1x1xf32>
    %42 = arith.mulf %23, %41 : vector<1x1xf32>
    %cst_44 = arith.constant 0.353553385 : f32
    %43 = vector.broadcast %cst_44 : f32 to vector<1x16xf32>
    %44 = arith.mulf %40, %43 : vector<1x16xf32>
    %c0_45 = arith.constant 0 : index
    %c0_46 = arith.constant 0 : index
    %c0_47 = arith.constant 0 : index
    %45 = vector.load %arg4[%c0_45, %c0_46, %c0_47] : memref<1x16x12xf32, #tpu.memory_space<vmem>>, vector<1x16x12xf32>
    %46 = vector.shape_cast %45 : vector<1x16x12xf32> to vector<16x12xf32>
    %c0_48 = arith.constant 0 : index
    %c0_49 = arith.constant 0 : index
    %47 = vector.load %arg20[%c0_48, %c0_49] : memref<12x32xf32, #tpu.memory_space<vmem>>, vector<12x32xf32>
    %cst_50 = arith.constant dense<0.000000e+00> : vector<16x32xf32>
    %48 = tpu.matmul %46, %47, %cst_50 {dimension_numbers = #tpu.dot_dimension_numbers<[1], [0], [0], [1], [0, 0, 1, 1], [], []>} : vector<16x12xf32>, vector<12x32xf32>, vector<16x32xf32> -> vector<16x32xf32>
    %c0_51 = arith.constant 0 : index
    %c0_52 = arith.constant 0 : index
    %c0_53 = arith.constant 0 : index
    %49 = vector.load %arg5[%c0_51, %c0_52, %c0_53] : memref<1x16x32xf32, #tpu.memory_space<vmem>>, vector<1x16x32xf32>
    %50 = vector.shape_cast %49 : vector<1x16x32xf32> to vector<16x32xf32>
    %51 = arith.addf %48, %50 : vector<16x32xf32>
    %c0_54 = arith.constant 0 : index
    %c0_55 = arith.constant 0 : index
    %c0_56 = arith.constant 0 : index
    %52 = vector.load %arg22[%c0_54, %c0_55, %c0_56] : memref<2x32x96xf32, #tpu.memory_space<vmem>>, vector<1x32x96xf32>
    %53 = vector.shape_cast %52 : vector<1x32x96xf32> to vector<32x96xf32>
    %cst_57 = arith.constant dense<0.000000e+00> : vector<16x96xf32>
    %54 = tpu.matmul %51, %53, %cst_57 {dimension_numbers = #tpu.dot_dimension_numbers<[1], [0], [0], [1], [0, 0, 1, 1], [], []>} : vector<16x32xf32>, vector<32x96xf32>, vector<16x96xf32> -> vector<16x96xf32>
    %c0_58 = arith.constant 0 : index
    %c0_59 = arith.constant 0 : index
    %c0_60 = arith.constant 0 : index
    %55 = vector.load %arg23[%c0_58, %c0_59, %c0_60] : memref<2x1x96xf32, #tpu.memory_space<vmem>>, vector<1x1x96xf32>
    %56 = vector.shape_cast %55 : vector<1x1x96xf32> to vector<1x96xf32>
    %57 = vector.broadcast %56 : vector<1x96xf32> to vector<16x96xf32>
    %58 = arith.addf %54, %57 : vector<16x96xf32>
    %59 = vector.extract_strided_slice %58 {offsets = [0, 0], sizes = [16, 32], strides = [1, 1]} : vector<16x96xf32> to vector<16x32xf32>
    %60 = vector.extract_strided_slice %58 {offsets = [0, 32], sizes = [16, 32], strides = [1, 1]} : vector<16x96xf32> to vector<16x32xf32>
    %61 = vector.extract_strided_slice %58 {offsets = [0, 64], sizes = [16, 32], strides = [1, 1]} : vector<16x96xf32> to vector<16x32xf32>
    %c0_61 = arith.constant 0 : index
    %c0_62 = arith.constant 0 : index
    %c0_63 = arith.constant 0 : index
    %62 = vector.load %arg24[%c0_61, %c0_62, %c0_63] : memref<2x32x32xf32, #tpu.memory_space<vmem>>, vector<1x32x32xf32>
    %63 = vector.shape_cast %62 : vector<1x32x32xf32> to vector<32x32xf32>
    %c0_64 = arith.constant 0 : index
    %c0_65 = arith.constant 0 : index
    %c0_66 = arith.constant 0 : index
    %64 = vector.load %arg25[%c0_64, %c0_65, %c0_66] : memref<2x1x32xf32, #tpu.memory_space<vmem>>, vector<1x1x32xf32>
    %65 = vector.shape_cast %64 : vector<1x1x32xf32> to vector<1x32xf32>
    %66 = vector.broadcast %42 : vector<1x1xf32> to vector<16x32xf32>
    %67 = arith.mulf %59, %66 : vector<16x32xf32>
    %68 = vector.extract_strided_slice %67 {offsets = [0, 0], sizes = [16, 8], strides = [1, 1]} : vector<16x32xf32> to vector<16x8xf32>
    %69 = vector.extract_strided_slice %60 {offsets = [0, 0], sizes = [16, 8], strides = [1, 1]} : vector<16x32xf32> to vector<16x8xf32>
    %70 = vector.extract_strided_slice %61 {offsets = [0, 0], sizes = [16, 8], strides = [1, 1]} : vector<16x32xf32> to vector<16x8xf32>
    %71 = tpu.transpose %69, [1, 0] : vector<16x8xf32> -> vector<8x16xf32>
    %cst_67 = arith.constant dense<0.000000e+00> : vector<16x16xf32>
    %72 = tpu.matmul %68, %71, %cst_67 {dimension_numbers = #tpu.dot_dimension_numbers<[1], [0], [0], [1], [0, 0, 1, 1], [], []>} : vector<16x8xf32>, vector<8x16xf32>, vector<16x16xf32> -> vector<16x16xf32>
    %73 = vector.broadcast %44 : vector<1x16xf32> to vector<16x16xf32>
    %74 = arith.addf %72, %73 : vector<16x16xf32>
    %cst_68 = arith.constant dense<0xFF800000> : vector<16xf32>
    %75 = vector.multi_reduction <maximumf>, %74, %cst_68 [1] : vector<16x16xf32> to vector<16xf32>
    %76 = vector.shape_cast %75 : vector<16xf32> to vector<16x1xf32>
    %77 = vector.broadcast %76 : vector<16x1xf32> to vector<16x16xf32>
    %78 = arith.subf %74, %77 : vector<16x16xf32>
    %79 = math.exp %78 : vector<16x16xf32>
    %cst_69 = arith.constant dense<0.000000e+00> : vector<16xf32>
    %80 = vector.multi_reduction <add>, %79, %cst_69 [1] : vector<16x16xf32> to vector<16xf32>
    %81 = vector.shape_cast %80 : vector<16xf32> to vector<16x1xf32>
    %82 = tpu.reciprocal %81 {approx = true} : vector<16x1xf32> -> vector<16x1xf32>
    %83 = vector.broadcast %82 : vector<16x1xf32> to vector<16x16xf32>
    %84 = arith.mulf %79, %83 : vector<16x16xf32>
    %cst_70 = arith.constant dense<0.000000e+00> : vector<16x8xf32>
    %85 = tpu.matmul %84, %70, %cst_70 {dimension_numbers = #tpu.dot_dimension_numbers<[1], [0], [0], [1], [0, 0, 1, 1], [], []>} : vector<16x16xf32>, vector<16x8xf32>, vector<16x8xf32> -> vector<16x8xf32>
    %86 = vector.extract_strided_slice %67 {offsets = [0, 8], sizes = [16, 8], strides = [1, 1]} : vector<16x32xf32> to vector<16x8xf32>
    %87 = vector.extract_strided_slice %60 {offsets = [0, 8], sizes = [16, 8], strides = [1, 1]} : vector<16x32xf32> to vector<16x8xf32>
    %88 = vector.extract_strided_slice %61 {offsets = [0, 8], sizes = [16, 8], strides = [1, 1]} : vector<16x32xf32> to vector<16x8xf32>
    %89 = tpu.transpose %87, [1, 0] : vector<16x8xf32> -> vector<8x16xf32>
    %cst_71 = arith.constant dense<0.000000e+00> : vector<16x16xf32>
    %90 = tpu.matmul %86, %89, %cst_71 {dimension_numbers = #tpu.dot_dimension_numbers<[1], [0], [0], [1], [0, 0, 1, 1], [], []>} : vector<16x8xf32>, vector<8x16xf32>, vector<16x16xf32> -> vector<16x16xf32>
    %91 = vector.broadcast %44 : vector<1x16xf32> to vector<16x16xf32>
    %92 = arith.addf %90, %91 : vector<16x16xf32>
    %cst_72 = arith.constant dense<0xFF800000> : vector<16xf32>
    %93 = vector.multi_reduction <maximumf>, %92, %cst_72 [1] : vector<16x16xf32> to vector<16xf32>
    %94 = vector.shape_cast %93 : vector<16xf32> to vector<16x1xf32>
    %95 = vector.broadcast %94 : vector<16x1xf32> to vector<16x16xf32>
    %96 = arith.subf %92, %95 : vector<16x16xf32>
    %97 = math.exp %96 : vector<16x16xf32>
    %cst_73 = arith.constant dense<0.000000e+00> : vector<16xf32>
    %98 = vector.multi_reduction <add>, %97, %cst_73 [1] : vector<16x16xf32> to vector<16xf32>
    %99 = vector.shape_cast %98 : vector<16xf32> to vector<16x1xf32>
    %100 = tpu.reciprocal %99 {approx = true} : vector<16x1xf32> -> vector<16x1xf32>
    %101 = vector.broadcast %100 : vector<16x1xf32> to vector<16x16xf32>
    %102 = arith.mulf %97, %101 : vector<16x16xf32>
    %cst_74 = arith.constant dense<0.000000e+00> : vector<16x8xf32>
    %103 = tpu.matmul %102, %88, %cst_74 {dimension_numbers = #tpu.dot_dimension_numbers<[1], [0], [0], [1], [0, 0, 1, 1], [], []>} : vector<16x16xf32>, vector<16x8xf32>, vector<16x8xf32> -> vector<16x8xf32>
    %104 = vector.extract_strided_slice %67 {offsets = [0, 16], sizes = [16, 8], strides = [1, 1]} : vector<16x32xf32> to vector<16x8xf32>
    %105 = vector.extract_strided_slice %60 {offsets = [0, 16], sizes = [16, 8], strides = [1, 1]} : vector<16x32xf32> to vector<16x8xf32>
    %106 = vector.extract_strided_slice %61 {offsets = [0, 16], sizes = [16, 8], strides = [1, 1]} : vector<16x32xf32> to vector<16x8xf32>
    %107 = tpu.transpose %105, [1, 0] : vector<16x8xf32> -> vector<8x16xf32>
    %cst_75 = arith.constant dense<0.000000e+00> : vector<16x16xf32>
    %108 = tpu.matmul %104, %107, %cst_75 {dimension_numbers = #tpu.dot_dimension_numbers<[1], [0], [0], [1], [0, 0, 1, 1], [], []>} : vector<16x8xf32>, vector<8x16xf32>, vector<16x16xf32> -> vector<16x16xf32>
    %109 = vector.broadcast %44 : vector<1x16xf32> to vector<16x16xf32>
    %110 = arith.addf %108, %109 : vector<16x16xf32>
    %cst_76 = arith.constant dense<0xFF800000> : vector<16xf32>
    %111 = vector.multi_reduction <maximumf>, %110, %cst_76 [1] : vector<16x16xf32> to vector<16xf32>
    %112 = vector.shape_cast %111 : vector<16xf32> to vector<16x1xf32>
    %113 = vector.broadcast %112 : vector<16x1xf32> to vector<16x16xf32>
    %114 = arith.subf %110, %113 : vector<16x16xf32>
    %115 = math.exp %114 : vector<16x16xf32>
    %cst_77 = arith.constant dense<0.000000e+00> : vector<16xf32>
    %116 = vector.multi_reduction <add>, %115, %cst_77 [1] : vector<16x16xf32> to vector<16xf32>
    %117 = vector.shape_cast %116 : vector<16xf32> to vector<16x1xf32>
    %118 = tpu.reciprocal %117 {approx = true} : vector<16x1xf32> -> vector<16x1xf32>
    %119 = vector.broadcast %118 : vector<16x1xf32> to vector<16x16xf32>
    %120 = arith.mulf %115, %119 : vector<16x16xf32>
    %cst_78 = arith.constant dense<0.000000e+00> : vector<16x8xf32>
    %121 = tpu.matmul %120, %106, %cst_78 {dimension_numbers = #tpu.dot_dimension_numbers<[1], [0], [0], [1], [0, 0, 1, 1], [], []>} : vector<16x16xf32>, vector<16x8xf32>, vector<16x8xf32> -> vector<16x8xf32>
    %122 = vector.extract_strided_slice %67 {offsets = [0, 24], sizes = [16, 8], strides = [1, 1]} : vector<16x32xf32> to vector<16x8xf32>
    %123 = vector.extract_strided_slice %60 {offsets = [0, 24], sizes = [16, 8], strides = [1, 1]} : vector<16x32xf32> to vector<16x8xf32>
    %124 = vector.extract_strided_slice %61 {offsets = [0, 24], sizes = [16, 8], strides = [1, 1]} : vector<16x32xf32> to vector<16x8xf32>
    %125 = tpu.transpose %123, [1, 0] : vector<16x8xf32> -> vector<8x16xf32>
    %cst_79 = arith.constant dense<0.000000e+00> : vector<16x16xf32>
    %126 = tpu.matmul %122, %125, %cst_79 {dimension_numbers = #tpu.dot_dimension_numbers<[1], [0], [0], [1], [0, 0, 1, 1], [], []>} : vector<16x8xf32>, vector<8x16xf32>, vector<16x16xf32> -> vector<16x16xf32>
    %127 = vector.broadcast %44 : vector<1x16xf32> to vector<16x16xf32>
    %128 = arith.addf %126, %127 : vector<16x16xf32>
    %cst_80 = arith.constant dense<0xFF800000> : vector<16xf32>
    %129 = vector.multi_reduction <maximumf>, %128, %cst_80 [1] : vector<16x16xf32> to vector<16xf32>
    %130 = vector.shape_cast %129 : vector<16xf32> to vector<16x1xf32>
    %131 = vector.broadcast %130 : vector<16x1xf32> to vector<16x16xf32>
    %132 = arith.subf %128, %131 : vector<16x16xf32>
    %133 = math.exp %132 : vector<16x16xf32>
    %cst_81 = arith.constant dense<0.000000e+00> : vector<16xf32>
    %134 = vector.multi_reduction <add>, %133, %cst_81 [1] : vector<16x16xf32> to vector<16xf32>
    %135 = vector.shape_cast %134 : vector<16xf32> to vector<16x1xf32>
    %136 = tpu.reciprocal %135 {approx = true} : vector<16x1xf32> -> vector<16x1xf32>
    %137 = vector.broadcast %136 : vector<16x1xf32> to vector<16x16xf32>
    %138 = arith.mulf %133, %137 : vector<16x16xf32>
    %cst_82 = arith.constant dense<0.000000e+00> : vector<16x8xf32>
    %139 = tpu.matmul %138, %124, %cst_82 {dimension_numbers = #tpu.dot_dimension_numbers<[1], [0], [0], [1], [0, 0, 1, 1], [], []>} : vector<16x16xf32>, vector<16x8xf32>, vector<16x8xf32> -> vector<16x8xf32>
    %140 = tpu.concatenate %85, %103, %121, %139 in 1 : vector<16x8xf32>, vector<16x8xf32>, vector<16x8xf32>, vector<16x8xf32> -> vector<16x32xf32>
    %cst_83 = arith.constant dense<0.000000e+00> : vector<16x32xf32>
    %141 = tpu.matmul %140, %63, %cst_83 {dimension_numbers = #tpu.dot_dimension_numbers<[1], [0], [0], [1], [0, 0, 1, 1], [], []>} : vector<16x32xf32>, vector<32x32xf32>, vector<16x32xf32> -> vector<16x32xf32>
    %142 = vector.broadcast %65 : vector<1x32xf32> to vector<16x32xf32>
    %143 = arith.addf %141, %142 : vector<16x32xf32>
    %144 = tpu.concatenate %84, %102, %120, %138 in 1 : vector<16x16xf32>, vector<16x16xf32>, vector<16x16xf32>, vector<16x16xf32> -> vector<16x64xf32>
    %c0_84 = arith.constant 0 : index
    %c0_85 = arith.constant 0 : index
    %c0_86 = arith.constant 0 : index
    %c0_87 = arith.constant 0 : index
    %145 = vector.load %arg61[%c0_84, %c0_85, %c0_86, %c0_87] : memref<1x2x16x64xf32, #tpu.memory_space<vmem>>, vector<1x1x16x64xf32>
    %146 = vector.shape_cast %145 : vector<1x1x16x64xf32> to vector<16x64xf32>
    %147 = vector.shape_cast %144 : vector<16x64xf32> to vector<1x1x16x64xf32>
    tpu.vector_store %arg61[%c0_84, %c0_85, %c0_86, %c0_87], %147 {strides = array<i32>} : memref<1x2x16x64xf32, #tpu.memory_space<vmem>>, vector<1x1x16x64xf32>,
    %148 = arith.addf %51, %143 : vector<16x32xf32>
    %c0_88 = arith.constant 0 : index
    %c0_89 = arith.constant 0 : index
    %c0_90 = arith.constant 0 : index
    %149 = vector.load %arg26[%c0_88, %c0_89, %c0_90] : memref<2x1x32xf32, #tpu.memory_space<vmem>>, vector<1x1x32xf32>
    %150 = vector.shape_cast %149 : vector<1x1x32xf32> to vector<1x32xf32>
    %c0_91 = arith.constant 0 : index
    %c0_92 = arith.constant 0 : index
    %c0_93 = arith.constant 0 : index
    %151 = vector.load %arg27[%c0_91, %c0_92, %c0_93] : memref<2x1x32xf32, #tpu.memory_space<vmem>>, vector<1x1x32xf32>
    %152 = vector.shape_cast %151 : vector<1x1x32xf32> to vector<1x32xf32>
    %cst_94 = arith.constant dense<0.000000e+00> : vector<16xf32>
    %153 = vector.multi_reduction <add>, %148, %cst_94 [1] : vector<16x32xf32> to vector<16xf32>
    %154 = vector.shape_cast %153 : vector<16xf32> to vector<16x1xf32>
    %cst_95 = arith.constant 3.200000e+01 : f32
    %155 = vector.broadcast %cst_95 : f32 to vector<16x1xf32>
    %156 = arith.divf %154, %155 : vector<16x1xf32>
    %157 = vector.broadcast %156 : vector<16x1xf32> to vector<16x32xf32>
    %158 = arith.subf %148, %157 : vector<16x32xf32>
    %159 = arith.mulf %158, %158 : vector<16x32xf32>
    %cst_96 = arith.constant dense<0.000000e+00> : vector<16xf32>
    %160 = vector.multi_reduction <add>, %159, %cst_96 [1] : vector<16x32xf32> to vector<16xf32>
    %161 = vector.shape_cast %160 : vector<16xf32> to vector<16x1xf32>
    %cst_97 = arith.constant 3.200000e+01 : f32
    %162 = vector.broadcast %cst_97 : f32 to vector<16x1xf32>
    %163 = arith.divf %161, %162 : vector<16x1xf32>
    %cst_98 = arith.constant 9.99999974E-6 : f32
    %164 = vector.broadcast %cst_98 : f32 to vector<16x1xf32>
    %165 = arith.addf %163, %164 : vector<16x1xf32>
    %166 = math.rsqrt %165 : vector<16x1xf32>
    %167 = vector.broadcast %166 : vector<16x1xf32> to vector<16x32xf32>
    %168 = arith.mulf %158, %167 : vector<16x32xf32>
    %169 = vector.broadcast %150 : vector<1x32xf32> to vector<16x32xf32>
    %170 = arith.mulf %168, %169 : vector<16x32xf32>
    %171 = vector.broadcast %152 : vector<1x32xf32> to vector<16x32xf32>
    %172 = arith.addf %170, %171 : vector<16x32xf32>
    %c0_99 = arith.constant 0 : index
    %c0_100 = arith.constant 0 : index
    %c0_101 = arith.constant 0 : index
    %173 = vector.load %arg28[%c0_99, %c0_100, %c0_101] : memref<2x32x64xf32, #tpu.memory_space<vmem>>, vector<1x32x64xf32>
    %174 = vector.shape_cast %173 : vector<1x32x64xf32> to vector<32x64xf32>
    %cst_102 = arith.constant dense<0.000000e+00> : vector<16x64xf32>
    %175 = tpu.matmul %172, %174, %cst_102 {dimension_numbers = #tpu.dot_dimension_numbers<[1], [0], [0], [1], [0, 0, 1, 1], [], []>} : vector<16x32xf32>, vector<32x64xf32>, vector<16x64xf32> -> vector<16x64xf32>
    %c0_103 = arith.constant 0 : index
    %c0_104 = arith.constant 0 : index
    %c0_105 = arith.constant 0 : index
    %176 = vector.load %arg29[%c0_103, %c0_104, %c0_105] : memref<2x1x64xf32, #tpu.memory_space<vmem>>, vector<1x1x64xf32>
    %177 = vector.shape_cast %176 : vector<1x1x64xf32> to vector<1x64xf32>
    %178 = vector.broadcast %177 : vector<1x64xf32> to vector<16x64xf32>
    %179 = arith.addf %175, %178 : vector<16x64xf32>
    %180 = arith.mulf %179, %179 : vector<16x64xf32>
    %181 = arith.mulf %179, %180 : vector<16x64xf32>
    %cst_106 = arith.constant 4.471500e-02 : f32
    %182 = vector.broadcast %cst_106 : f32 to vector<16x64xf32>
    %183 = arith.mulf %182, %181 : vector<16x64xf32>
    %184 = arith.addf %179, %183 : vector<16x64xf32>
    %cst_107 = arith.constant 0.797884583 : f32
    %185 = vector.broadcast %cst_107 : f32 to vector<16x64xf32>
    %186 = arith.mulf %185, %184 : vector<16x64xf32>
    %187 = math.tanh %186 : vector<16x64xf32>
    %cst_108 = arith.constant 1.000000e+00 : f32
    %188 = vector.broadcast %cst_108 : f32 to vector<16x64xf32>
    %189 = arith.addf %188, %187 : vector<16x64xf32>
    %cst_109 = arith.constant 5.000000e-01 : f32
    %190 = vector.broadcast %cst_109 : f32 to vector<16x64xf32>
    %191 = arith.mulf %190, %189 : vector<16x64xf32>
    %192 = arith.mulf %179, %191 : vector<16x64xf32>
    %c0_110 = arith.constant 0 : index
    %c0_111 = arith.constant 0 : index
    %c0_112 = arith.constant 0 : index
    %193 = vector.load %arg30[%c0_110, %c0_111, %c0_112] : memref<2x64x32xf32, #tpu.memory_space<vmem>>, vector<1x64x32xf32>
    %194 = vector.shape_cast %193 : vector<1x64x32xf32> to vector<64x32xf32>
    %cst_113 = arith.constant dense<0.000000e+00> : vector<16x32xf32>
    %195 = tpu.matmul %192, %194, %cst_113 {dimension_numbers = #tpu.dot_dimension_numbers<[1], [0], [0], [1], [0, 0, 1, 1], [], []>} : vector<16x64xf32>, vector<64x32xf32>, vector<16x32xf32> -> vector<16x32xf32>
    %c0_114 = arith.constant 0 : index
    %c0_115 = arith.constant 0 : index
    %c0_116 = arith.constant 0 : index
    %196 = vector.load %arg31[%c0_114, %c0_115, %c0_116] : memref<2x1x32xf32, #tpu.memory_space<vmem>>, vector<1x1x32xf32>
    %197 = vector.shape_cast %196 : vector<1x1x32xf32> to vector<1x32xf32>
    %198 = vector.broadcast %197 : vector<1x32xf32> to vector<16x32xf32>
    %199 = arith.addf %195, %198 : vector<16x32xf32>
    %200 = arith.addf %172, %199 : vector<16x32xf32>
    %c0_117 = arith.constant 0 : index
    %c0_118 = arith.constant 0 : index
    %c0_119 = arith.constant 0 : index
    %201 = vector.load %arg32[%c0_117, %c0_118, %c0_119] : memref<2x1x32xf32, #tpu.memory_space<vmem>>, vector<1x1x32xf32>
    %202 = vector.shape_cast %201 : vector<1x1x32xf32> to vector<1x32xf32>
    %c0_120 = arith.constant 0 : index
    %c0_121 = arith.constant 0 : index
    %c0_122 = arith.constant 0 : index
    %203 = vector.load %arg33[%c0_120, %c0_121, %c0_122] : memref<2x1x32xf32, #tpu.memory_space<vmem>>, vector<1x1x32xf32>
    %204 = vector.shape_cast %203 : vector<1x1x32xf32> to vector<1x32xf32>
    %cst_123 = arith.constant dense<0.000000e+00> : vector<16xf32>
    %205 = vector.multi_reduction <add>, %200, %cst_123 [1] : vector<16x32xf32> to vector<16xf32>
    %206 = vector.shape_cast %205 : vector<16xf32> to vector<16x1xf32>
    %cst_124 = arith.constant 3.200000e+01 : f32
    %207 = vector.broadcast %cst_124 : f32 to vector<16x1xf32>
    %208 = arith.divf %206, %207 : vector<16x1xf32>
    %209 = vector.broadcast %208 : vector<16x1xf32> to vector<16x32xf32>
    %210 = arith.subf %200, %209 : vector<16x32xf32>
    %211 = arith.mulf %210, %210 : vector<16x32xf32>
    %cst_125 = arith.constant dense<0.000000e+00> : vector<16xf32>
    %212 = vector.multi_reduction <add>, %211, %cst_125 [1] : vector<16x32xf32> to vector<16xf32>
    %213 = vector.shape_cast %212 : vector<16xf32> to vector<16x1xf32>
    %cst_126 = arith.constant 3.200000e+01 : f32
    %214 = vector.broadcast %cst_126 : f32 to vector<16x1xf32>
    %215 = arith.divf %213, %214 : vector<16x1xf32>
    %cst_127 = arith.constant 9.99999974E-6 : f32
    %216 = vector.broadcast %cst_127 : f32 to vector<16x1xf32>
    %217 = arith.addf %215, %216 : vector<16x1xf32>
    %218 = math.rsqrt %217 : vector<16x1xf32>
    %219 = vector.broadcast %218 : vector<16x1xf32> to vector<16x32xf32>
    %220 = arith.mulf %210, %219 : vector<16x32xf32>
    %221 = vector.broadcast %202 : vector<1x32xf32> to vector<16x32xf32>
    %222 = arith.mulf %220, %221 : vector<16x32xf32>
    %223 = vector.broadcast %204 : vector<1x32xf32> to vector<16x32xf32>
    %224 = arith.addf %222, %223 : vector<16x32xf32>
    %c1 = arith.constant 1 : index
    %c0_128 = arith.constant 0 : index
    %c0_129 = arith.constant 0 : index
    %225 = vector.load %arg22[%c1, %c0_128, %c0_129] : memref<2x32x96xf32, #tpu.memory_space<vmem>>, vector<1x32x96xf32>
    %226 = vector.shape_cast %225 : vector<1x32x96xf32> to vector<32x96xf32>
    %cst_130 = arith.constant dense<0.000000e+00> : vector<16x96xf32>
    %227 = tpu.matmul %224, %226, %cst_130 {dimension_numbers = #tpu.dot_dimension_numbers<[1], [0], [0], [1], [0, 0, 1, 1], [], []>} : vector<16x32xf32>, vector<32x96xf32>, vector<16x96xf32> -> vector<16x96xf32>
    %c1_131 = arith.constant 1 : index
    %c0_132 = arith.constant 0 : index
    %c0_133 = arith.constant 0 : index
    %228 = vector.load %arg23[%c1_131, %c0_132, %c0_133] : memref<2x1x96xf32, #tpu.memory_space<vmem>>, vector<1x1x96xf32>
    %229 = vector.shape_cast %228 : vector<1x1x96xf32> to vector<1x96xf32>
    %230 = vector.broadcast %229 : vector<1x96xf32> to vector<16x96xf32>
    %231 = arith.addf %227, %230 : vector<16x96xf32>
    %232 = vector.extract_strided_slice %231 {offsets = [0, 0], sizes = [16, 32], strides = [1, 1]} : vector<16x96xf32> to vector<16x32xf32>
    %233 = vector.extract_strided_slice %231 {offsets = [0, 32], sizes = [16, 32], strides = [1, 1]} : vector<16x96xf32> to vector<16x32xf32>
    %234 = vector.extract_strided_slice %231 {offsets = [0, 64], sizes = [16, 32], strides = [1, 1]} : vector<16x96xf32> to vector<16x32xf32>
    %c1_134 = arith.constant 1 : index
    %c0_135 = arith.constant 0 : index
    %c0_136 = arith.constant 0 : index
    %235 = vector.load %arg24[%c1_134, %c0_135, %c0_136] : memref<2x32x32xf32, #tpu.memory_space<vmem>>, vector<1x32x32xf32>
    %236 = vector.shape_cast %235 : vector<1x32x32xf32> to vector<32x32xf32>
    %c1_137 = arith.constant 1 : index
    %c0_138 = arith.constant 0 : index
    %c0_139 = arith.constant 0 : index
    %237 = vector.load %arg25[%c1_137, %c0_138, %c0_139] : memref<2x1x32xf32, #tpu.memory_space<vmem>>, vector<1x1x32xf32>
    %238 = vector.shape_cast %237 : vector<1x1x32xf32> to vector<1x32xf32>
    %239 = vector.broadcast %42 : vector<1x1xf32> to vector<16x32xf32>
    %240 = arith.mulf %232, %239 : vector<16x32xf32>
    %241 = vector.extract_strided_slice %240 {offsets = [0, 0], sizes = [16, 8], strides = [1, 1]} : vector<16x32xf32> to vector<16x8xf32>
    %242 = vector.extract_strided_slice %233 {offsets = [0, 0], sizes = [16, 8], strides = [1, 1]} : vector<16x32xf32> to vector<16x8xf32>
    %243 = vector.extract_strided_slice %234 {offsets = [0, 0], sizes = [16, 8], strides = [1, 1]} : vector<16x32xf32> to vector<16x8xf32>
    %244 = tpu.transpose %242, [1, 0] : vector<16x8xf32> -> vector<8x16xf32>
    %cst_140 = arith.constant dense<0.000000e+00> : vector<16x16xf32>
    %245 = tpu.matmul %241, %244, %cst_140 {dimension_numbers = #tpu.dot_dimension_numbers<[1], [0], [0], [1], [0, 0, 1, 1], [], []>} : vector<16x8xf32>, vector<8x16xf32>, vector<16x16xf32> -> vector<16x16xf32>
    %246 = vector.broadcast %44 : vector<1x16xf32> to vector<16x16xf32>
    %247 = arith.addf %245, %246 : vector<16x16xf32>
    %cst_141 = arith.constant dense<0xFF800000> : vector<16xf32>
    %248 = vector.multi_reduction <maximumf>, %247, %cst_141 [1] : vector<16x16xf32> to vector<16xf32>
    %249 = vector.shape_cast %248 : vector<16xf32> to vector<16x1xf32>
    %250 = vector.broadcast %249 : vector<16x1xf32> to vector<16x16xf32>
    %251 = arith.subf %247, %250 : vector<16x16xf32>
    %252 = math.exp %251 : vector<16x16xf32>
    %cst_142 = arith.constant dense<0.000000e+00> : vector<16xf32>
    %253 = vector.multi_reduction <add>, %252, %cst_142 [1] : vector<16x16xf32> to vector<16xf32>
    %254 = vector.shape_cast %253 : vector<16xf32> to vector<16x1xf32>
    %255 = tpu.reciprocal %254 {approx = true} : vector<16x1xf32> -> vector<16x1xf32>
    %256 = vector.broadcast %255 : vector<16x1xf32> to vector<16x16xf32>
    %257 = arith.mulf %252, %256 : vector<16x16xf32>
    %cst_143 = arith.constant dense<0.000000e+00> : vector<16x8xf32>
    %258 = tpu.matmul %257, %243, %cst_143 {dimension_numbers = #tpu.dot_dimension_numbers<[1], [0], [0], [1], [0, 0, 1, 1], [], []>} : vector<16x16xf32>, vector<16x8xf32>, vector<16x8xf32> -> vector<16x8xf32>
    %259 = vector.extract_strided_slice %240 {offsets = [0, 8], sizes = [16, 8], strides = [1, 1]} : vector<16x32xf32> to vector<16x8xf32>
    %260 = vector.extract_strided_slice %233 {offsets = [0, 8], sizes = [16, 8], strides = [1, 1]} : vector<16x32xf32> to vector<16x8xf32>
    %261 = vector.extract_strided_slice %234 {offsets = [0, 8], sizes = [16, 8], strides = [1, 1]} : vector<16x32xf32> to vector<16x8xf32>
    %262 = tpu.transpose %260, [1, 0] : vector<16x8xf32> -> vector<8x16xf32>
    %cst_144 = arith.constant dense<0.000000e+00> : vector<16x16xf32>
    %263 = tpu.matmul %259, %262, %cst_144 {dimension_numbers = #tpu.dot_dimension_numbers<[1], [0], [0], [1], [0, 0, 1, 1], [], []>} : vector<16x8xf32>, vector<8x16xf32>, vector<16x16xf32> -> vector<16x16xf32>
    %264 = vector.broadcast %44 : vector<1x16xf32> to vector<16x16xf32>
    %265 = arith.addf %263, %264 : vector<16x16xf32>
    %cst_145 = arith.constant dense<0xFF800000> : vector<16xf32>
    %266 = vector.multi_reduction <maximumf>, %265, %cst_145 [1] : vector<16x16xf32> to vector<16xf32>
    %267 = vector.shape_cast %266 : vector<16xf32> to vector<16x1xf32>
    %268 = vector.broadcast %267 : vector<16x1xf32> to vector<16x16xf32>
    %269 = arith.subf %265, %268 : vector<16x16xf32>
    %270 = math.exp %269 : vector<16x16xf32>
    %cst_146 = arith.constant dense<0.000000e+00> : vector<16xf32>
    %271 = vector.multi_reduction <add>, %270, %cst_146 [1] : vector<16x16xf32> to vector<16xf32>
    %272 = vector.shape_cast %271 : vector<16xf32> to vector<16x1xf32>
    %273 = tpu.reciprocal %272 {approx = true} : vector<16x1xf32> -> vector<16x1xf32>
    %274 = vector.broadcast %273 : vector<16x1xf32> to vector<16x16xf32>
    %275 = arith.mulf %270, %274 : vector<16x16xf32>
    %cst_147 = arith.constant dense<0.000000e+00> : vector<16x8xf32>
    %276 = tpu.matmul %275, %261, %cst_147 {dimension_numbers = #tpu.dot_dimension_numbers<[1], [0], [0], [1], [0, 0, 1, 1], [], []>} : vector<16x16xf32>, vector<16x8xf32>, vector<16x8xf32> -> vector<16x8xf32>
    %277 = vector.extract_strided_slice %240 {offsets = [0, 16], sizes = [16, 8], strides = [1, 1]} : vector<16x32xf32> to vector<16x8xf32>
    %278 = vector.extract_strided_slice %233 {offsets = [0, 16], sizes = [16, 8], strides = [1, 1]} : vector<16x32xf32> to vector<16x8xf32>
    %279 = vector.extract_strided_slice %234 {offsets = [0, 16], sizes = [16, 8], strides = [1, 1]} : vector<16x32xf32> to vector<16x8xf32>
    %280 = tpu.transpose %278, [1, 0] : vector<16x8xf32> -> vector<8x16xf32>
    %cst_148 = arith.constant dense<0.000000e+00> : vector<16x16xf32>
    %281 = tpu.matmul %277, %280, %cst_148 {dimension_numbers = #tpu.dot_dimension_numbers<[1], [0], [0], [1], [0, 0, 1, 1], [], []>} : vector<16x8xf32>, vector<8x16xf32>, vector<16x16xf32> -> vector<16x16xf32>
    %282 = vector.broadcast %44 : vector<1x16xf32> to vector<16x16xf32>
    %283 = arith.addf %281, %282 : vector<16x16xf32>
    %cst_149 = arith.constant dense<0xFF800000> : vector<16xf32>
    %284 = vector.multi_reduction <maximumf>, %283, %cst_149 [1] : vector<16x16xf32> to vector<16xf32>
    %285 = vector.shape_cast %284 : vector<16xf32> to vector<16x1xf32>
    %286 = vector.broadcast %285 : vector<16x1xf32> to vector<16x16xf32>
    %287 = arith.subf %283, %286 : vector<16x16xf32>
    %288 = math.exp %287 : vector<16x16xf32>
    %cst_150 = arith.constant dense<0.000000e+00> : vector<16xf32>
    %289 = vector.multi_reduction <add>, %288, %cst_150 [1] : vector<16x16xf32> to vector<16xf32>
    %290 = vector.shape_cast %289 : vector<16xf32> to vector<16x1xf32>
    %291 = tpu.reciprocal %290 {approx = true} : vector<16x1xf32> -> vector<16x1xf32>
    %292 = vector.broadcast %291 : vector<16x1xf32> to vector<16x16xf32>
    %293 = arith.mulf %288, %292 : vector<16x16xf32>
    %cst_151 = arith.constant dense<0.000000e+00> : vector<16x8xf32>
    %294 = tpu.matmul %293, %279, %cst_151 {dimension_numbers = #tpu.dot_dimension_numbers<[1], [0], [0], [1], [0, 0, 1, 1], [], []>} : vector<16x16xf32>, vector<16x8xf32>, vector<16x8xf32> -> vector<16x8xf32>
    %295 = vector.extract_strided_slice %240 {offsets = [0, 24], sizes = [16, 8], strides = [1, 1]} : vector<16x32xf32> to vector<16x8xf32>
    %296 = vector.extract_strided_slice %233 {offsets = [0, 24], sizes = [16, 8], strides = [1, 1]} : vector<16x32xf32> to vector<16x8xf32>
    %297 = vector.extract_strided_slice %234 {offsets = [0, 24], sizes = [16, 8], strides = [1, 1]} : vector<16x32xf32> to vector<16x8xf32>
    %298 = tpu.transpose %296, [1, 0] : vector<16x8xf32> -> vector<8x16xf32>
    %cst_152 = arith.constant dense<0.000000e+00> : vector<16x16xf32>
    %299 = tpu.matmul %295, %298, %cst_152 {dimension_numbers = #tpu.dot_dimension_numbers<[1], [0], [0], [1], [0, 0, 1, 1], [], []>} : vector<16x8xf32>, vector<8x16xf32>, vector<16x16xf32> -> vector<16x16xf32>
    %300 = vector.broadcast %44 : vector<1x16xf32> to vector<16x16xf32>
    %301 = arith.addf %299, %300 : vector<16x16xf32>
    %cst_153 = arith.constant dense<0xFF800000> : vector<16xf32>
    %302 = vector.multi_reduction <maximumf>, %301, %cst_153 [1] : vector<16x16xf32> to vector<16xf32>
    %303 = vector.shape_cast %302 : vector<16xf32> to vector<16x1xf32>
    %304 = vector.broadcast %303 : vector<16x1xf32> to vector<16x16xf32>
    %305 = arith.subf %301, %304 : vector<16x16xf32>
    %306 = math.exp %305 : vector<16x16xf32>
    %cst_154 = arith.constant dense<0.000000e+00> : vector<16xf32>
    %307 = vector.multi_reduction <add>, %306, %cst_154 [1] : vector<16x16xf32> to vector<16xf32>
    %308 = vector.shape_cast %307 : vector<16xf32> to vector<16x1xf32>
    %309 = tpu.reciprocal %308 {approx = true} : vector<16x1xf32> -> vector<16x1xf32>
    %310 = vector.broadcast %309 : vector<16x1xf32> to vector<16x16xf32>
    %311 = arith.mulf %306, %310 : vector<16x16xf32>
    %cst_155 = arith.constant dense<0.000000e+00> : vector<16x8xf32>
    %312 = tpu.matmul %311, %297, %cst_155 {dimension_numbers = #tpu.dot_dimension_numbers<[1], [0], [0], [1], [0, 0, 1, 1], [], []>} : vector<16x16xf32>, vector<16x8xf32>, vector<16x8xf32> -> vector<16x8xf32>
    %313 = tpu.concatenate %258, %276, %294, %312 in 1 : vector<16x8xf32>, vector<16x8xf32>, vector<16x8xf32>, vector<16x8xf32> -> vector<16x32xf32>
    %cst_156 = arith.constant dense<0.000000e+00> : vector<16x32xf32>
    %314 = tpu.matmul %313, %236, %cst_156 {dimension_numbers = #tpu.dot_dimension_numbers<[1], [0], [0], [1], [0, 0, 1, 1], [], []>} : vector<16x32xf32>, vector<32x32xf32>, vector<16x32xf32> -> vector<16x32xf32>
    %315 = vector.broadcast %238 : vector<1x32xf32> to vector<16x32xf32>
    %316 = arith.addf %314, %315 : vector<16x32xf32>
    %317 = tpu.concatenate %257, %275, %293, %311 in 1 : vector<16x16xf32>, vector<16x16xf32>, vector<16x16xf32>, vector<16x16xf32> -> vector<16x64xf32>
    %c0_157 = arith.constant 0 : index
    %c1_158 = arith.constant 1 : index
    %c0_159 = arith.constant 0 : index
    %c0_160 = arith.constant 0 : index
    %318 = vector.load %arg61[%c0_157, %c1_158, %c0_159, %c0_160] : memref<1x2x16x64xf32, #tpu.memory_space<vmem>>, vector<1x1x16x64xf32>
    %319 = vector.shape_cast %318 : vector<1x1x16x64xf32> to vector<16x64xf32>
    %320 = vector.shape_cast %317 : vector<16x64xf32> to vector<1x1x16x64xf32>
    tpu.vector_store %arg61[%c0_157, %c1_158, %c0_159, %c0_160], %320 {strides = array<i32>} : memref<1x2x16x64xf32, #tpu.memory_space<vmem>>, vector<1x1x16x64xf32>,
    %321 = arith.addf %224, %316 : vector<16x32xf32>
    %c1_161 = arith.constant 1 : index
    %c0_162 = arith.constant 0 : index
    %c0_163 = arith.constant 0 : index
    %322 = vector.load %arg26[%c1_161, %c0_162, %c0_163] : memref<2x1x32xf32, #tpu.memory_space<vmem>>, vector<1x1x32xf32>
    %323 = vector.shape_cast %322 : vector<1x1x32xf32> to vector<1x32xf32>
    %c1_164 = arith.constant 1 : index
    %c0_165 = arith.constant 0 : index
    %c0_166 = arith.constant 0 : index
    %324 = vector.load %arg27[%c1_164, %c0_165, %c0_166] : memref<2x1x32xf32, #tpu.memory_space<vmem>>, vector<1x1x32xf32>
    %325 = vector.shape_cast %324 : vector<1x1x32xf32> to vector<1x32xf32>
    %cst_167 = arith.constant dense<0.000000e+00> : vector<16xf32>
    %326 = vector.multi_reduction <add>, %321, %cst_167 [1] : vector<16x32xf32> to vector<16xf32>
    %327 = vector.shape_cast %326 : vector<16xf32> to vector<16x1xf32>
    %cst_168 = arith.constant 3.200000e+01 : f32
    %328 = vector.broadcast %cst_168 : f32 to vector<16x1xf32>
    %329 = arith.divf %327, %328 : vector<16x1xf32>
    %330 = vector.broadcast %329 : vector<16x1xf32> to vector<16x32xf32>
    %331 = arith.subf %321, %330 : vector<16x32xf32>
    %332 = arith.mulf %331, %331 : vector<16x32xf32>
    %cst_169 = arith.constant dense<0.000000e+00> : vector<16xf32>
    %333 = vector.multi_reduction <add>, %332, %cst_169 [1] : vector<16x32xf32> to vector<16xf32>
    %334 = vector.shape_cast %333 : vector<16xf32> to vector<16x1xf32>
    %cst_170 = arith.constant 3.200000e+01 : f32
    %335 = vector.broadcast %cst_170 : f32 to vector<16x1xf32>
    %336 = arith.divf %334, %335 : vector<16x1xf32>
    %cst_171 = arith.constant 9.99999974E-6 : f32
    %337 = vector.broadcast %cst_171 : f32 to vector<16x1xf32>
    %338 = arith.addf %336, %337 : vector<16x1xf32>
    %339 = math.rsqrt %338 : vector<16x1xf32>
    %340 = vector.broadcast %339 : vector<16x1xf32> to vector<16x32xf32>
    %341 = arith.mulf %331, %340 : vector<16x32xf32>
    %342 = vector.broadcast %323 : vector<1x32xf32> to vector<16x32xf32>
    %343 = arith.mulf %341, %342 : vector<16x32xf32>
    %344 = vector.broadcast %325 : vector<1x32xf32> to vector<16x32xf32>
    %345 = arith.addf %343, %344 : vector<16x32xf32>
    %c1_172 = arith.constant 1 : index
    %c0_173 = arith.constant 0 : index
    %c0_174 = arith.constant 0 : index
    %346 = vector.load %arg28[%c1_172, %c0_173, %c0_174] : memref<2x32x64xf32, #tpu.memory_space<vmem>>, vector<1x32x64xf32>
    %347 = vector.shape_cast %346 : vector<1x32x64xf32> to vector<32x64xf32>
    %cst_175 = arith.constant dense<0.000000e+00> : vector<16x64xf32>
    %348 = tpu.matmul %345, %347, %cst_175 {dimension_numbers = #tpu.dot_dimension_numbers<[1], [0], [0], [1], [0, 0, 1, 1], [], []>} : vector<16x32xf32>, vector<32x64xf32>, vector<16x64xf32> -> vector<16x64xf32>
    %c1_176 = arith.constant 1 : index
    %c0_177 = arith.constant 0 : index
    %c0_178 = arith.constant 0 : index
    %349 = vector.load %arg29[%c1_176, %c0_177, %c0_178] : memref<2x1x64xf32, #tpu.memory_space<vmem>>, vector<1x1x64xf32>
    %350 = vector.shape_cast %349 : vector<1x1x64xf32> to vector<1x64xf32>
    %351 = vector.broadcast %350 : vector<1x64xf32> to vector<16x64xf32>
    %352 = arith.addf %348, %351 : vector<16x64xf32>
    %353 = arith.mulf %352, %352 : vector<16x64xf32>
    %354 = arith.mulf %352, %353 : vector<16x64xf32>
    %cst_179 = arith.constant 4.471500e-02 : f32
    %355 = vector.broadcast %cst_179 : f32 to vector<16x64xf32>
    %356 = arith.mulf %355, %354 : vector<16x64xf32>
    %357 = arith.addf %352, %356 : vector<16x64xf32>
    %cst_180 = arith.constant 0.797884583 : f32
    %358 = vector.broadcast %cst_180 : f32 to vector<16x64xf32>
    %359 = arith.mulf %358, %357 : vector<16x64xf32>
    %360 = math.tanh %359 : vector<16x64xf32>
    %cst_181 = arith.constant 1.000000e+00 : f32
    %361 = vector.broadcast %cst_181 : f32 to vector<16x64xf32>
    %362 = arith.addf %361, %360 : vector<16x64xf32>
    %cst_182 = arith.constant 5.000000e-01 : f32
    %363 = vector.broadcast %cst_182 : f32 to vector<16x64xf32>
    %364 = arith.mulf %363, %362 : vector<16x64xf32>
    %365 = arith.mulf %352, %364 : vector<16x64xf32>
    %c1_183 = arith.constant 1 : index
    %c0_184 = arith.constant 0 : index
    %c0_185 = arith.constant 0 : index
    %366 = vector.load %arg30[%c1_183, %c0_184, %c0_185] : memref<2x64x32xf32, #tpu.memory_space<vmem>>, vector<1x64x32xf32>
    %367 = vector.shape_cast %366 : vector<1x64x32xf32> to vector<64x32xf32>
    %cst_186 = arith.constant dense<0.000000e+00> : vector<16x32xf32>
    %368 = tpu.matmul %365, %367, %cst_186 {dimension_numbers = #tpu.dot_dimension_numbers<[1], [0], [0], [1], [0, 0, 1, 1], [], []>} : vector<16x64xf32>, vector<64x32xf32>, vector<16x32xf32> -> vector<16x32xf32>
    %c1_187 = arith.constant 1 : index
    %c0_188 = arith.constant 0 : index
    %c0_189 = arith.constant 0 : index
    %369 = vector.load %arg31[%c1_187, %c0_188, %c0_189] : memref<2x1x32xf32, #tpu.memory_space<vmem>>, vector<1x1x32xf32>
    %370 = vector.shape_cast %369 : vector<1x1x32xf32> to vector<1x32xf32>
    %371 = vector.broadcast %370 : vector<1x32xf32> to vector<16x32xf32>
    %372 = arith.addf %368, %371 : vector<16x32xf32>
    %373 = arith.addf %345, %372 : vector<16x32xf32>
    %c1_190 = arith.constant 1 : index
    %c0_191 = arith.constant 0 : index
    %c0_192 = arith.constant 0 : index
    %374 = vector.load %arg32[%c1_190, %c0_191, %c0_192] : memref<2x1x32xf32, #tpu.memory_space<vmem>>, vector<1x1x32xf32>
    %375 = vector.shape_cast %374 : vector<1x1x32xf32> to vector<1x32xf32>
    %c1_193 = arith.constant 1 : index
    %c0_194 = arith.constant 0 : index
    %c0_195 = arith.constant 0 : index
    %376 = vector.load %arg33[%c1_193, %c0_194, %c0_195] : memref<2x1x32xf32, #tpu.memory_space<vmem>>, vector<1x1x32xf32>
    %377 = vector.shape_cast %376 : vector<1x1x32xf32> to vector<1x32xf32>
    %cst_196 = arith.constant dense<0.000000e+00> : vector<16xf32>
    %378 = vector.multi_reduction <add>, %373, %cst_196 [1] : vector<16x32xf32> to vector<16xf32>
    %379 = vector.shape_cast %378 : vector<16xf32> to vector<16x1xf32>
    %cst_197 = arith.constant 3.200000e+01 : f32
    %380 = vector.broadcast %cst_197 : f32 to vector<16x1xf32>
    %381 = arith.divf %379, %380 : vector<16x1xf32>
    %382 = vector.broadcast %381 : vector<16x1xf32> to vector<16x32xf32>
    %383 = arith.subf %373, %382 : vector<16x32xf32>
    %384 = arith.mulf %383, %383 : vector<16x32xf32>
    %cst_198 = arith.constant dense<0.000000e+00> : vector<16xf32>
    %385 = vector.multi_reduction <add>, %384, %cst_198 [1] : vector<16x32xf32> to vector<16xf32>
    %386 = vector.shape_cast %385 : vector<16xf32> to vector<16x1xf32>
    %cst_199 = arith.constant 3.200000e+01 : f32
    %387 = vector.broadcast %cst_199 : f32 to vector<16x1xf32>
    %388 = arith.divf %386, %387 : vector<16x1xf32>
    %cst_200 = arith.constant 9.99999974E-6 : f32
    %389 = vector.broadcast %cst_200 : f32 to vector<16x1xf32>
    %390 = arith.addf %388, %389 : vector<16x1xf32>
    %391 = math.rsqrt %390 : vector<16x1xf32>
    %392 = vector.broadcast %391 : vector<16x1xf32> to vector<16x32xf32>
    %393 = arith.mulf %383, %392 : vector<16x32xf32>
    %394 = vector.broadcast %375 : vector<1x32xf32> to vector<16x32xf32>
    %395 = arith.mulf %393, %394 : vector<16x32xf32>
    %396 = vector.broadcast %377 : vector<1x32xf32> to vector<16x32xf32>
    %397 = arith.addf %395, %396 : vector<16x32xf32>
    %c0_201 = arith.constant 0 : index
    %c0_202 = arith.constant 0 : index
    %398 = vector.load %arg34[%c0_201, %c0_202] : memref<1x32xf32, #tpu.memory_space<vmem>>, vector<1x32xf32>
    %c0_203 = arith.constant 0 : index
    %c0_204 = arith.constant 0 : index
    %399 = vector.load %arg35[%c0_203, %c0_204] : memref<1x32xf32, #tpu.memory_space<vmem>>, vector<1x32xf32>
    %cst_205 = arith.constant dense<0.000000e+00> : vector<16xf32>
    %400 = vector.multi_reduction <add>, %397, %cst_205 [1] : vector<16x32xf32> to vector<16xf32>
    %401 = vector.shape_cast %400 : vector<16xf32> to vector<16x1xf32>
    %cst_206 = arith.constant 3.200000e+01 : f32
    %402 = vector.broadcast %cst_206 : f32 to vector<16x1xf32>
    %403 = arith.divf %401, %402 : vector<16x1xf32>
    %404 = vector.broadcast %403 : vector<16x1xf32> to vector<16x32xf32>
    %405 = arith.subf %397, %404 : vector<16x32xf32>
    %406 = arith.mulf %405, %405 : vector<16x32xf32>
    %cst_207 = arith.constant dense<0.000000e+00> : vector<16xf32>
    %407 = vector.multi_reduction <add>, %406, %cst_207 [1] : vector<16x32xf32> to vector<16xf32>
    %408 = vector.shape_cast %407 : vector<16xf32> to vector<16x1xf32>
    %cst_208 = arith.constant 3.200000e+01 : f32
    %409 = vector.broadcast %cst_208 : f32 to vector<16x1xf32>
    %410 = arith.divf %408, %409 : vector<16x1xf32>
    %cst_209 = arith.constant 9.99999974E-6 : f32
    %411 = vector.broadcast %cst_209 : f32 to vector<16x1xf32>
    %412 = arith.addf %410, %411 : vector<16x1xf32>
    %413 = math.rsqrt %412 : vector<16x1xf32>
    %414 = vector.broadcast %413 : vector<16x1xf32> to vector<16x32xf32>
    %415 = arith.mulf %405, %414 : vector<16x32xf32>
    %416 = vector.broadcast %398 : vector<1x32xf32> to vector<16x32xf32>
    %417 = arith.mulf %415, %416 : vector<16x32xf32>
    %418 = vector.broadcast %399 : vector<1x32xf32> to vector<16x32xf32>
    %419 = arith.addf %417, %418 : vector<16x32xf32>
    %c0_210 = arith.constant 0 : index
    %c0_211 = arith.constant 0 : index
    %c0_212 = arith.constant 0 : index
    %420 = vector.load %arg6[%c0_210, %c0_211, %c0_212] : memref<1x16x12xf32, #tpu.memory_space<vmem>>, vector<1x16x12xf32>
    %421 = vector.shape_cast %420 : vector<1x16x12xf32> to vector<16x12xf32>
    %c0_213 = arith.constant 0 : index
    %c0_214 = arith.constant 0 : index
    %422 = vector.load %arg21[%c0_213, %c0_214] : memref<12x32xf32, #tpu.memory_space<vmem>>, vector<12x32xf32>
    %cst_215 = arith.constant dense<0.000000e+00> : vector<16x32xf32>
    %423 = tpu.matmul %421, %422, %cst_215 {dimension_numbers = #tpu.dot_dimension_numbers<[1], [0], [0], [1], [0, 0, 1, 1], [], []>} : vector<16x12xf32>, vector<12x32xf32>, vector<16x32xf32> -> vector<16x32xf32>
    %c0_216 = arith.constant 0 : index
    %c0_217 = arith.constant 0 : index
    %c0_218 = arith.constant 0 : index
    %424 = vector.load %arg7[%c0_216, %c0_217, %c0_218] : memref<1x16x32xf32, #tpu.memory_space<vmem>>, vector<1x16x32xf32>
    %425 = vector.shape_cast %424 : vector<1x16x32xf32> to vector<16x32xf32>
    %426 = arith.addf %423, %425 : vector<16x32xf32>
    %c0_219 = arith.constant 0 : index
    %c0_220 = arith.constant 0 : index
    %c0_221 = arith.constant 0 : index
    %427 = vector.load %arg36[%c0_219, %c0_220, %c0_221] : memref<1x32x96xf32, #tpu.memory_space<vmem>>, vector<1x32x96xf32>
    %428 = vector.shape_cast %427 : vector<1x32x96xf32> to vector<32x96xf32>
    %cst_222 = arith.constant dense<0.000000e+00> : vector<16x96xf32>
    %429 = tpu.matmul %426, %428, %cst_222 {dimension_numbers = #tpu.dot_dimension_numbers<[1], [0], [0], [1], [0, 0, 1, 1], [], []>} : vector<16x32xf32>, vector<32x96xf32>, vector<16x96xf32> -> vector<16x96xf32>
    %c0_223 = arith.constant 0 : index
    %c0_224 = arith.constant 0 : index
    %c0_225 = arith.constant 0 : index
    %430 = vector.load %arg37[%c0_223, %c0_224, %c0_225] : memref<1x1x96xf32, #tpu.memory_space<vmem>>, vector<1x1x96xf32>
    %431 = vector.shape_cast %430 : vector<1x1x96xf32> to vector<1x96xf32>
    %432 = vector.broadcast %431 : vector<1x96xf32> to vector<16x96xf32>
    %433 = arith.addf %429, %432 : vector<16x96xf32>
    %434 = vector.extract_strided_slice %433 {offsets = [0, 0], sizes = [16, 32], strides = [1, 1]} : vector<16x96xf32> to vector<16x32xf32>
    %435 = vector.extract_strided_slice %433 {offsets = [0, 32], sizes = [16, 32], strides = [1, 1]} : vector<16x96xf32> to vector<16x32xf32>
    %436 = vector.extract_strided_slice %433 {offsets = [0, 64], sizes = [16, 32], strides = [1, 1]} : vector<16x96xf32> to vector<16x32xf32>
    %c0_226 = arith.constant 0 : index
    %c0_227 = arith.constant 0 : index
    %c0_228 = arith.constant 0 : index
    %437 = vector.load %arg38[%c0_226, %c0_227, %c0_228] : memref<1x32x32xf32, #tpu.memory_space<vmem>>, vector<1x32x32xf32>
    %438 = vector.shape_cast %437 : vector<1x32x32xf32> to vector<32x32xf32>
    %c0_229 = arith.constant 0 : index
    %c0_230 = arith.constant 0 : index
    %c0_231 = arith.constant 0 : index
    %439 = vector.load %arg39[%c0_229, %c0_230, %c0_231] : memref<1x1x32xf32, #tpu.memory_space<vmem>>, vector<1x1x32xf32>
    %440 = vector.shape_cast %439 : vector<1x1x32xf32> to vector<1x32xf32>
    %441 = vector.broadcast %42 : vector<1x1xf32> to vector<16x32xf32>
    %442 = arith.mulf %434, %441 : vector<16x32xf32>
    %443 = tpu.iota {dimensions = array<i32: 0>} : vector<16x16xi32>
    %444 = tpu.iota {dimensions = array<i32: 1>} : vector<16x16xi32>
    %445 = vector.extract_strided_slice %442 {offsets = [0, 0], sizes = [16, 8], strides = [1, 1]} : vector<16x32xf32> to vector<16x8xf32>
    %446 = vector.extract_strided_slice %435 {offsets = [0, 0], sizes = [16, 8], strides = [1, 1]} : vector<16x32xf32> to vector<16x8xf32>
    %447 = vector.extract_strided_slice %436 {offsets = [0, 0], sizes = [16, 8], strides = [1, 1]} : vector<16x32xf32> to vector<16x8xf32>
    %448 = tpu.transpose %446, [1, 0] : vector<16x8xf32> -> vector<8x16xf32>
    %cst_232 = arith.constant dense<0.000000e+00> : vector<16x16xf32>
    %449 = tpu.matmul %445, %448, %cst_232 {dimension_numbers = #tpu.dot_dimension_numbers<[1], [0], [0], [1], [0, 0, 1, 1], [], []>} : vector<16x8xf32>, vector<8x16xf32>, vector<16x16xf32> -> vector<16x16xf32>
    %450 = arith.cmpi sgt, %444, %443 : vector<16x16xi32>
    %cst_233 = arith.constant -1.000000e+30 : f32
    %451 = vector.broadcast %cst_233 : f32 to vector<16x16xf32>
    %452 = arith.select %450, %451, %449 : vector<16x16xi1>, vector<16x16xf32>
    %cst_234 = arith.constant dense<0xFF800000> : vector<16xf32>
    %453 = vector.multi_reduction <maximumf>, %452, %cst_234 [1] : vector<16x16xf32> to vector<16xf32>
    %454 = vector.shape_cast %453 : vector<16xf32> to vector<16x1xf32>
    %455 = vector.broadcast %454 : vector<16x1xf32> to vector<16x16xf32>
    %456 = arith.subf %452, %455 : vector<16x16xf32>
    %457 = math.exp %456 : vector<16x16xf32>
    %cst_235 = arith.constant dense<0.000000e+00> : vector<16xf32>
    %458 = vector.multi_reduction <add>, %457, %cst_235 [1] : vector<16x16xf32> to vector<16xf32>
    %459 = vector.shape_cast %458 : vector<16xf32> to vector<16x1xf32>
    %460 = tpu.reciprocal %459 {approx = true} : vector<16x1xf32> -> vector<16x1xf32>
    %461 = vector.broadcast %460 : vector<16x1xf32> to vector<16x16xf32>
    %462 = arith.mulf %457, %461 : vector<16x16xf32>
    %cst_236 = arith.constant dense<0.000000e+00> : vector<16x8xf32>
    %463 = tpu.matmul %462, %447, %cst_236 {dimension_numbers = #tpu.dot_dimension_numbers<[1], [0], [0], [1], [0, 0, 1, 1], [], []>} : vector<16x16xf32>, vector<16x8xf32>, vector<16x8xf32> -> vector<16x8xf32>
    %464 = vector.extract_strided_slice %442 {offsets = [0, 8], sizes = [16, 8], strides = [1, 1]} : vector<16x32xf32> to vector<16x8xf32>
    %465 = vector.extract_strided_slice %435 {offsets = [0, 8], sizes = [16, 8], strides = [1, 1]} : vector<16x32xf32> to vector<16x8xf32>
    %466 = vector.extract_strided_slice %436 {offsets = [0, 8], sizes = [16, 8], strides = [1, 1]} : vector<16x32xf32> to vector<16x8xf32>
    %467 = tpu.transpose %465, [1, 0] : vector<16x8xf32> -> vector<8x16xf32>
    %cst_237 = arith.constant dense<0.000000e+00> : vector<16x16xf32>
    %468 = tpu.matmul %464, %467, %cst_237 {dimension_numbers = #tpu.dot_dimension_numbers<[1], [0], [0], [1], [0, 0, 1, 1], [], []>} : vector<16x8xf32>, vector<8x16xf32>, vector<16x16xf32> -> vector<16x16xf32>
    %469 = arith.cmpi sgt, %444, %443 : vector<16x16xi32>
    %cst_238 = arith.constant -1.000000e+30 : f32
    %470 = vector.broadcast %cst_238 : f32 to vector<16x16xf32>
    %471 = arith.select %469, %470, %468 : vector<16x16xi1>, vector<16x16xf32>
    %cst_239 = arith.constant dense<0xFF800000> : vector<16xf32>
    %472 = vector.multi_reduction <maximumf>, %471, %cst_239 [1] : vector<16x16xf32> to vector<16xf32>
    %473 = vector.shape_cast %472 : vector<16xf32> to vector<16x1xf32>
    %474 = vector.broadcast %473 : vector<16x1xf32> to vector<16x16xf32>
    %475 = arith.subf %471, %474 : vector<16x16xf32>
    %476 = math.exp %475 : vector<16x16xf32>
    %cst_240 = arith.constant dense<0.000000e+00> : vector<16xf32>
    %477 = vector.multi_reduction <add>, %476, %cst_240 [1] : vector<16x16xf32> to vector<16xf32>
    %478 = vector.shape_cast %477 : vector<16xf32> to vector<16x1xf32>
    %479 = tpu.reciprocal %478 {approx = true} : vector<16x1xf32> -> vector<16x1xf32>
    %480 = vector.broadcast %479 : vector<16x1xf32> to vector<16x16xf32>
    %481 = arith.mulf %476, %480 : vector<16x16xf32>
    %cst_241 = arith.constant dense<0.000000e+00> : vector<16x8xf32>
    %482 = tpu.matmul %481, %466, %cst_241 {dimension_numbers = #tpu.dot_dimension_numbers<[1], [0], [0], [1], [0, 0, 1, 1], [], []>} : vector<16x16xf32>, vector<16x8xf32>, vector<16x8xf32> -> vector<16x8xf32>
    %483 = vector.extract_strided_slice %442 {offsets = [0, 16], sizes = [16, 8], strides = [1, 1]} : vector<16x32xf32> to vector<16x8xf32>
    %484 = vector.extract_strided_slice %435 {offsets = [0, 16], sizes = [16, 8], strides = [1, 1]} : vector<16x32xf32> to vector<16x8xf32>
    %485 = vector.extract_strided_slice %436 {offsets = [0, 16], sizes = [16, 8], strides = [1, 1]} : vector<16x32xf32> to vector<16x8xf32>
    %486 = tpu.transpose %484, [1, 0] : vector<16x8xf32> -> vector<8x16xf32>
    %cst_242 = arith.constant dense<0.000000e+00> : vector<16x16xf32>
    %487 = tpu.matmul %483, %486, %cst_242 {dimension_numbers = #tpu.dot_dimension_numbers<[1], [0], [0], [1], [0, 0, 1, 1], [], []>} : vector<16x8xf32>, vector<8x16xf32>, vector<16x16xf32> -> vector<16x16xf32>
    %488 = arith.cmpi sgt, %444, %443 : vector<16x16xi32>
    %cst_243 = arith.constant -1.000000e+30 : f32
    %489 = vector.broadcast %cst_243 : f32 to vector<16x16xf32>
    %490 = arith.select %488, %489, %487 : vector<16x16xi1>, vector<16x16xf32>
    %cst_244 = arith.constant dense<0xFF800000> : vector<16xf32>
    %491 = vector.multi_reduction <maximumf>, %490, %cst_244 [1] : vector<16x16xf32> to vector<16xf32>
    %492 = vector.shape_cast %491 : vector<16xf32> to vector<16x1xf32>
    %493 = vector.broadcast %492 : vector<16x1xf32> to vector<16x16xf32>
    %494 = arith.subf %490, %493 : vector<16x16xf32>
    %495 = math.exp %494 : vector<16x16xf32>
    %cst_245 = arith.constant dense<0.000000e+00> : vector<16xf32>
    %496 = vector.multi_reduction <add>, %495, %cst_245 [1] : vector<16x16xf32> to vector<16xf32>
    %497 = vector.shape_cast %496 : vector<16xf32> to vector<16x1xf32>
    %498 = tpu.reciprocal %497 {approx = true} : vector<16x1xf32> -> vector<16x1xf32>
    %499 = vector.broadcast %498 : vector<16x1xf32> to vector<16x16xf32>
    %500 = arith.mulf %495, %499 : vector<16x16xf32>
    %cst_246 = arith.constant dense<0.000000e+00> : vector<16x8xf32>
    %501 = tpu.matmul %500, %485, %cst_246 {dimension_numbers = #tpu.dot_dimension_numbers<[1], [0], [0], [1], [0, 0, 1, 1], [], []>} : vector<16x16xf32>, vector<16x8xf32>, vector<16x8xf32> -> vector<16x8xf32>
    %502 = vector.extract_strided_slice %442 {offsets = [0, 24], sizes = [16, 8], strides = [1, 1]} : vector<16x32xf32> to vector<16x8xf32>
    %503 = vector.extract_strided_slice %435 {offsets = [0, 24], sizes = [16, 8], strides = [1, 1]} : vector<16x32xf32> to vector<16x8xf32>
    %504 = vector.extract_strided_slice %436 {offsets = [0, 24], sizes = [16, 8], strides = [1, 1]} : vector<16x32xf32> to vector<16x8xf32>
    %505 = tpu.transpose %503, [1, 0] : vector<16x8xf32> -> vector<8x16xf32>
    %cst_247 = arith.constant dense<0.000000e+00> : vector<16x16xf32>
    %506 = tpu.matmul %502, %505, %cst_247 {dimension_numbers = #tpu.dot_dimension_numbers<[1], [0], [0], [1], [0, 0, 1, 1], [], []>} : vector<16x8xf32>, vector<8x16xf32>, vector<16x16xf32> -> vector<16x16xf32>
    %507 = arith.cmpi sgt, %444, %443 : vector<16x16xi32>
    %cst_248 = arith.constant -1.000000e+30 : f32
    %508 = vector.broadcast %cst_248 : f32 to vector<16x16xf32>
    %509 = arith.select %507, %508, %506 : vector<16x16xi1>, vector<16x16xf32>
    %cst_249 = arith.constant dense<0xFF800000> : vector<16xf32>
    %510 = vector.multi_reduction <maximumf>, %509, %cst_249 [1] : vector<16x16xf32> to vector<16xf32>
    %511 = vector.shape_cast %510 : vector<16xf32> to vector<16x1xf32>
    %512 = vector.broadcast %511 : vector<16x1xf32> to vector<16x16xf32>
    %513 = arith.subf %509, %512 : vector<16x16xf32>
    %514 = math.exp %513 : vector<16x16xf32>
    %cst_250 = arith.constant dense<0.000000e+00> : vector<16xf32>
    %515 = vector.multi_reduction <add>, %514, %cst_250 [1] : vector<16x16xf32> to vector<16xf32>
    %516 = vector.shape_cast %515 : vector<16xf32> to vector<16x1xf32>
    %517 = tpu.reciprocal %516 {approx = true} : vector<16x1xf32> -> vector<16x1xf32>
    %518 = vector.broadcast %517 : vector<16x1xf32> to vector<16x16xf32>
    %519 = arith.mulf %514, %518 : vector<16x16xf32>
    %cst_251 = arith.constant dense<0.000000e+00> : vector<16x8xf32>
    %520 = tpu.matmul %519, %504, %cst_251 {dimension_numbers = #tpu.dot_dimension_numbers<[1], [0], [0], [1], [0, 0, 1, 1], [], []>} : vector<16x16xf32>, vector<16x8xf32>, vector<16x8xf32> -> vector<16x8xf32>
    %521 = tpu.concatenate %463, %482, %501, %520 in 1 : vector<16x8xf32>, vector<16x8xf32>, vector<16x8xf32>, vector<16x8xf32> -> vector<16x32xf32>
    %cst_252 = arith.constant dense<0.000000e+00> : vector<16x32xf32>
    %522 = tpu.matmul %521, %438, %cst_252 {dimension_numbers = #tpu.dot_dimension_numbers<[1], [0], [0], [1], [0, 0, 1, 1], [], []>} : vector<16x32xf32>, vector<32x32xf32>, vector<16x32xf32> -> vector<16x32xf32>
    %523 = vector.broadcast %440 : vector<1x32xf32> to vector<16x32xf32>
    %524 = arith.addf %522, %523 : vector<16x32xf32>
    %525 = arith.addf %426, %524 : vector<16x32xf32>
    %c0_253 = arith.constant 0 : index
    %c0_254 = arith.constant 0 : index
    %c0_255 = arith.constant 0 : index
    %526 = vector.load %arg40[%c0_253, %c0_254, %c0_255] : memref<1x1x32xf32, #tpu.memory_space<vmem>>, vector<1x1x32xf32>
    %527 = vector.shape_cast %526 : vector<1x1x32xf32> to vector<1x32xf32>
    %c0_256 = arith.constant 0 : index
    %c0_257 = arith.constant 0 : index
    %c0_258 = arith.constant 0 : index
    %528 = vector.load %arg41[%c0_256, %c0_257, %c0_258] : memref<1x1x32xf32, #tpu.memory_space<vmem>>, vector<1x1x32xf32>
    %529 = vector.shape_cast %528 : vector<1x1x32xf32> to vector<1x32xf32>
    %cst_259 = arith.constant dense<0.000000e+00> : vector<16xf32>
    %530 = vector.multi_reduction <add>, %525, %cst_259 [1] : vector<16x32xf32> to vector<16xf32>
    %531 = vector.shape_cast %530 : vector<16xf32> to vector<16x1xf32>
    %cst_260 = arith.constant 3.200000e+01 : f32
    %532 = vector.broadcast %cst_260 : f32 to vector<16x1xf32>
    %533 = arith.divf %531, %532 : vector<16x1xf32>
    %534 = vector.broadcast %533 : vector<16x1xf32> to vector<16x32xf32>
    %535 = arith.subf %525, %534 : vector<16x32xf32>
    %536 = arith.mulf %535, %535 : vector<16x32xf32>
    %cst_261 = arith.constant dense<0.000000e+00> : vector<16xf32>
    %537 = vector.multi_reduction <add>, %536, %cst_261 [1] : vector<16x32xf32> to vector<16xf32>
    %538 = vector.shape_cast %537 : vector<16xf32> to vector<16x1xf32>
    %cst_262 = arith.constant 3.200000e+01 : f32
    %539 = vector.broadcast %cst_262 : f32 to vector<16x1xf32>
    %540 = arith.divf %538, %539 : vector<16x1xf32>
    %cst_263 = arith.constant 9.99999974E-6 : f32
    %541 = vector.broadcast %cst_263 : f32 to vector<16x1xf32>
    %542 = arith.addf %540, %541 : vector<16x1xf32>
    %543 = math.rsqrt %542 : vector<16x1xf32>
    %544 = vector.broadcast %543 : vector<16x1xf32> to vector<16x32xf32>
    %545 = arith.mulf %535, %544 : vector<16x32xf32>
    %546 = vector.broadcast %527 : vector<1x32xf32> to vector<16x32xf32>
    %547 = arith.mulf %545, %546 : vector<16x32xf32>
    %548 = vector.broadcast %529 : vector<1x32xf32> to vector<16x32xf32>
    %549 = arith.addf %547, %548 : vector<16x32xf32>
    %c0_264 = arith.constant 0 : index
    %c0_265 = arith.constant 0 : index
    %c0_266 = arith.constant 0 : index
    %550 = vector.load %arg42[%c0_264, %c0_265, %c0_266] : memref<1x32x32xf32, #tpu.memory_space<vmem>>, vector<1x32x32xf32>
    %551 = vector.shape_cast %550 : vector<1x32x32xf32> to vector<32x32xf32>
    %cst_267 = arith.constant dense<0.000000e+00> : vector<16x32xf32>
    %552 = tpu.matmul %549, %551, %cst_267 {dimension_numbers = #tpu.dot_dimension_numbers<[1], [0], [0], [1], [0, 0, 1, 1], [], []>} : vector<16x32xf32>, vector<32x32xf32>, vector<16x32xf32> -> vector<16x32xf32>
    %c0_268 = arith.constant 0 : index
    %c0_269 = arith.constant 0 : index
    %c0_270 = arith.constant 0 : index
    %553 = vector.load %arg43[%c0_268, %c0_269, %c0_270] : memref<1x1x32xf32, #tpu.memory_space<vmem>>, vector<1x1x32xf32>
    %554 = vector.shape_cast %553 : vector<1x1x32xf32> to vector<1x32xf32>
    %555 = vector.broadcast %554 : vector<1x32xf32> to vector<16x32xf32>
    %556 = arith.addf %552, %555 : vector<16x32xf32>
    %c0_271 = arith.constant 0 : index
    %c0_272 = arith.constant 0 : index
    %c0_273 = arith.constant 0 : index
    %557 = vector.load %arg44[%c0_271, %c0_272, %c0_273] : memref<1x32x64xf32, #tpu.memory_space<vmem>>, vector<1x32x64xf32>
    %558 = vector.shape_cast %557 : vector<1x32x64xf32> to vector<32x64xf32>
    %cst_274 = arith.constant dense<0.000000e+00> : vector<16x64xf32>
    %559 = tpu.matmul %419, %558, %cst_274 {dimension_numbers = #tpu.dot_dimension_numbers<[1], [0], [0], [1], [0, 0, 1, 1], [], []>} : vector<16x32xf32>, vector<32x64xf32>, vector<16x64xf32> -> vector<16x64xf32>
    %c0_275 = arith.constant 0 : index
    %c0_276 = arith.constant 0 : index
    %c0_277 = arith.constant 0 : index
    %560 = vector.load %arg45[%c0_275, %c0_276, %c0_277] : memref<1x1x64xf32, #tpu.memory_space<vmem>>, vector<1x1x64xf32>
    %561 = vector.shape_cast %560 : vector<1x1x64xf32> to vector<1x64xf32>
    %562 = vector.broadcast %561 : vector<1x64xf32> to vector<16x64xf32>
    %563 = arith.addf %559, %562 : vector<16x64xf32>
    %564 = vector.extract_strided_slice %563 {offsets = [0, 0], sizes = [16, 32], strides = [1, 1]} : vector<16x64xf32> to vector<16x32xf32>
    %565 = vector.extract_strided_slice %563 {offsets = [0, 32], sizes = [16, 32], strides = [1, 1]} : vector<16x64xf32> to vector<16x32xf32>
    %c0_278 = arith.constant 0 : index
    %c0_279 = arith.constant 0 : index
    %c0_280 = arith.constant 0 : index
    %566 = vector.load %arg46[%c0_278, %c0_279, %c0_280] : memref<1x32x32xf32, #tpu.memory_space<vmem>>, vector<1x32x32xf32>
    %567 = vector.shape_cast %566 : vector<1x32x32xf32> to vector<32x32xf32>
    %c0_281 = arith.constant 0 : index
    %c0_282 = arith.constant 0 : index
    %c0_283 = arith.constant 0 : index
    %568 = vector.load %arg47[%c0_281, %c0_282, %c0_283] : memref<1x1x32xf32, #tpu.memory_space<vmem>>, vector<1x1x32xf32>
    %569 = vector.shape_cast %568 : vector<1x1x32xf32> to vector<1x32xf32>
    %570 = vector.broadcast %42 : vector<1x1xf32> to vector<16x32xf32>
    %571 = arith.mulf %556, %570 : vector<16x32xf32>
    %572 = vector.extract_strided_slice %571 {offsets = [0, 0], sizes = [16, 8], strides = [1, 1]} : vector<16x32xf32> to vector<16x8xf32>
    %573 = vector.extract_strided_slice %564 {offsets = [0, 0], sizes = [16, 8], strides = [1, 1]} : vector<16x32xf32> to vector<16x8xf32>
    %574 = vector.extract_strided_slice %565 {offsets = [0, 0], sizes = [16, 8], strides = [1, 1]} : vector<16x32xf32> to vector<16x8xf32>
    %575 = tpu.transpose %573, [1, 0] : vector<16x8xf32> -> vector<8x16xf32>
    %cst_284 = arith.constant dense<0.000000e+00> : vector<16x16xf32>
    %576 = tpu.matmul %572, %575, %cst_284 {dimension_numbers = #tpu.dot_dimension_numbers<[1], [0], [0], [1], [0, 0, 1, 1], [], []>} : vector<16x8xf32>, vector<8x16xf32>, vector<16x16xf32> -> vector<16x16xf32>
    %577 = vector.broadcast %44 : vector<1x16xf32> to vector<16x16xf32>
    %578 = arith.addf %576, %577 : vector<16x16xf32>
    %cst_285 = arith.constant dense<0xFF800000> : vector<16xf32>
    %579 = vector.multi_reduction <maximumf>, %578, %cst_285 [1] : vector<16x16xf32> to vector<16xf32>
    %580 = vector.shape_cast %579 : vector<16xf32> to vector<16x1xf32>
    %581 = vector.broadcast %580 : vector<16x1xf32> to vector<16x16xf32>
    %582 = arith.subf %578, %581 : vector<16x16xf32>
    %583 = math.exp %582 : vector<16x16xf32>
    %cst_286 = arith.constant dense<0.000000e+00> : vector<16xf32>
    %584 = vector.multi_reduction <add>, %583, %cst_286 [1] : vector<16x16xf32> to vector<16xf32>
    %585 = vector.shape_cast %584 : vector<16xf32> to vector<16x1xf32>
    %586 = tpu.reciprocal %585 {approx = true} : vector<16x1xf32> -> vector<16x1xf32>
    %587 = vector.broadcast %586 : vector<16x1xf32> to vector<16x16xf32>
    %588 = arith.mulf %583, %587 : vector<16x16xf32>
    %cst_287 = arith.constant dense<0.000000e+00> : vector<16x8xf32>
    %589 = tpu.matmul %588, %574, %cst_287 {dimension_numbers = #tpu.dot_dimension_numbers<[1], [0], [0], [1], [0, 0, 1, 1], [], []>} : vector<16x16xf32>, vector<16x8xf32>, vector<16x8xf32> -> vector<16x8xf32>
    %590 = vector.extract_strided_slice %571 {offsets = [0, 8], sizes = [16, 8], strides = [1, 1]} : vector<16x32xf32> to vector<16x8xf32>
    %591 = vector.extract_strided_slice %564 {offsets = [0, 8], sizes = [16, 8], strides = [1, 1]} : vector<16x32xf32> to vector<16x8xf32>
    %592 = vector.extract_strided_slice %565 {offsets = [0, 8], sizes = [16, 8], strides = [1, 1]} : vector<16x32xf32> to vector<16x8xf32>
    %593 = tpu.transpose %591, [1, 0] : vector<16x8xf32> -> vector<8x16xf32>
    %cst_288 = arith.constant dense<0.000000e+00> : vector<16x16xf32>
    %594 = tpu.matmul %590, %593, %cst_288 {dimension_numbers = #tpu.dot_dimension_numbers<[1], [0], [0], [1], [0, 0, 1, 1], [], []>} : vector<16x8xf32>, vector<8x16xf32>, vector<16x16xf32> -> vector<16x16xf32>
    %595 = vector.broadcast %44 : vector<1x16xf32> to vector<16x16xf32>
    %596 = arith.addf %594, %595 : vector<16x16xf32>
    %cst_289 = arith.constant dense<0xFF800000> : vector<16xf32>
    %597 = vector.multi_reduction <maximumf>, %596, %cst_289 [1] : vector<16x16xf32> to vector<16xf32>
    %598 = vector.shape_cast %597 : vector<16xf32> to vector<16x1xf32>
    %599 = vector.broadcast %598 : vector<16x1xf32> to vector<16x16xf32>
    %600 = arith.subf %596, %599 : vector<16x16xf32>
    %601 = math.exp %600 : vector<16x16xf32>
    %cst_290 = arith.constant dense<0.000000e+00> : vector<16xf32>
    %602 = vector.multi_reduction <add>, %601, %cst_290 [1] : vector<16x16xf32> to vector<16xf32>
    %603 = vector.shape_cast %602 : vector<16xf32> to vector<16x1xf32>
    %604 = tpu.reciprocal %603 {approx = true} : vector<16x1xf32> -> vector<16x1xf32>
    %605 = vector.broadcast %604 : vector<16x1xf32> to vector<16x16xf32>
    %606 = arith.mulf %601, %605 : vector<16x16xf32>
    %cst_291 = arith.constant dense<0.000000e+00> : vector<16x8xf32>
    %607 = tpu.matmul %606, %592, %cst_291 {dimension_numbers = #tpu.dot_dimension_numbers<[1], [0], [0], [1], [0, 0, 1, 1], [], []>} : vector<16x16xf32>, vector<16x8xf32>, vector<16x8xf32> -> vector<16x8xf32>
    %608 = vector.extract_strided_slice %571 {offsets = [0, 16], sizes = [16, 8], strides = [1, 1]} : vector<16x32xf32> to vector<16x8xf32>
    %609 = vector.extract_strided_slice %564 {offsets = [0, 16], sizes = [16, 8], strides = [1, 1]} : vector<16x32xf32> to vector<16x8xf32>
    %610 = vector.extract_strided_slice %565 {offsets = [0, 16], sizes = [16, 8], strides = [1, 1]} : vector<16x32xf32> to vector<16x8xf32>
    %611 = tpu.transpose %609, [1, 0] : vector<16x8xf32> -> vector<8x16xf32>
    %cst_292 = arith.constant dense<0.000000e+00> : vector<16x16xf32>
    %612 = tpu.matmul %608, %611, %cst_292 {dimension_numbers = #tpu.dot_dimension_numbers<[1], [0], [0], [1], [0, 0, 1, 1], [], []>} : vector<16x8xf32>, vector<8x16xf32>, vector<16x16xf32> -> vector<16x16xf32>
    %613 = vector.broadcast %44 : vector<1x16xf32> to vector<16x16xf32>
    %614 = arith.addf %612, %613 : vector<16x16xf32>
    %cst_293 = arith.constant dense<0xFF800000> : vector<16xf32>
    %615 = vector.multi_reduction <maximumf>, %614, %cst_293 [1] : vector<16x16xf32> to vector<16xf32>
    %616 = vector.shape_cast %615 : vector<16xf32> to vector<16x1xf32>
    %617 = vector.broadcast %616 : vector<16x1xf32> to vector<16x16xf32>
    %618 = arith.subf %614, %617 : vector<16x16xf32>
    %619 = math.exp %618 : vector<16x16xf32>
    %cst_294 = arith.constant dense<0.000000e+00> : vector<16xf32>
    %620 = vector.multi_reduction <add>, %619, %cst_294 [1] : vector<16x16xf32> to vector<16xf32>
    %621 = vector.shape_cast %620 : vector<16xf32> to vector<16x1xf32>
    %622 = tpu.reciprocal %621 {approx = true} : vector<16x1xf32> -> vector<16x1xf32>
    %623 = vector.broadcast %622 : vector<16x1xf32> to vector<16x16xf32>
    %624 = arith.mulf %619, %623 : vector<16x16xf32>
    %cst_295 = arith.constant dense<0.000000e+00> : vector<16x8xf32>
    %625 = tpu.matmul %624, %610, %cst_295 {dimension_numbers = #tpu.dot_dimension_numbers<[1], [0], [0], [1], [0, 0, 1, 1], [], []>} : vector<16x16xf32>, vector<16x8xf32>, vector<16x8xf32> -> vector<16x8xf32>
    %626 = vector.extract_strided_slice %571 {offsets = [0, 24], sizes = [16, 8], strides = [1, 1]} : vector<16x32xf32> to vector<16x8xf32>
    %627 = vector.extract_strided_slice %564 {offsets = [0, 24], sizes = [16, 8], strides = [1, 1]} : vector<16x32xf32> to vector<16x8xf32>
    %628 = vector.extract_strided_slice %565 {offsets = [0, 24], sizes = [16, 8], strides = [1, 1]} : vector<16x32xf32> to vector<16x8xf32>
    %629 = tpu.transpose %627, [1, 0] : vector<16x8xf32> -> vector<8x16xf32>
    %cst_296 = arith.constant dense<0.000000e+00> : vector<16x16xf32>
    %630 = tpu.matmul %626, %629, %cst_296 {dimension_numbers = #tpu.dot_dimension_numbers<[1], [0], [0], [1], [0, 0, 1, 1], [], []>} : vector<16x8xf32>, vector<8x16xf32>, vector<16x16xf32> -> vector<16x16xf32>
    %631 = vector.broadcast %44 : vector<1x16xf32> to vector<16x16xf32>
    %632 = arith.addf %630, %631 : vector<16x16xf32>
    %cst_297 = arith.constant dense<0xFF800000> : vector<16xf32>
    %633 = vector.multi_reduction <maximumf>, %632, %cst_297 [1] : vector<16x16xf32> to vector<16xf32>
    %634 = vector.shape_cast %633 : vector<16xf32> to vector<16x1xf32>
    %635 = vector.broadcast %634 : vector<16x1xf32> to vector<16x16xf32>
    %636 = arith.subf %632, %635 : vector<16x16xf32>
    %637 = math.exp %636 : vector<16x16xf32>
    %cst_298 = arith.constant dense<0.000000e+00> : vector<16xf32>
    %638 = vector.multi_reduction <add>, %637, %cst_298 [1] : vector<16x16xf32> to vector<16xf32>
    %639 = vector.shape_cast %638 : vector<16xf32> to vector<16x1xf32>
    %640 = tpu.reciprocal %639 {approx = true} : vector<16x1xf32> -> vector<16x1xf32>
    %641 = vector.broadcast %640 : vector<16x1xf32> to vector<16x16xf32>
    %642 = arith.mulf %637, %641 : vector<16x16xf32>
    %cst_299 = arith.constant dense<0.000000e+00> : vector<16x8xf32>
    %643 = tpu.matmul %642, %628, %cst_299 {dimension_numbers = #tpu.dot_dimension_numbers<[1], [0], [0], [1], [0, 0, 1, 1], [], []>} : vector<16x16xf32>, vector<16x8xf32>, vector<16x8xf32> -> vector<16x8xf32>
    %644 = tpu.concatenate %589, %607, %625, %643 in 1 : vector<16x8xf32>, vector<16x8xf32>, vector<16x8xf32>, vector<16x8xf32> -> vector<16x32xf32>
    %cst_300 = arith.constant dense<0.000000e+00> : vector<16x32xf32>
    %645 = tpu.matmul %644, %567, %cst_300 {dimension_numbers = #tpu.dot_dimension_numbers<[1], [0], [0], [1], [0, 0, 1, 1], [], []>} : vector<16x32xf32>, vector<32x32xf32>, vector<16x32xf32> -> vector<16x32xf32>
    %646 = vector.broadcast %569 : vector<1x32xf32> to vector<16x32xf32>
    %647 = arith.addf %645, %646 : vector<16x32xf32>
    %648 = arith.addf %549, %647 : vector<16x32xf32>
    %c0_301 = arith.constant 0 : index
    %c0_302 = arith.constant 0 : index
    %c0_303 = arith.constant 0 : index
    %649 = vector.load %arg48[%c0_301, %c0_302, %c0_303] : memref<1x1x32xf32, #tpu.memory_space<vmem>>, vector<1x1x32xf32>
    %650 = vector.shape_cast %649 : vector<1x1x32xf32> to vector<1x32xf32>
    %c0_304 = arith.constant 0 : index
    %c0_305 = arith.constant 0 : index
    %c0_306 = arith.constant 0 : index
    %651 = vector.load %arg49[%c0_304, %c0_305, %c0_306] : memref<1x1x32xf32, #tpu.memory_space<vmem>>, vector<1x1x32xf32>
    %652 = vector.shape_cast %651 : vector<1x1x32xf32> to vector<1x32xf32>
    %cst_307 = arith.constant dense<0.000000e+00> : vector<16xf32>
    %653 = vector.multi_reduction <add>, %648, %cst_307 [1] : vector<16x32xf32> to vector<16xf32>
    %654 = vector.shape_cast %653 : vector<16xf32> to vector<16x1xf32>
    %cst_308 = arith.constant 3.200000e+01 : f32
    %655 = vector.broadcast %cst_308 : f32 to vector<16x1xf32>
    %656 = arith.divf %654, %655 : vector<16x1xf32>
    %657 = vector.broadcast %656 : vector<16x1xf32> to vector<16x32xf32>
    %658 = arith.subf %648, %657 : vector<16x32xf32>
    %659 = arith.mulf %658, %658 : vector<16x32xf32>
    %cst_309 = arith.constant dense<0.000000e+00> : vector<16xf32>
    %660 = vector.multi_reduction <add>, %659, %cst_309 [1] : vector<16x32xf32> to vector<16xf32>
    %661 = vector.shape_cast %660 : vector<16xf32> to vector<16x1xf32>
    %cst_310 = arith.constant 3.200000e+01 : f32
    %662 = vector.broadcast %cst_310 : f32 to vector<16x1xf32>
    %663 = arith.divf %661, %662 : vector<16x1xf32>
    %cst_311 = arith.constant 9.99999974E-6 : f32
    %664 = vector.broadcast %cst_311 : f32 to vector<16x1xf32>
    %665 = arith.addf %663, %664 : vector<16x1xf32>
    %666 = math.rsqrt %665 : vector<16x1xf32>
    %667 = vector.broadcast %666 : vector<16x1xf32> to vector<16x32xf32>
    %668 = arith.mulf %658, %667 : vector<16x32xf32>
    %669 = vector.broadcast %650 : vector<1x32xf32> to vector<16x32xf32>
    %670 = arith.mulf %668, %669 : vector<16x32xf32>
    %671 = vector.broadcast %652 : vector<1x32xf32> to vector<16x32xf32>
    %672 = arith.addf %670, %671 : vector<16x32xf32>
    %c0_312 = arith.constant 0 : index
    %c0_313 = arith.constant 0 : index
    %c0_314 = arith.constant 0 : index
    %673 = vector.load %arg50[%c0_312, %c0_313, %c0_314] : memref<1x32x64xf32, #tpu.memory_space<vmem>>, vector<1x32x64xf32>
    %674 = vector.shape_cast %673 : vector<1x32x64xf32> to vector<32x64xf32>
    %cst_315 = arith.constant dense<0.000000e+00> : vector<16x64xf32>
    %675 = tpu.matmul %672, %674, %cst_315 {dimension_numbers = #tpu.dot_dimension_numbers<[1], [0], [0], [1], [0, 0, 1, 1], [], []>} : vector<16x32xf32>, vector<32x64xf32>, vector<16x64xf32> -> vector<16x64xf32>
    %c0_316 = arith.constant 0 : index
    %c0_317 = arith.constant 0 : index
    %c0_318 = arith.constant 0 : index
    %676 = vector.load %arg51[%c0_316, %c0_317, %c0_318] : memref<1x1x64xf32, #tpu.memory_space<vmem>>, vector<1x1x64xf32>
    %677 = vector.shape_cast %676 : vector<1x1x64xf32> to vector<1x64xf32>
    %678 = vector.broadcast %677 : vector<1x64xf32> to vector<16x64xf32>
    %679 = arith.addf %675, %678 : vector<16x64xf32>
    %680 = arith.mulf %679, %679 : vector<16x64xf32>
    %681 = arith.mulf %679, %680 : vector<16x64xf32>
    %cst_319 = arith.constant 4.471500e-02 : f32
    %682 = vector.broadcast %cst_319 : f32 to vector<16x64xf32>
    %683 = arith.mulf %682, %681 : vector<16x64xf32>
    %684 = arith.addf %679, %683 : vector<16x64xf32>
    %cst_320 = arith.constant 0.797884583 : f32
    %685 = vector.broadcast %cst_320 : f32 to vector<16x64xf32>
    %686 = arith.mulf %685, %684 : vector<16x64xf32>
    %687 = math.tanh %686 : vector<16x64xf32>
    %cst_321 = arith.constant 1.000000e+00 : f32
    %688 = vector.broadcast %cst_321 : f32 to vector<16x64xf32>
    %689 = arith.addf %688, %687 : vector<16x64xf32>
    %cst_322 = arith.constant 5.000000e-01 : f32
    %690 = vector.broadcast %cst_322 : f32 to vector<16x64xf32>
    %691 = arith.mulf %690, %689 : vector<16x64xf32>
    %692 = arith.mulf %679, %691 : vector<16x64xf32>
    %c0_323 = arith.constant 0 : index
    %c0_324 = arith.constant 0 : index
    %c0_325 = arith.constant 0 : index
    %693 = vector.load %arg52[%c0_323, %c0_324, %c0_325] : memref<1x64x32xf32, #tpu.memory_space<vmem>>, vector<1x64x32xf32>
    %694 = vector.shape_cast %693 : vector<1x64x32xf32> to vector<64x32xf32>
    %cst_326 = arith.constant dense<0.000000e+00> : vector<16x32xf32>
    %695 = tpu.matmul %692, %694, %cst_326 {dimension_numbers = #tpu.dot_dimension_numbers<[1], [0], [0], [1], [0, 0, 1, 1], [], []>} : vector<16x64xf32>, vector<64x32xf32>, vector<16x32xf32> -> vector<16x32xf32>
    %c0_327 = arith.constant 0 : index
    %c0_328 = arith.constant 0 : index
    %c0_329 = arith.constant 0 : index
    %696 = vector.load %arg53[%c0_327, %c0_328, %c0_329] : memref<1x1x32xf32, #tpu.memory_space<vmem>>, vector<1x1x32xf32>
    %697 = vector.shape_cast %696 : vector<1x1x32xf32> to vector<1x32xf32>
    %698 = vector.broadcast %697 : vector<1x32xf32> to vector<16x32xf32>
    %699 = arith.addf %695, %698 : vector<16x32xf32>
    %700 = arith.addf %672, %699 : vector<16x32xf32>
    %c0_330 = arith.constant 0 : index
    %c0_331 = arith.constant 0 : index
    %c0_332 = arith.constant 0 : index
    %701 = vector.load %arg54[%c0_330, %c0_331, %c0_332] : memref<1x1x32xf32, #tpu.memory_space<vmem>>, vector<1x1x32xf32>
    %702 = vector.shape_cast %701 : vector<1x1x32xf32> to vector<1x32xf32>
    %c0_333 = arith.constant 0 : index
    %c0_334 = arith.constant 0 : index
    %c0_335 = arith.constant 0 : index
    %703 = vector.load %arg55[%c0_333, %c0_334, %c0_335] : memref<1x1x32xf32, #tpu.memory_space<vmem>>, vector<1x1x32xf32>
    %704 = vector.shape_cast %703 : vector<1x1x32xf32> to vector<1x32xf32>
    %cst_336 = arith.constant dense<0.000000e+00> : vector<16xf32>
    %705 = vector.multi_reduction <add>, %700, %cst_336 [1] : vector<16x32xf32> to vector<16xf32>
    %706 = vector.shape_cast %705 : vector<16xf32> to vector<16x1xf32>
    %cst_337 = arith.constant 3.200000e+01 : f32
    %707 = vector.broadcast %cst_337 : f32 to vector<16x1xf32>
    %708 = arith.divf %706, %707 : vector<16x1xf32>
    %709 = vector.broadcast %708 : vector<16x1xf32> to vector<16x32xf32>
    %710 = arith.subf %700, %709 : vector<16x32xf32>
    %711 = arith.mulf %710, %710 : vector<16x32xf32>
    %cst_338 = arith.constant dense<0.000000e+00> : vector<16xf32>
    %712 = vector.multi_reduction <add>, %711, %cst_338 [1] : vector<16x32xf32> to vector<16xf32>
    %713 = vector.shape_cast %712 : vector<16xf32> to vector<16x1xf32>
    %cst_339 = arith.constant 3.200000e+01 : f32
    %714 = vector.broadcast %cst_339 : f32 to vector<16x1xf32>
    %715 = arith.divf %713, %714 : vector<16x1xf32>
    %cst_340 = arith.constant 9.99999974E-6 : f32
    %716 = vector.broadcast %cst_340 : f32 to vector<16x1xf32>
    %717 = arith.addf %715, %716 : vector<16x1xf32>
    %718 = math.rsqrt %717 : vector<16x1xf32>
    %719 = vector.broadcast %718 : vector<16x1xf32> to vector<16x32xf32>
    %720 = arith.mulf %710, %719 : vector<16x32xf32>
    %721 = vector.broadcast %702 : vector<1x32xf32> to vector<16x32xf32>
    %722 = arith.mulf %720, %721 : vector<16x32xf32>
    %723 = vector.broadcast %704 : vector<1x32xf32> to vector<16x32xf32>
    %724 = arith.addf %722, %723 : vector<16x32xf32>
    %c0_341 = arith.constant 0 : index
    %c0_342 = arith.constant 0 : index
    %725 = vector.load %arg56[%c0_341, %c0_342] : memref<1x32xf32, #tpu.memory_space<vmem>>, vector<1x32xf32>
    %c0_343 = arith.constant 0 : index
    %c0_344 = arith.constant 0 : index
    %726 = vector.load %arg57[%c0_343, %c0_344] : memref<1x32xf32, #tpu.memory_space<vmem>>, vector<1x32xf32>
    %cst_345 = arith.constant dense<0.000000e+00> : vector<16xf32>
    %727 = vector.multi_reduction <add>, %724, %cst_345 [1] : vector<16x32xf32> to vector<16xf32>
    %728 = vector.shape_cast %727 : vector<16xf32> to vector<16x1xf32>
    %cst_346 = arith.constant 3.200000e+01 : f32
    %729 = vector.broadcast %cst_346 : f32 to vector<16x1xf32>
    %730 = arith.divf %728, %729 : vector<16x1xf32>
    %731 = vector.broadcast %730 : vector<16x1xf32> to vector<16x32xf32>
    %732 = arith.subf %724, %731 : vector<16x32xf32>
    %733 = arith.mulf %732, %732 : vector<16x32xf32>
    %cst_347 = arith.constant dense<0.000000e+00> : vector<16xf32>
    %734 = vector.multi_reduction <add>, %733, %cst_347 [1] : vector<16x32xf32> to vector<16xf32>
    %735 = vector.shape_cast %734 : vector<16xf32> to vector<16x1xf32>
    %cst_348 = arith.constant 3.200000e+01 : f32
    %736 = vector.broadcast %cst_348 : f32 to vector<16x1xf32>
    %737 = arith.divf %735, %736 : vector<16x1xf32>
    %cst_349 = arith.constant 9.99999974E-6 : f32
    %738 = vector.broadcast %cst_349 : f32 to vector<16x1xf32>
    %739 = arith.addf %737, %738 : vector<16x1xf32>
    %740 = math.rsqrt %739 : vector<16x1xf32>
    %741 = vector.broadcast %740 : vector<16x1xf32> to vector<16x32xf32>
    %742 = arith.mulf %732, %741 : vector<16x32xf32>
    %743 = vector.broadcast %725 : vector<1x32xf32> to vector<16x32xf32>
    %744 = arith.mulf %742, %743 : vector<16x32xf32>
    %745 = vector.broadcast %726 : vector<1x32xf32> to vector<16x32xf32>
    %746 = arith.addf %744, %745 : vector<16x32xf32>
    %c0_350 = arith.constant 0 : index
    %c0_351 = arith.constant 0 : index
    %747 = vector.load %arg58[%c0_350, %c0_351] : memref<32x4xf32, #tpu.memory_space<vmem>>, vector<32x4xf32>
    %cst_352 = arith.constant dense<0.000000e+00> : vector<16x4xf32>
    %748 = tpu.matmul %746, %747, %cst_352 {dimension_numbers = #tpu.dot_dimension_numbers<[1], [0], [0], [1], [0, 0, 1, 1], [], []>} : vector<16x32xf32>, vector<32x4xf32>, vector<16x4xf32> -> vector<16x4xf32>
    %c0_353 = arith.constant 0 : index
    %c0_354 = arith.constant 0 : index
    %749 = vector.load %arg59[%c0_353, %c0_354] : memref<1x4xf32, #tpu.memory_space<vmem>>, vector<1x4xf32>
    %750 = vector.broadcast %749 : vector<1x4xf32> to vector<16x4xf32>
    %751 = arith.addf %748, %750 : vector<16x4xf32>
    %752 = vector.broadcast %3 : vector<1x4xf32> to vector<16x4xf32>
    %753 = arith.mulf %751, %752 : vector<16x4xf32>
    %754 = vector.broadcast %5 : vector<1x4xf32> to vector<16x4xf32>
    %755 = arith.addf %753, %754 : vector<16x4xf32>
    %c0_355 = arith.constant 0 : index
    %c0_356 = arith.constant 0 : index
    %c0_357 = arith.constant 0 : index
    %756 = vector.load %arg60[%c0_355, %c0_356, %c0_357] : memref<1x16x4xf32, #tpu.memory_space<vmem>>, vector<1x16x4xf32>
    %757 = vector.shape_cast %756 : vector<1x16x4xf32> to vector<16x4xf32>
    %758 = vector.shape_cast %755 : vector<16x4xf32> to vector<1x16x4xf32>
    tpu.vector_store %arg60[%c0_355, %c0_356, %c0_357], %758 {strides = array<i32>} : memref<1x16x4xf32, #tpu.memory_space<vmem>>, vector<1x16x4xf32>,
    return
  }
  func.func @transform_0(%arg0: i32) -> (i32, i32, i32) {
    %c0_i32 = arith.constant 0 : i32
    %c0_i32_0 = arith.constant 0 : i32
    %c0_i32_1 = arith.constant 0 : i32
    return %arg0, %c0_i32, %c0_i32_0 : i32, i32, i32
  }
  func.func @transform_1(%arg0: i32) -> (i32, i32, i32) {
    %c0_i32 = arith.constant 0 : i32
    %c0_i32_0 = arith.constant 0 : i32
    %c0_i32_1 = arith.constant 0 : i32
    return %arg0, %c0_i32, %c0_i32_0 : i32, i32, i32
  }
  func.func @transform_2(%arg0: i32) -> (i32, i32, i32) {
    %c0_i32 = arith.constant 0 : i32
    %c0_i32_0 = arith.constant 0 : i32
    %c0_i32_1 = arith.constant 0 : i32
    return %arg0, %c0_i32, %c0_i32_0 : i32, i32, i32
  }
  func.func @transform_3(%arg0: i32) -> (i32, i32, i32) {
    %c0_i32 = arith.constant 0 : i32
    %c0_i32_0 = arith.constant 0 : i32
    %c0_i32_1 = arith.constant 0 : i32
    return %arg0, %c0_i32, %c0_i32_0 : i32, i32, i32
  }
  func.func @transform_4(%arg0: i32) -> (i32, i32, i32) {
    %c0_i32 = arith.constant 0 : i32
    %c0_i32_0 = arith.constant 0 : i32
    %c0_i32_1 = arith.constant 0 : i32
    return %arg0, %c0_i32, %c0_i32_0 : i32, i32, i32
  }
  func.func @transform_5(%arg0: i32) -> (i32, i32, i32) {
    %c0_i32 = arith.constant 0 : i32
    %c0_i32_0 = arith.constant 0 : i32
    %c0_i32_1 = arith.constant 0 : i32
    return %arg0, %c0_i32, %c0_i32_0 : i32, i32, i32
  }
  func.func @transform_6(%arg0: i32) -> (i32, i32, i32) {
    %c0_i32 = arith.constant 0 : i32
    %c0_i32_0 = arith.constant 0 : i32
    %c0_i32_1 = arith.constant 0 : i32
    return %arg0, %c0_i32, %c0_i32_0 : i32, i32, i32
  }
  func.func @transform_7(%arg0: i32) -> (i32, i32) {
    %c0_i32 = arith.constant 0 : i32
    %c0_i32_0 = arith.constant 0 : i32
    %c0_i32_1 = arith.constant 0 : i32
    return %c0_i32, %c0_i32_0 : i32, i32
  }
  func.func @transform_8(%arg0: i32) -> (i32, i32) {
    %c0_i32 = arith.constant 0 : i32
    %c0_i32_0 = arith.constant 0 : i32
    %c0_i32_1 = arith.constant 0 : i32
    return %c0_i32, %c0_i32_0 : i32, i32
  }
  func.func @transform_9(%arg0: i32) -> (i32, i32) {
    %c0_i32 = arith.constant 0 : i32
    %c0_i32_0 = arith.constant 0 : i32
    %c0_i32_1 = arith.constant 0 : i32
    return %c0_i32, %c0_i32_0 : i32, i32
  }
  func.func @transform_10(%arg0: i32) -> (i32, i32) {
    %c0_i32 = arith.constant 0 : i32
    %c0_i32_0 = arith.constant 0 : i32
    %c0_i32_1 = arith.constant 0 : i32
    return %c0_i32, %c0_i32_0 : i32, i32
  }
  func.func @transform_11(%arg0: i32) -> (i32, i32) {
    %c0_i32 = arith.constant 0 : i32
    %c0_i32_0 = arith.constant 0 : i32
    %c0_i32_1 = arith.constant 0 : i32
    return %c0_i32, %c0_i32_0 : i32, i32
  }
  func.func @transform_12(%arg0: i32) -> (i32, i32) {
    %c0_i32 = arith.constant 0 : i32
    %c0_i32_0 = arith.constant 0 : i32
    %c0_i32_1 = arith.constant 0 : i32
    return %c0_i32, %c0_i32_0 : i32, i32
  }
  func.func @transform_13(%arg0: i32) -> (i32, i32) {
    %c0_i32 = arith.constant 0 : i32
    %c0_i32_0 = arith.constant 0 : i32
    %c0_i32_1 = arith.constant 0 : i32
    return %c0_i32, %c0_i32_0 : i32, i32
  }
  func.func @transform_14(%arg0: i32) -> (i32, i32) {
    %c0_i32 = arith.constant 0 : i32
    %c0_i32_0 = arith.constant 0 : i32
    %c0_i32_1 = arith.constant 0 : i32
    return %c0_i32, %c0_i32_0 : i32, i32
  }
  func.func @transform_15(%arg0: i32) -> (i32, i32) {
    %c0_i32 = arith.constant 0 : i32
    %c0_i32_0 = arith.constant 0 : i32
    %c0_i32_1 = arith.constant 0 : i32
    return %c0_i32, %c0_i32_0 : i32, i32
  }
  func.func @transform_16(%arg0: i32) -> (i32, i32) {
    %c0_i32 = arith.constant 0 : i32
    %c0_i32_0 = arith.constant 0 : i32
    %c0_i32_1 = arith.constant 0 : i32
    return %c0_i32, %c0_i32_0 : i32, i32
  }
  func.func @transform_17(%arg0: i32) -> (i32, i32) {
    %c0_i32 = arith.constant 0 : i32
    %c0_i32_0 = arith.constant 0 : i32
    %c0_i32_1 = arith.constant 0 : i32
    return %c0_i32, %c0_i32_0 : i32, i32
  }
  func.func @transform_18(%arg0: i32) -> (i32, i32) {
    %c0_i32 = arith.constant 0 : i32
    %c0_i32_0 = arith.constant 0 : i32
    %c0_i32_1 = arith.constant 0 : i32
    return %c0_i32, %c0_i32_0 : i32, i32
  }
  func.func @transform_19(%arg0: i32) -> (i32, i32) {
    %c0_i32 = arith.constant 0 : i32
    %c0_i32_0 = arith.constant 0 : i32
    %c0_i32_1 = arith.constant 0 : i32
    return %c0_i32, %c0_i32_0 : i32, i32
  }
  func.func @transform_20(%arg0: i32) -> (i32, i32) {
    %c0_i32 = arith.constant 0 : i32
    %c0_i32_0 = arith.constant 0 : i32
    %c0_i32_1 = arith.constant 0 : i32
    return %c0_i32, %c0_i32_0 : i32, i32
  }
  func.func @transform_21(%arg0: i32) -> (i32, i32, i32) {
    %c0_i32 = arith.constant 0 : i32
    %c0_i32_0 = arith.constant 0 : i32
    %c0_i32_1 = arith.constant 0 : i32
    %c0_i32_2 = arith.constant 0 : i32
    return %c0_i32, %c0_i32_0, %c0_i32_1 : i32, i32, i32
  }
  func.func @transform_22(%arg0: i32) -> (i32, i32, i32) {
    %c0_i32 = arith.constant 0 : i32
    %c0_i32_0 = arith.constant 0 : i32
    %c0_i32_1 = arith.constant 0 : i32
    %c0_i32_2 = arith.constant 0 : i32
    return %c0_i32, %c0_i32_0, %c0_i32_1 : i32, i32, i32
  }
  func.func @transform_23(%arg0: i32) -> (i32, i32, i32) {
    %c0_i32 = arith.constant 0 : i32
    %c0_i32_0 = arith.constant 0 : i32
    %c0_i32_1 = arith.constant 0 : i32
    %c0_i32_2 = arith.constant 0 : i32
    return %c0_i32, %c0_i32_0, %c0_i32_1 : i32, i32, i32
  }
  func.func @transform_24(%arg0: i32) -> (i32, i32, i32) {
    %c0_i32 = arith.constant 0 : i32
    %c0_i32_0 = arith.constant 0 : i32
    %c0_i32_1 = arith.constant 0 : i32
    %c0_i32_2 = arith.constant 0 : i32
    return %c0_i32, %c0_i32_0, %c0_i32_1 : i32, i32, i32
  }
  func.func @transform_25(%arg0: i32) -> (i32, i32, i32) {
    %c0_i32 = arith.constant 0 : i32
    %c0_i32_0 = arith.constant 0 : i32
    %c0_i32_1 = arith.constant 0 : i32
    %c0_i32_2 = arith.constant 0 : i32
    return %c0_i32, %c0_i32_0, %c0_i32_1 : i32, i32, i32
  }
  func.func @transform_26(%arg0: i32) -> (i32, i32, i32) {
    %c0_i32 = arith.constant 0 : i32
    %c0_i32_0 = arith.constant 0 : i32
    %c0_i32_1 = arith.constant 0 : i32
    %c0_i32_2 = arith.constant 0 : i32
    return %c0_i32, %c0_i32_0, %c0_i32_1 : i32, i32, i32
  }
  func.func @transform_27(%arg0: i32) -> (i32, i32, i32) {
    %c0_i32 = arith.constant 0 : i32
    %c0_i32_0 = arith.constant 0 : i32
    %c0_i32_1 = arith.constant 0 : i32
    %c0_i32_2 = arith.constant 0 : i32
    return %c0_i32, %c0_i32_0, %c0_i32_1 : i32, i32, i32
  }
  func.func @transform_28(%arg0: i32) -> (i32, i32, i32) {
    %c0_i32 = arith.constant 0 : i32
    %c0_i32_0 = arith.constant 0 : i32
    %c0_i32_1 = arith.constant 0 : i32
    %c0_i32_2 = arith.constant 0 : i32
    return %c0_i32, %c0_i32_0, %c0_i32_1 : i32, i32, i32
  }
  func.func @transform_29(%arg0: i32) -> (i32, i32, i32) {
    %c0_i32 = arith.constant 0 : i32
    %c0_i32_0 = arith.constant 0 : i32
    %c0_i32_1 = arith.constant 0 : i32
    %c0_i32_2 = arith.constant 0 : i32
    return %c0_i32, %c0_i32_0, %c0_i32_1 : i32, i32, i32
  }
  func.func @transform_30(%arg0: i32) -> (i32, i32, i32) {
    %c0_i32 = arith.constant 0 : i32
    %c0_i32_0 = arith.constant 0 : i32
    %c0_i32_1 = arith.constant 0 : i32
    %c0_i32_2 = arith.constant 0 : i32
    return %c0_i32, %c0_i32_0, %c0_i32_1 : i32, i32, i32
  }
  func.func @transform_31(%arg0: i32) -> (i32, i32, i32) {
    %c0_i32 = arith.constant 0 : i32
    %c0_i32_0 = arith.constant 0 : i32
    %c0_i32_1 = arith.constant 0 : i32
    %c0_i32_2 = arith.constant 0 : i32
    return %c0_i32, %c0_i32_0, %c0_i32_1 : i32, i32, i32
  }
  func.func @transform_32(%arg0: i32) -> (i32, i32, i32) {
    %c0_i32 = arith.constant 0 : i32
    %c0_i32_0 = arith.constant 0 : i32
    %c0_i32_1 = arith.constant 0 : i32
    %c0_i32_2 = arith.constant 0 : i32
    return %c0_i32, %c0_i32_0, %c0_i32_1 : i32, i32, i32
  }
  func.func @transform_33(%arg0: i32) -> (i32, i32) {
    %c0_i32 = arith.constant 0 : i32
    %c0_i32_0 = arith.constant 0 : i32
    %c0_i32_1 = arith.constant 0 : i32
    return %c0_i32, %c0_i32_0 : i32, i32
  }
  func.func @transform_34(%arg0: i32) -> (i32, i32) {
    %c0_i32 = arith.constant 0 : i32
    %c0_i32_0 = arith.constant 0 : i32
    %c0_i32_1 = arith.constant 0 : i32
    return %c0_i32, %c0_i32_0 : i32, i32
  }
  func.func @transform_35(%arg0: i32) -> (i32, i32, i32) {
    %c0_i32 = arith.constant 0 : i32
    %c0_i32_0 = arith.constant 0 : i32
    %c0_i32_1 = arith.constant 0 : i32
    %c0_i32_2 = arith.constant 0 : i32
    return %c0_i32, %c0_i32_0, %c0_i32_1 : i32, i32, i32
  }
  func.func @transform_36(%arg0: i32) -> (i32, i32, i32) {
    %c0_i32 = arith.constant 0 : i32
    %c0_i32_0 = arith.constant 0 : i32
    %c0_i32_1 = arith.constant 0 : i32
    %c0_i32_2 = arith.constant 0 : i32
    return %c0_i32, %c0_i32_0, %c0_i32_1 : i32, i32, i32
  }
  func.func @transform_37(%arg0: i32) -> (i32, i32, i32) {
    %c0_i32 = arith.constant 0 : i32
    %c0_i32_0 = arith.constant 0 : i32
    %c0_i32_1 = arith.constant 0 : i32
    %c0_i32_2 = arith.constant 0 : i32
    return %c0_i32, %c0_i32_0, %c0_i32_1 : i32, i32, i32
  }
  func.func @transform_38(%arg0: i32) -> (i32, i32, i32) {
    %c0_i32 = arith.constant 0 : i32
    %c0_i32_0 = arith.constant 0 : i32
    %c0_i32_1 = arith.constant 0 : i32
    %c0_i32_2 = arith.constant 0 : i32
    return %c0_i32, %c0_i32_0, %c0_i32_1 : i32, i32, i32
  }
  func.func @transform_39(%arg0: i32) -> (i32, i32, i32) {
    %c0_i32 = arith.constant 0 : i32
    %c0_i32_0 = arith.constant 0 : i32
    %c0_i32_1 = arith.constant 0 : i32
    %c0_i32_2 = arith.constant 0 : i32
    return %c0_i32, %c0_i32_0, %c0_i32_1 : i32, i32, i32
  }
  func.func @transform_40(%arg0: i32) -> (i32, i32, i32) {
    %c0_i32 = arith.constant 0 : i32
    %c0_i32_0 = arith.constant 0 : i32
    %c0_i32_1 = arith.constant 0 : i32
    %c0_i32_2 = arith.constant 0 : i32
    return %c0_i32, %c0_i32_0, %c0_i32_1 : i32, i32, i32
  }
  func.func @transform_41(%arg0: i32) -> (i32, i32, i32) {
    %c0_i32 = arith.constant 0 : i32
    %c0_i32_0 = arith.constant 0 : i32
    %c0_i32_1 = arith.constant 0 : i32
    %c0_i32_2 = arith.constant 0 : i32
    return %c0_i32, %c0_i32_0, %c0_i32_1 : i32, i32, i32
  }
  func.func @transform_42(%arg0: i32) -> (i32, i32, i32) {
    %c0_i32 = arith.constant 0 : i32
    %c0_i32_0 = arith.constant 0 : i32
    %c0_i32_1 = arith.constant 0 : i32
    %c0_i32_2 = arith.constant 0 : i32
    return %c0_i32, %c0_i32_0, %c0_i32_1 : i32, i32, i32
  }
  func.func @transform_43(%arg0: i32) -> (i32, i32, i32) {
    %c0_i32 = arith.constant 0 : i32
    %c0_i32_0 = arith.constant 0 : i32
    %c0_i32_1 = arith.constant 0 : i32
    %c0_i32_2 = arith.constant 0 : i32
    return %c0_i32, %c0_i32_0, %c0_i32_1 : i32, i32, i32
  }
  func.func @transform_44(%arg0: i32) -> (i32, i32, i32) {
    %c0_i32 = arith.constant 0 : i32
    %c0_i32_0 = arith.constant 0 : i32
    %c0_i32_1 = arith.constant 0 : i32
    %c0_i32_2 = arith.constant 0 : i32
    return %c0_i32, %c0_i32_0, %c0_i32_1 : i32, i32, i32
  }
  func.func @transform_45(%arg0: i32) -> (i32, i32, i32) {
    %c0_i32 = arith.constant 0 : i32
    %c0_i32_0 = arith.constant 0 : i32
    %c0_i32_1 = arith.constant 0 : i32
    %c0_i32_2 = arith.constant 0 : i32
    return %c0_i32, %c0_i32_0, %c0_i32_1 : i32, i32, i32
  }
  func.func @transform_46(%arg0: i32) -> (i32, i32, i32) {
    %c0_i32 = arith.constant 0 : i32
    %c0_i32_0 = arith.constant 0 : i32
    %c0_i32_1 = arith.constant 0 : i32
    %c0_i32_2 = arith.constant 0 : i32
    return %c0_i32, %c0_i32_0, %c0_i32_1 : i32, i32, i32
  }
  func.func @transform_47(%arg0: i32) -> (i32, i32, i32) {
    %c0_i32 = arith.constant 0 : i32
    %c0_i32_0 = arith.constant 0 : i32
    %c0_i32_1 = arith.constant 0 : i32
    %c0_i32_2 = arith.constant 0 : i32
    return %c0_i32, %c0_i32_0, %c0_i32_1 : i32, i32, i32
  }
  func.func @transform_48(%arg0: i32) -> (i32, i32, i32) {
    %c0_i32 = arith.constant 0 : i32
    %c0_i32_0 = arith.constant 0 : i32
    %c0_i32_1 = arith.constant 0 : i32
    %c0_i32_2 = arith.constant 0 : i32
    return %c0_i32, %c0_i32_0, %c0_i32_1 : i32, i32, i32
  }
  func.func @transform_49(%arg0: i32) -> (i32, i32, i32) {
    %c0_i32 = arith.constant 0 : i32
    %c0_i32_0 = arith.constant 0 : i32
    %c0_i32_1 = arith.constant 0 : i32
    %c0_i32_2 = arith.constant 0 : i32
    return %c0_i32, %c0_i32_0, %c0_i32_1 : i32, i32, i32
  }
  func.func @transform_50(%arg0: i32) -> (i32, i32, i32) {
    %c0_i32 = arith.constant 0 : i32
    %c0_i32_0 = arith.constant 0 : i32
    %c0_i32_1 = arith.constant 0 : i32
    %c0_i32_2 = arith.constant 0 : i32
    return %c0_i32, %c0_i32_0, %c0_i32_1 : i32, i32, i32
  }
  func.func @transform_51(%arg0: i32) -> (i32, i32, i32) {
    %c0_i32 = arith.constant 0 : i32
    %c0_i32_0 = arith.constant 0 : i32
    %c0_i32_1 = arith.constant 0 : i32
    %c0_i32_2 = arith.constant 0 : i32
    return %c0_i32, %c0_i32_0, %c0_i32_1 : i32, i32, i32
  }
  func.func @transform_52(%arg0: i32) -> (i32, i32, i32) {
    %c0_i32 = arith.constant 0 : i32
    %c0_i32_0 = arith.constant 0 : i32
    %c0_i32_1 = arith.constant 0 : i32
    %c0_i32_2 = arith.constant 0 : i32
    return %c0_i32, %c0_i32_0, %c0_i32_1 : i32, i32, i32
  }
  func.func @transform_53(%arg0: i32) -> (i32, i32, i32) {
    %c0_i32 = arith.constant 0 : i32
    %c0_i32_0 = arith.constant 0 : i32
    %c0_i32_1 = arith.constant 0 : i32
    %c0_i32_2 = arith.constant 0 : i32
    return %c0_i32, %c0_i32_0, %c0_i32_1 : i32, i32, i32
  }
  func.func @transform_54(%arg0: i32) -> (i32, i32, i32) {
    %c0_i32 = arith.constant 0 : i32
    %c0_i32_0 = arith.constant 0 : i32
    %c0_i32_1 = arith.constant 0 : i32
    %c0_i32_2 = arith.constant 0 : i32
    return %c0_i32, %c0_i32_0, %c0_i32_1 : i32, i32, i32
  }
  func.func @transform_55(%arg0: i32) -> (i32, i32) {
    %c0_i32 = arith.constant 0 : i32
    %c0_i32_0 = arith.constant 0 : i32
    %c0_i32_1 = arith.constant 0 : i32
    return %c0_i32, %c0_i32_0 : i32, i32
  }
  func.func @transform_56(%arg0: i32) -> (i32, i32) {
    %c0_i32 = arith.constant 0 : i32
    %c0_i32_0 = arith.constant 0 : i32
    %c0_i32_1 = arith.constant 0 : i32
    return %c0_i32, %c0_i32_0 : i32, i32
  }
  func.func @transform_57(%arg0: i32) -> (i32, i32) {
    %c0_i32 = arith.constant 0 : i32
    %c0_i32_0 = arith.constant 0 : i32
    %c0_i32_1 = arith.constant 0 : i32
    return %c0_i32, %c0_i32_0 : i32, i32
  }
  func.func @transform_58(%arg0: i32) -> (i32, i32) {
    %c0_i32 = arith.constant 0 : i32
    %c0_i32_0 = arith.constant 0 : i32
    %c0_i32_1 = arith.constant 0 : i32
    return %c0_i32, %c0_i32_0 : i32, i32
  }
  func.func @transform_59(%arg0: i32) -> (i32, i32, i32) {
    %c0_i32 = arith.constant 0 : i32
    %c0_i32_0 = arith.constant 0 : i32
    %c0_i32_1 = arith.constant 0 : i32
    return %arg0, %c0_i32, %c0_i32_0 : i32, i32, i32
  }
  func.func @transform_60(%arg0: i32) -> (i32, i32, i32, i32) {
    %c0_i32 = arith.constant 0 : i32
    %c0_i32_0 = arith.constant 0 : i32
    %c0_i32_1 = arith.constant 0 : i32
    %c0_i32_2 = arith.constant 0 : i32
    return %arg0, %c0_i32, %c0_i32_0, %c0_i32_1 : i32, i32, i32, i32
  }
}

</mosaic_0001>

<bundles_post_ra>
// kernel: _lambda_.1
= control target key start
LH: loop header
LB: loop body
LE: loop exit
PB: predicated region body
PF: predicated region fallthrough
CT: control target
= control target key end

     0   :  { %s5947_s6 = smov 1   ;;  %s5948_s10 = smov 2   ;;  %s7276_s0 = inlined_call_operand.smem [shape: u32[61], index: -1, kind: input, shape index: {}] }
   0x1   :  { %s6032_s5 = sld [smem:[%s7276_s0]]   ;;  %s5949_s14 = smov 3  }
   0x2   :  { %s6037_s9 = sld [smem:[%s7276_s0 + %s5947_s6]]   ;;  %s5950_s18 = smov 4  }
   0x3   :  { %s6042_s13 = sld [smem:[%s7276_s0 + %s5948_s10]]   ;;  %s5951_s22 = smov 5  }
   0x4   :  { %s6047_s17 = sld [smem:[%s7276_s0 + %s5949_s14]]   ;;  %s5952_s26 = smov 6  }
   0x5   :  { %s6052_s21 = sld [smem:[%s7276_s0 + %s5950_s18]]   ;;  %s5953_s30 = smov 7  }
   0x6   :  { %s6057_s25 = sld [smem:[%s7276_s0 + %s5951_s22]]   ;;  %s5954_s4 = smov 8  }
   0x7   :  { %7338 = sst [smem:[#allocation2_spill]] %s6032_s5  ;;  %s5955_s10 = smov 9  }
   0x8   :  { %7339 = sst [smem:[#allocation3_spill]] %s6037_s9  ;;  %s5956_s15 = smov 10  }
   0x9   :  { %7340 = sst [smem:[#allocation4_spill]] %s6042_s13  ;;  %s5957_s20 = smov 11  }
   0xa   :  { %7341 = sst [smem:[#allocation5_spill]] %s6047_s17  ;;  %s5959_s1 = smov 13  }
   0xb   :  { %7342 = sst [smem:[#allocation6_spill]] %s6052_s21  ;;  %s5960_s7 = smov 14  }
   0xc   :  { %7343 = sst [smem:[#allocation7_spill]] %s6057_s25  ;;  %s5962_s22 = smov 16  }
   0xd   :  { %s6062_s29 = sld [smem:[%s7276_s0 + %s5952_s26]]   ;;  %s5958_s26 = smov 12  }
   0xe   :  { %s6067_s3 = sld [smem:[%s7276_s0 + %s5953_s30]]   ;;  %s5963_s28 = smov 17  }
   0xf   :  { %s6072_s8 = sld [smem:[%s7276_s0 + %s5954_s4]]  }
  0x10   :  { %s6077_s14 = sld [smem:[%s7276_s0 + %s5955_s10]]  }
  0x11   :  { %s6082_s19 = sld [smem:[%s7276_s0 + %s5956_s15]]   ;;  %s5961_s15 = smov 15  }
  0x12   :  { %s6087_s24 = sld [smem:[%s7276_s0 + %s5957_s20]]  }
  0x13   :  { %7344 = sst [smem:[#allocation8_spill]] %s6062_s29 }
  0x14   :  { %7345 = sst [smem:[#allocation9_spill]] %s6067_s3 }
  0x15   :  { %7346 = sst [smem:[#allocation10_spill]] %s6072_s8 }
  0x16   :  { %7347 = sst [smem:[#allocation11_spill]] %s6077_s14 }
  0x17   :  { %7348 = sst [smem:[#allocation12_spill]] %s6082_s19 }
  0x18   :  { %7349 = sst [smem:[#allocation13_spill]] %s6087_s24 }
  0x19   :  { %s6092_s30 = sld [smem:[%s7276_s0 + %s5958_s26]]  }
  0x1a   :  { %s6097_s6 = sld [smem:[%s7276_s0 + %s5959_s1]]  }
  0x1b   :  { %s6102_s12 = sld [smem:[%s7276_s0 + %s5960_s7]]   ;;  %s5964_s7 = smov 18  }
  0x1c   :  { %s6107_s20 = sld [smem:[%s7276_s0 + %s5961_s15]]   ;;  %s5965_s15 = smov 19  }
  0x1d   :  { %s6112_s27 = sld [smem:[%s7276_s0 + %s5962_s22]]   ;;  %s5966_s22 = smov 20  }
  0x1e   :  { %s6117_s4 = sld [smem:[%s7276_s0 + %s5963_s28]]   ;;  %s5967_s28 = smov 21  }
  0x1f   :  { %7350 = sst [smem:[#allocation14_spill]] %s6092_s30 }
  0x20   :  { %7351 = sst [smem:[#allocation15_spill]] %s6097_s6 }
  0x21   :  { %7352 = sst [smem:[#allocation16_spill]] %s6102_s12 }
  0x22   :  { %7353 = sst [smem:[#allocation17_spill]] %s6107_s20 }
  0x23   :  { %7354 = sst [smem:[#allocation18_spill]] %s6112_s27 }
  0x24   :  { %7355 = sst [smem:[#allocation19_spill]] %s6117_s4 }
  0x25   :  { %s6122_s29 = sld [smem:[%s7276_s0 + %s5964_s7]]   ;;  %s5968_s7 = smov 22  }
  0x26   :  { %s6127_s25 = sld [smem:[%s7276_s0 + %s5965_s15]]   ;;  %s5969_s15 = smov 23  }
  0x27   :  { %s6132_s21 = sld [smem:[%s7276_s0 + %s5966_s22]]   ;;  %s5970_s22 = smov 24  }
  0x28   :  { %s6137_s4 = sld [smem:[%s7276_s0 + %s5967_s28]]   ;;  %s5971_s28 = smov 25  }
  0x29   :  { %s6147_s17 = sld [smem:[%s7276_s0 + %s5969_s15]]   ;;  %s5973_s15 = smov 27  }
  0x2b   :  { %7356 = sst [smem:[#allocation20_spill]] %s6122_s29 }
  0x2c   :  { %7357 = sst [smem:[#allocation21_spill]] %s6127_s25 }
  0x2d   :  { %7358 = sst [smem:[#allocation22_spill]] %s6132_s21 }
  0x2e   :  { %7359 = sst [smem:[#allocation23_spill]] %s6137_s4 }
  0x2f   :  { %s6142_s29 = sld [smem:[%s7276_s0 + %s5968_s7]]   ;;  %s5972_s7 = smov 26  }
  0x30   :  { %7361 = sst [smem:[#allocation25_spill]] %s6147_s17 }
  0x31   :  { %s6152_s21 = sld [smem:[%s7276_s0 + %s5970_s22]]   ;;  %s5974_s22 = smov 28  }
  0x32   :  { %s6157_s4 = sld [smem:[%s7276_s0 + %s5971_s28]]   ;;  %s5975_s28 = smov 29  }
  0x33   :  { %s6167_s17 = sld [smem:[%s7276_s0 + %s5973_s15]]   ;;  %s5977_s15 = smov 31  }
  0x35   :  { %7360 = sst [smem:[#allocation24_spill]] %s6142_s29 }
  0x36   :  { %s6162_s29 = sld [smem:[%s7276_s0 + %s5972_s7]]   ;;  %s5976_s7 = smov 30  }
  0x37   :  { %7362 = sst [smem:[#allocation26_spill]] %s6152_s21 }
  0x38   :  { %7363 = sst [smem:[#allocation27_spill]] %s6157_s4 }
  0x39   :  { %7365 = sst [smem:[#allocation29_spill]] %s6167_s17 }
  0x3a   :  { %s6172_s21 = sld [smem:[%s7276_s0 + %s5974_s22]]   ;;  %s5978_s22 = smov 32  }
  0x3b   :  { %s6177_s4 = sld [smem:[%s7276_s0 + %s5975_s28]]   ;;  %s5979_s28 = smov 33  }
  0x3c   :  { %7364 = sst [smem:[#allocation28_spill]] %s6162_s29 }
  0x3d   :  { %s6182_s29 = sld [smem:[%s7276_s0 + %s5976_s7]]   ;;  %s5980_s7 = smov 34  }
  0x3e   :  { %s6187_s17 = sld [smem:[%s7276_s0 + %s5977_s15]]   ;;  %s5981_s15 = smov 35  }
  0x40   :  { %7366 = sst [smem:[#allocation30_spill]] %s6172_s21 }
  0x41   :  { %7367 = sst [smem:[#allocation31_spill]] %s6177_s4 }
  0x42   :  { %s6192_s21 = sld [smem:[%s7276_s0 + %s5978_s22]]   ;;  %s5982_s22 = smov 36  }
  0x43   :  { %7368 = sst [smem:[#allocation32_spill]] %s6182_s29 }
  0x44   :  { %7369 = sst [smem:[#allocation33_spill]] %s6187_s17 }
  0x45   :  { %s6197_s4 = sld [smem:[%s7276_s0 + %s5979_s28]]   ;;  %s5983_s28 = smov 37  }
  0x46   :  { %s6202_s29 = sld [smem:[%s7276_s0 + %s5980_s7]]   ;;  %s5984_s7 = smov 38  }
  0x47   :  { %s6207_s17 = sld [smem:[%s7276_s0 + %s5981_s15]]   ;;  %s5985_s15 = smov 39  }
  0x48   :  { %7370 = sst [smem:[#allocation34_spill]] %s6192_s21 }
  0x49   :  { %s6212_s21 = sld [smem:[%s7276_s0 + %s5982_s22]]   ;;  %s5986_s22 = smov 40  }
  0x4b   :  { %7371 = sst [smem:[#allocation35_spill]] %s6197_s4 }
  0x4c   :  { %7372 = sst [smem:[#allocation36_spill]] %s6202_s29 }
  0x4d   :  { %7373 = sst [smem:[#allocation37_spill]] %s6207_s17 }
  0x4e   :  { %s6217_s4 = sld [smem:[%s7276_s0 + %s5983_s28]]   ;;  %s5987_s28 = smov 41  }
  0x4f   :  { %7374 = sst [smem:[#allocation38_spill]] %s6212_s21 }
  0x50   :  { %s6222_s29 = sld [smem:[%s7276_s0 + %s5984_s7]]   ;;  %s5988_s7 = smov 42  }
  0x51   :  { %s6227_s17 = sld [smem:[%s7276_s0 + %s5985_s15]]   ;;  %s5989_s15 = smov 43  }
  0x52   :  { %s6232_s21 = sld [smem:[%s7276_s0 + %s5986_s22]]   ;;  %s5990_s22 = smov 44  }
  0x54   :  { %7375 = sst [smem:[#allocation39_spill]] %s6217_s4 }
  0x55   :  { %s6237_s4 = sld [smem:[%s7276_s0 + %s5987_s28]]   ;;  %s5991_s28 = smov 45  }
  0x56   :  { %7376 = sst [smem:[#allocation40_spill]] %s6222_s29 }
  0x57   :  { %7377 = sst [smem:[#allocation41_spill]] %s6227_s17 }
  0x58   :  { %7378 = sst [smem:[#allocation42_spill]] %s6232_s21 }
  0x59   :  { %s6242_s29 = sld [smem:[%s7276_s0 + %s5988_s7]]   ;;  %s5992_s7 = smov 46  }
  0x5a   :  { %s6247_s17 = sld [smem:[%s7276_s0 + %s5989_s15]]   ;;  %s5993_s15 = smov 47  }
  0x5b   :  { %7379 = sst [smem:[#allocation43_spill]] %s6237_s4 }
  0x5c   :  { %s6252_s21 = sld [smem:[%s7276_s0 + %s5990_s22]]   ;;  %s5994_s22 = smov 48  }
  0x5d   :  { %s6257_s4 = sld [smem:[%s7276_s0 + %s5991_s28]]   ;;  %s5995_s28 = smov 49  }
  0x5f   :  { %7380 = sst [smem:[#allocation44_spill]] %s6242_s29 }
  0x60   :  { %7381 = sst [smem:[#allocation45_spill]] %s6247_s17 }
  0x61   :  { %s6262_s29 = sld [smem:[%s7276_s0 + %s5992_s7]]   ;;  %s5996_s7 = smov 50  }
  0x62   :  { %7382 = sst [smem:[#allocation46_spill]] %s6252_s21 }
  0x63   :  { %7383 = sst [smem:[#allocation47_spill]] %s6257_s4 }
  0x64   :  { %s6267_s17 = sld [smem:[%s7276_s0 + %s5993_s15]]   ;;  %s5997_s15 = smov 51  }
  0x65   :  { %s6272_s21 = sld [smem:[%s7276_s0 + %s5994_s22]]   ;;  %s5998_s22 = smov 52  }
  0x66   :  { %s6277_s4 = sld [smem:[%s7276_s0 + %s5995_s28]]   ;;  %s5999_s28 = smov 53  }
  0x67   :  { %7384 = sst [smem:[#allocation48_spill]] %s6262_s29 }
  0x68   :  { %s6282_s29 = sld [smem:[%s7276_s0 + %s5996_s7]]   ;;  %s6000_s7 = smov 54  }
  0x6a   :  { %7385 = sst [smem:[#allocation49_spill]] %s6267_s17 }
  0x6b   :  { %7386 = sst [smem:[#allocation50_spill]] %s6272_s21 }
  0x6c   :  { %7387 = sst [smem:[#allocation51_spill]] %s6277_s4 }
  0x6d   :  { %s6287_s17 = sld [smem:[%s7276_s0 + %s5997_s15]]   ;;  %s6001_s15 = smov 55  }
  0x6e   :  { %7388 = sst [smem:[#allocation52_spill]] %s6282_s29 }
  0x6f   :  { %s6292_s21 = sld [smem:[%s7276_s0 + %s5998_s22]]   ;;  %s6002_s22 = smov 56  }
  0x70   :  { %s6297_s4 = sld [smem:[%s7276_s0 + %s5999_s28]]   ;;  %s6003_s28 = smov 57  }
  0x71   :  { %s6302_s29 = sld [smem:[%s7276_s0 + %s6000_s7]]   ;;  %s6004_s7 = smov 58  }
  0x73   :  { %7389 = sst [smem:[#allocation53_spill]] %s6287_s17 }
  0x74   :  { %s6307_s17 = sld [smem:[%s7276_s0 + %s6001_s15]]   ;;  %s6005_s15 = smov 59  }
  0x75   :  { %7390 = sst [smem:[#allocation54_spill]] %s6292_s21 }
  0x76   :  { %7391 = sst [smem:[#allocation55_spill]] %s6297_s4 }
  0x77   :  { %7392 = sst [smem:[#allocation56_spill]] %s6302_s29 }
  0x78   :  { %s6312_s21 = sld [smem:[%s7276_s0 + %s6002_s22]]   ;;  %s6006_s22 = smov 60  }
  0x79   :  { %s6317_s4 = sld [smem:[%s7276_s0 + %s6003_s28]]   ;;  %s6334_s28 = smov 0  }
  0x7a   :  { %7393 = sst [smem:[#allocation57_spill]] %s6307_s17 }
  0x7b   :  { %s6322_s29 = sld [smem:[%s7276_s0 + %s6004_s7]]  }
  0x7c   :  { %s6327_s17 = sld [smem:[%s7276_s0 + %s6005_s15]]  }
  0x7e   :  { %7394 = sst [smem:[#allocation58_spill]] %s6312_s21 }
  0x7f   :  { %s6332_s21 = sld [smem:[%s7276_s0 + %s6006_s22]]  }
  0x81   :  { %7395 = sst [smem:[#allocation59_spill]] %s6322_s29 }
  0x82   :  { %7396 = sst [smem:[#allocation60_spill]] %s6327_s17 }
  0x83 LB: > { %s7397_s30 = sld [smem:[#allocation14_spill]]  ;;  %s5355_s1 = sadd.s32 4294967295, %s5945_s28   ;;  %s5945_s28 = sphi %s6334_s28, %s132_s28  }
  0x84   : > { %s7398_s27 = sld [smem:[#allocation18_spill]]  ;;  %p5359_p0 = scmp.ge.s32.totalorder %s5945_s28, 1 }
  0x85   : > { %s7399_s25 = sld [smem:[#allocation21_spill]]  ;;  %p1682_p1 = scmp.lt.s32.totalorder %s5945_s28, 3 }
  0x86   : > { %s7400_s19 = sld [smem:[#allocation12_spill]] }
  0x87   : > { %7401 = sst [smem:[#allocation61_spill]] %s5945_s28  ;;  %p1683_p2 = pnand %p5359_p0, %p1682_p1 }
  0x89   : > { %1686 = sbr.rel (%p1683_p2) target bundleno = 7633 (0x1dd1), region = 256 }
  0x8e   : > { %p1851_p3 = scmp.lt.s32.totalorder %s5355_s1, 1  ;;  %s7402_s9 = sld [smem:[#allocation3_spill]]  ;;  %vm1901_vm0 = vcmask 392192   ;;  %v1960_v9 = vld [vmem:[%s7400_s19 + $0x8] sm:$0xff]  ;;  %vm1930_vm1 = vcmask 31744   ;;  %vm1934_vm2 = vcmask 64512  }
  0x8f   : > { %s7403_s5 = sld [smem:[#allocation2_spill]]  ;;  %s6007_s10 = smov 4   ;;  %v1959_v13 = vld [vmem:[%s7400_s19] sm:$0xff]  ;;  %vm1962_vm3 = vcmask 130048   ;;  %v1988_v20 = vld [vmem:[%s7397_s30 + $0x8] sm:$0xff]  ;;  %vm2137_vm4 = vcmask 1043456  }
  0x90   : > { %s7478_s1 = smov (!%p1851_p3, %s5355_s1), 1  ;;  %s7405_s3 = sld [smem:[#allocation9_spill]]  ;;  %2006 = vmatpush.msra.mxu3 %v1988_v20  ;;  %v1987_v21 = vld [vmem:[%s7397_s30] sm:$0xff]  ;;  %v2071_v30 = vld [vmem:[%s7398_s27 + $0x8] sm:$0xff]  ;;  %vm2130_vm5 = vcmask 97280   ;;  %vm2172_vm6 = vcmask 261120  }
  0x91   : > { %s5553_s0 = smul.u32 48, %s7478_s1  ;;  %s7406_s8 = sld [smem:[#allocation10_spill]]  ;;  %v2070_v31 = vld [vmem:[%s7398_s27] sm:$0xff]  ;;  %v2127_v32 = vld [vmem:[%s7399_s25 + $0x8] sm:$0xf]  ;;  %vm2626_vm7 = vcmask 195584  }
  0x92   : > { %s7407_s13 = sld [smem:[#allocation4_spill]]  ;;  %2007 = vmatpush.msra.mxu3 %v1987_v21  ;;  %v2126_v33 = vld [vmem:[%s7399_s25] sm:$0xff]  ;;  %s6383_s22 = sshll.u32 %s7478_s1, 4  ;;  %vm2685_vm15 = vcmask 523264  }
  0x93   : > { %s7408_s14 = sld [smem:[#allocation11_spill]]  ;;  %s7436_s19 = smov 104  }
  0x94   : > { %s6347_s2 = scalar_lea.vmem %s7402_s9, %s7478_s1  ;;  %s7410_s6 = sld [smem:[#allocation15_spill]] }
  0x95   : > { %7404 = sst [smem:[#allocation62_spill]] %s6347_s2  ;;  %v5721_v0 = vld [vmem:[%s6347_s2] ss:$0 sm:$0xff]  ;;  %s1855_s7 = scalar_lea.vmem %s7403_s5, %s5553_s0 }
  0x96   : > { %v1897_v1 = vld [vmem:[%s1855_s7 + $0x28] sm:$0xff]  ;;  %v1896_v2 = vld [vmem:[%s1855_s7 + $0x20] sm:$0xff]  ;;  %1927 = vrot.lane.b32.xlu0 %v5721_v0, %s6007_s10  ;;  %v1895_v3 = vld [vmem:[%s1855_s7 + $0x18] sm:$0xff]  ;;  %s7411_s12 = sld [smem:[#allocation16_spill]]  ;;  %s7300_s5 = smov 104  }
  0x97   : > { %1915 = vmatpush.msra.mxu0 %v1897_v1  ;;  %v1894_v4 = vld [vmem:[%s1855_s7 + $0x10] sm:$0xff]  ;;  %v1893_v5 = vld [vmem:[%s1855_s7 + $0x8] sm:$0xff]  ;;  %v1892_v6 = vld [vmem:[%s1855_s7] sm:$0xff]  ;;  %s7412_s24 = sld [smem:[#allocation13_spill]]  ;;  %s7439_s25 = smov 40  }
  0x98   : > { %v1900_v7 = vld [vmem:[%s7405_s3] sm:$0x1]  ;;  %s6360_s11 = scalar_lea.vmem %s7407_s13, %s7478_s1  ;;  %s7413_s20 = sld [smem:[#allocation17_spill]] }
  0x99   : > { %1916 = vmatpush.msra.mxu0 %v1896_v2  ;;  %v1932_v8 = vld [vmem:[%s7406_s8] sm:$0xff]  ;;  %7409 = sst [smem:[#allocation63_spill]] %s6360_s11  ;;  %s7420_s3 = smov 120  }
  0x9a   : > { %1953 = vmatpush.msra.mxu1 %v1932_v8  ;;  %v5722_v14 = vld [vmem:[%s6360_s11] ss:$0 sm:$0xff]  ;;  %s7414_s15 = sld [smem:[#allocation5_spill]]  ;;  %s7431_s13 = smov 88  }
  0x9b   : > { %1917 = vmatpush.msra.mxu0 %v1895_v3  ;;  %v1933_v15 = vld [vmem:[%s7408_s14] sm:$0x1]  ;;  %s7415_s16 = sld [smem:[#allocation20_spill]]  ;;  %s7432_s14 = smov 96  }
  0x9c   : > { %1980 = vmatpush.msrb.mxu1 %v1960_v9  ;;  %v2014_v19 = vld [vmem:[%s7410_s6] sm:$0x1]  ;;  %s7416_s18 = sld [smem:[#allocation23_spill]]  ;;  %s7440_s27 = smov 48  }
  0x9d   : > { %1918 = vmatpush.msra.mxu0 %v1894_v4  ;;  %v2044_v22 = vld [vmem:[%s7411_s12] sm:$0xff]  ;;  %s7417_s26 = sld [smem:[#allocation19_spill]]  ;;  %s7444_s17 = smov 8  }
  0x9e   : > { %1981 = vmatpush.msrb.mxu1 %v1959_v13  ;;  %2040 = vrot.lane.b32.xlu0 %v5722_v14, %s6007_s10  ;;  %v1961_v23 = vld [vmem:[%s7412_s24] sm:$0x1]  ;;  %s7418_s0 = sld [smem:[#allocation6_spill]]  ;;  %s7438_s24 = smov 64  }
  0x9f   : > { %1919 = vmatpush.msra.mxu0 %v1893_v5  ;;  %2064 = vmatpush.msra.mxu2 %v2044_v22  ;;  %v2045_v36 = vld [vmem:[%s7413_s20] sm:$0x1]  ;;  %s7419_s7 = sld [smem:[#allocation24_spill]]  ;;  %s7437_s20 = smov 56  }
  0xa0   : > { %s1866_s23 = scalar_lea.vmem %s7414_s15, %s6383_s22  ;;  %s7427_s6 = sld [smem:[#allocation30_spill]] }
  0xa1   : > { %1920 = vmatpush.msra.mxu0 %v1892_v6  ;;  %2090 = vmatpush.msrb.mxu2 %v2071_v30  ;;  %v2124_v42 = vld [vmem:[%s1866_s23] sm:$0xff]  ;;  %v2125_v43 = vld [vmem:[%s1866_s23 + $0x8] sm:$0xff]  ;;  %s7316_s23 = smov 96   ;;  %s7428_s8 = sld [smem:[#allocation32_spill]] }
  0xa2   : > { %5373 = vmatmul.msk.f32.vlgmr.msra.gmra.mxu0 %vm1901_vm0, %v1900_v7  ;;  %v2098_v44 = vld [vmem:[%s7415_s16 + $0x8] sm:$0xff]  ;;  %v2097_v45 = vld [vmem:[%s7415_s16] sm:$0xff]  ;;  %v2167_v46 = vld [vmem:[%s7416_s18 + $0x18] sm:$0xff]  ;;  %s7429_s9 = sld [smem:[#allocation33_spill]]  ;;  %s7433_s16 = smov 72  }
  0xa3   : > { %2091 = vmatpush.msrb.mxu2 %v2070_v31  ;;  %2116 = vmatpush.msrb.mxu0 %v2098_v44  ;;  %v2166_v47 = vld [vmem:[%s7416_s18 + $0x10] sm:$0xff]  ;;  %v2165_v48 = vld [vmem:[%s7416_s18 + $0x8] sm:$0xff]  ;;  %v2164_v49 = vld [vmem:[%s7416_s18] sm:$0xff]  ;;  %s7430_s12 = sld [smem:[#allocation34_spill]]  ;;  %s7445_s29 = smov 16  }
  0xa4   : > { %2191 = vmatpush.msrb.mxu3 %v2167_v46  ;;  %v2072_v50 = vld [vmem:[%s7417_s26] sm:$0x1]  ;;  %s1871_s10 = scalar_lea.vmem %s7418_s0, %s6383_s22  ;;  %s7298_s26 = smov 120  }
  0xa5   : > { %2117 = vmatpush.msrb.mxu0 %v2097_v45  ;;  %v2128_v54 = vld [vmem:[%s1871_s10] sm:$0xff]  ;;  %v2129_v57 = vld [vmem:[%s1871_s10 + $0x8] sm:$0xff]  ;;  %s7324_s0 = smov 88   ;;  %s7314_s10 = smov 72  }
  0xa6   : > { %2192 = vmatpush.msrb.mxu3 %v2166_v47  ;;  %v5723_v60 = vld [vmem:[%s7419_s7] ss:$0 sm:$0xff]  ;;  %s7441_s30 = sld [smem:[#allocation7_spill]] }
  0xa7   : > { %s7442_s28 = sld [smem:[#allocation22_spill]] }
  0xa8   : > { %2193 = vmatpush.msrb.mxu3 %v2165_v48 }
  0xaa   : > { %2194 = vmatpush.msrb.mxu3 %v2164_v49 }
  0xac   : > { %s1876_s2 = scalar_lea.vmem %s7441_s30, %s6383_s22  ;;  %s7446_s30 = sld [smem:[#allocation37_spill]] }
  0xad   : > { %s7443_s11 = smov %s7442_s28 }
 0x108   : > { %v1928_v10 = vpop.permute.xlu0 %1927 }
 0x110   : > { %v2041_v27 = vpop.permute.xlu0 %2040 }
 0x11f   : > { %v1922_v11 = vpop.f32.mrf.mxu0 }
 0x120   : > { %v1931_v12 = vsel %vm1930_vm1, %v1922_v11, %v1928_v10 }
 0x121   : > { %5374 = vmatmul.msk.f32.vlgmr.msra.gmra.mxu1 %vm1934_vm2, %v1931_v12 }
 0x122   : > { %2028 = vmatpush.msra.mxu1 %v1897_v1 }
 0x124   : > { %2029 = vmatpush.msra.mxu1 %v1896_v2 }
 0x126   : > { %2030 = vmatpush.msra.mxu1 %v1895_v3 }
 0x128   : > { %2031 = vmatpush.msra.mxu1 %v1894_v4 }
 0x12a   : > { %2032 = vmatpush.msra.mxu1 %v1893_v5 }
 0x12c   : > { %2033 = vmatpush.msra.mxu1 %v1892_v6 }
 0x19e   : > { %v1955_v16 = vpop.f32.mrf.mxu1 }
 0x19f   : > { %v1956_v17 = vadd.f32 %v1955_v16, %v1933_v15 }
 0x1a1   : > { %v1958_v18 = vmax.f32 %v1956_v17, 0.0 }
 0x1a3   : > { %5375 = vmatmul.msk.f32.vlgmr.msrb.gmra.mxu1 %vm1962_vm3, %v1958_v18 }
 0x1ab   : > { %5377 = vmatmul.msk.f32.vlgmr.msra.gmra.mxu1 %vm1901_vm0, %v2014_v19 }
 0x220   : > { %v1983_v24 = vpop.f32.mrf.mxu1 }
 0x221   : > { %v1984_v25 = vadd.f32 %v1983_v24, %v1961_v23 }
 0x223   : > { %v1986_v26 = vmax.f32 %v1984_v25, 0.0 }
 0x225   : > { %5376 = vmatmul.msk.f32.vlgmr.msra.gmra.mxu3 %vm1962_vm3, %v1986_v26 }
 0x228   : > { %v2035_v28 = vpop.f32.mrf.mxu1 }
 0x229   : > { %v2043_v29 = vsel %vm1930_vm1, %v2035_v28, %v2041_v27 }
 0x22a   : > { %5378 = vmatmul.msk.f32.vlgmr.msra.gmra.mxu2 %vm1934_vm2, %v2043_v29 }
 0x22b   : > { %5381 = vmatpush.msk.msra.mxu2 %vm2137_vm4, %v2127_v32 }
 0x22d   : > { %2156 = vmatpush.msra.mxu2 %v2126_v33 }
 0x2a8   : > { %v2009_v34 = vpop.f32.mrf.mxu3 }
 0x2a9   : > { %v2012_v35 = vmul.f32 1.442695, %v2009_v34 }
 0x2ab   : > { %5757 = vpow2.f32 %v2012_v35 }
 0x2ad   : > { %v2066_v37 = vpop.f32.mrf.mxu2 }
 0x2ae   : > { %v2067_v38 = vadd.f32 %v2066_v37, %v2045_v36 }
 0x2b0   : > { %v2069_v39 = vmax.f32 %v2067_v38, 0.0 }
 0x2b1   : > { %v5758_v40 = vpop.eup %5757 }
 0x2b2   : > { %5379 = vmatmul.msk.f32.vlgmr.msrb.gmra.mxu2 %vm1962_vm3, %v2069_v39  ;;  %v2122_v41 = vmul.f32 0.35355338, %v5758_v40 }
 0x2b4   : > { %5554 = vpush %v2122_v41 }
 0x2ba   : > { %5382 = vmatmul.msk.f32.vlgmr.msra.gmra.mxu2 %vm2130_vm5, %v2124_v42 }
 0x2c2   : > { %5383 = vmatmul.msk.f32.gmra.mxu2 %vm2130_vm5, %v2125_v43 }
 0x2e5   : > { %s5555_s15 = spop %5554 }
 0x2e6   : > { %v6409_v63 = vstv %s5555_s15  ;;  %s7312_s15 = smov 80  }
 0x335   : > { %v2093_v51 = vpop.f32.mrf.mxu2 }
 0x336   : > { %v2094_v52 = vadd.f32 %v2093_v51, %v2072_v50 }
 0x338   : > { %v2096_v53 = vmax.f32 %v2094_v52, 0.0 }
 0x33a   : > { %5380 = vmatmul.msk.f32.vlgmr.msrb.gmra.mxu0 %vm1962_vm3, %v2096_v53 }
 0x33d   : > { %v2158_v55 = vpop.f32.mrf.mxu2 }
 0x33e   : > { %v6400_v56 = vadd.f32 %v2158_v55, %v2128_v54 }
 0x340   : > { %5384 = vmatmul.msk.f32.vlgmr.msrb.gmra.mxu3 %vm2172_vm6, %v6400_v56 }
 0x345   : > { %v2161_v58 = vpop.f32.mrf.mxu2 }
 0x346   : > { %v6404_v59 = vadd.f32 %v2161_v58, %v2129_v57 }
 0x348   : > { %5385 = vmatmul.msk.f32.gmra.mxu3 %vm2172_vm6, %v6404_v59 }
 0x3b7   : > { %v2119_v19 = vpop.f32.mrf.mxu0 }
 0x3b8   : > { %v2123_v20 = vmul.f32 0.35355338, %v2119_v19 }
 0x3ba   : > { %v6445_v21 = vperm.slane %v2123_v20, 0 }
 0x3c3   : > { %v2196_v61 = vpop.f32.mrf.mxu3 }
 0x3c4   : > { %v2197_v62 = vadd.f32 %v5723_v60, %v2196_v61 }
 0x3c6   : > { %2216 = vrot.lane.b32.xlu0 %v2197_v62, %s7316_s23  ;;  %v2211_v0 = vmul.f32 %v6409_v63, %v2197_v62 }
 0x3c8   : > { %2310 = vrot.lane.b32.xlu2 %v2211_v0, %s7298_s26  ;;  %s7302_s26 = smov 112  }
 0x3cb   : > { %v2199_v1 = vpop.f32.mrf.mxu3 }
 0x3cc   : > { %v2200_v2 = vadd.f32 %v5723_v60, %v2199_v1 }
 0x3ce   : > { %2316 = vrot.lane.b32.xlu1 %v2200_v2, %s7324_s0  ;;  %2506 = vrot.lane.b32.xlu0 %v2197_v62, %s7314_s10  ;;  %v6416_v3 = vpack.i.bf16 %v2197_v62, %v2200_v2  ;;  %v2212_v4 = vmul.f32 %v6409_v63, %v2200_v2 }
 0x3d0   : > { %2218 = vrot.lane.b32.xlu2 %v2200_v2, %s7316_s23  ;;  %s7422_s23 = sld [smem:[#allocation26_spill]] }
 0x3d6   : > { %2410 = vrot.lane.b32.xlu0 %v2197_v62, %s7312_s15  ;;  %2314 = vrot.lane.b32.xlu1 %v2197_v62, %s7324_s0  ;;  %s7426_s0 = sld [smem:[#allocation31_spill]] }
 0x3d8   : > { %2508 = vrot.lane.b32.xlu2 %v2200_v2, %s7314_s10  ;;  %s7318_s10 = smov 24  }
 0x3de   : > { %2408 = vrot.lane.b32.xlu0 %v2212_v4, %s7302_s26  ;;  %2312 = vrot.lane.b32.xlu1 %v2212_v4, %s7420_s3 }
 0x3e0   : > { %2412 = vrot.lane.b32.xlu2 %v2200_v2, %s7312_s15  ;;  %s7320_s15 = smov 16  }
 0x3e6   : > { %2502 = vrot.lane.b32.xlu1 %v2211_v0, %s7300_s5 }
 0x3e8   : > { %2406 = vrot.lane.b32.xlu2 %v2211_v0, %s7302_s26  ;;  %s7306_s26 = smov 56  }
 0x3ee   : > { %2504 = vrot.lane.b32.xlu1 %v2212_v4, %s7300_s5  ;;  %s7304_s5 = smov 64  }
 0x422   : > { %v2311_v5 = vpop.permute.xlu2 %2310 }
 0x42a   : > { %v2219_v6 = vpop.permute.xlu2 %2218 }
 0x42b   : > { %5386 = vmatpush.xpose.msk.msrb.mxu1 %vm1934_vm2, %v2219_v6 }
 0x432   : > { %v2509_v7 = vpop.permute.xlu2 %2508 }
 0x438   : > { %v2217_v8 = vpop.permute.xlu0 %2216 }
 0x439   : > { %5387 = vmatpush.xpose.msk.msrb.mxu1 %vm1934_vm2, %v2217_v8 }
 0x43a   : > { %v2413_v9 = vpop.permute.xlu2 %2412 }
 0x43c   : > { %5388 = vmatmul.msk.f32.vlgmr.msrb.gmra.mxu1 %vm1934_vm2, %v2211_v0 }
 0x43d   : > { %5398 = vmatpush.xpose.msk.msra.mxu1 %vm1934_vm2, %v2413_v9 }
 0x440   : > { %v2317_v10 = vpop.permute.xlu1 %2316  ;;  %v2507_v11 = vpop.permute.xlu0 %2506 }
 0x441   : > { %5392 = vmatpush.xpose.msk.msrb.mxu2 %vm1934_vm2, %v2317_v10 }
 0x442   : > { %v2407_v14 = vpop.permute.xlu2 %2406 }
 0x444   : > { %5389 = vmatmul.msk.f32.gmra.mxu1 %vm1934_vm2, %v2212_v4 }
 0x448   : > { %v2411_v12 = vpop.permute.xlu0 %2410  ;;  %v2315_v13 = vpop.permute.xlu1 %2314 }
 0x449   : > { %5393 = vmatpush.xpose.msk.msrb.mxu2 %vm1934_vm2, %v2315_v13  ;;  %5399 = vmatpush.xpose.msk.msra.mxu1 %vm1934_vm2, %v2411_v12 }
 0x44c   : > { %5394 = vmatmul.msk.f32.vlgmr.msrb.gmra.mxu2 %vm1934_vm2, %v2311_v5  ;;  %5400 = vmatmul.msk.f32.vlgmr.msra.gmra.mxu1 %vm1934_vm2, %v2407_v14 }
 0x44d   : > { %5404 = vmatpush.xpose.msk.msra.mxu2 %vm1934_vm2, %v2509_v7 }
 0x450   : > { %v2313_v15 = vpop.permute.xlu1 %2312  ;;  %v2409_v16 = vpop.permute.xlu0 %2408 }
 0x451   : > { %5405 = vmatpush.xpose.msk.msra.mxu2 %vm1934_vm2, %v2507_v11 }
 0x454   : > { %5395 = vmatmul.msk.f32.gmra.mxu2 %vm1934_vm2, %v2313_v15  ;;  %5401 = vmatmul.msk.f32.gmra.mxu1 %vm1934_vm2, %v2409_v16 }
 0x458   : > { %v2503_v17 = vpop.permute.xlu1 %2502 }
 0x45c   : > { %5406 = vmatmul.msk.f32.vlgmr.msra.gmra.mxu2 %vm1934_vm2, %v2503_v17 }
 0x460   : > { %v2505_v18 = vpop.permute.xlu1 %2504 }
 0x464   : > { %5407 = vmatmul.msk.f32.gmra.mxu2 %vm1934_vm2, %v2505_v18 }
 0x4b9   : > { %v2247_v22 = vpop.f32.mrf.mxu1 }
 0x4ba   : > { %v2248_v23 = vadd.f32 %v2247_v22, %v6445_v21 }
 0x4bc   : > { %v2253_v24 = vsel %vm1962_vm3, %v2248_v23, -inf }
 0x4bd   : > { %2254 = vmax.xlane.f32.xlu2 %v2253_v24 }
 0x4c1   : > { %v2250_v25 = vpop.f32.mrf.mxu1 }
 0x4c2   : > { %v2251_v26 = vadd.f32 %v2250_v25, %v6445_v21 }
 0x4c4   : > { %v2256_v27 = vsel %vm1962_vm3, %v2251_v26, -inf }
 0x4c5   : > { %2257 = vmax.xlane.f32.xlu2 %v2256_v27 }
 0x4c9   : > { %v2439_v28 = vpop.f32.mrf.mxu1 }
 0x4ca   : > { %v2440_v29 = vadd.f32 %v2439_v28, %v6445_v21 }
 0x4cc   : > { %v2445_v30 = vsel %vm1962_vm3, %v2440_v29, -inf }
 0x4cd   : > { %2446 = vmax.xlane.f32.xlu2 %v2445_v30 }
 0x4cf   : > { %v2343_v31 = vpop.f32.mrf.mxu2 }
 0x4d0   : > { %v2344_v32 = vadd.f32 %v2343_v31, %v6445_v21 }
 0x4d1   : > { %v2442_v40 = vpop.f32.mrf.mxu1 }
 0x4d2   : > { %v2349_v33 = vsel %vm1962_vm3, %v2344_v32, -inf  ;;  %v6460_v41 = vadd.f32 %v2442_v40, %v6445_v21 }
 0x4d3   : > { %2350 = vmax.xlane.f32.xlu1 %v2349_v33 }
 0x4d4   : > { %v2448_v42 = vsel %vm1962_vm3, %v6460_v41, -inf }
 0x4d7   : > { %v2346_v34 = vpop.f32.mrf.mxu2 }
 0x4d8   : > { %v2347_v35 = vadd.f32 %v2346_v34, %v6445_v21 }
 0x4da   : > { %v2352_v36 = vsel %vm1962_vm3, %v2347_v35, -inf }
 0x4db   : > { %2353 = vmax.xlane.f32.xlu0 %v2352_v36 }
 0x4df   : > { %v2535_v37 = vpop.f32.mrf.mxu2 }
 0x4e0   : > { %v2536_v38 = vadd.f32 %v2535_v37, %v6445_v21 }
 0x4e2   : > { %v2541_v39 = vsel %vm1962_vm3, %v2536_v38, -inf }
 0x4e3   : > { %2542 = vmax.xlane.f32.xlu1 %v2541_v39 }
 0x4e7   : > { %v2538_v43 = vpop.f32.mrf.mxu2 }
 0x4e8   : > { %v6469_v44 = vadd.f32 %v2538_v43, %v6445_v21 }
 0x4ea   : > { %v2544_v45 = vsel %vm1962_vm3, %v6469_v44, -inf }
 0x4eb   : > { %2449 = vmax.xlane.f32.xlu1 %v2448_v42 }
 0x4ef   : > { %5647 = vrot.lane.b32.xlu0 %v6416_v3, %s7304_s5  ;;  %s7310_s5 = smov 40  }
 0x504   : > { %5642 = vrot.lane.b32.xlu1 %v6416_v3, %s7306_s26  ;;  %s7308_s26 = smov 48  }
 0x519   : > { %2545 = vmax.xlane.f32.xlu0 %v2544_v45 }
 0x530   : > { %v2255_v46 = vpop.xlane.xlu2 %2254 }
 0x531   : > { %v2259_v47 = vsub.f32 %v2248_v23, %v2255_v46 }
 0x533   : > { %v2261_v48 = vmul.f32 1.442695, %v2259_v47 }
 0x535   : > { %5759 = vpow2.f32 %v2261_v48 }
 0x538   : > { %v2258_v49 = vpop.xlane.xlu2 %2257 }
 0x539   : > { %v2260_v58 = vsub.f32 %v2251_v26, %v2258_v49 }
 0x53b   : > { %v6473_v50 = vpop.eup %5759  ;;  %v2263_v0 = vmul.f32 1.442695, %v2260_v58 }
 0x53c   : > { %v2265_v51 = vsel %vm1962_vm3, %v6473_v50, 0.0 }
 0x53d   : > { %2266 = vadd.xlane.f32.xlu0 %v2265_v51 }
 0x540   : > { %v2447_v52 = vpop.xlane.xlu2 %2446 }
 0x541   : > { %v2451_v53 = vsub.f32 %v2440_v29, %v2447_v52 }
 0x543   : > { %v2453_v54 = vmul.f32 1.442695, %v2451_v53 }
 0x545   : > { %5761 = vpow2.f32 %v2453_v54 }
 0x546   : > { %v2351_v55 = vpop.xlane.xlu1 %2350 }
 0x547   : > { %v2355_v57 = vsub.f32 %v2344_v32, %v2351_v55 }
 0x549   : > { %v2357_v60 = vmul.f32 1.442695, %v2355_v57 }
 0x54b   : > { %v6477_v61 = vpop.eup %5761  ;;  %5763 = vpow2.f32 %v2357_v60 }
 0x54c   : > { %v2457_v62 = vsel %vm1962_vm3, %v6477_v61, 0.0  ;;  %5765 = vpow2.f32 %v2263_v0 }
 0x54d   : > { %2458 = vadd.xlane.f32.xlu1 %v2457_v62 }
 0x54e   : > { %v2354_v1 = vpop.xlane.xlu0 %2353 }
 0x54f   : > { %v2356_v4 = vsub.f32 %v2347_v35, %v2354_v1 }
 0x551   : > { %v6481_v2 = vpop.eup %5763  ;;  %5652 = vrot.lane.b32.xlu0 %v6416_v3, %s7310_s5  ;;  %v2359_v6 = vmul.f32 1.442695, %v2356_v4  ;;  %s7322_s5 = smov 8  }
 0x552   : > { %v2361_v5 = vsel %vm1962_vm3, %v6481_v2, 0.0  ;;  %v6487_v8 = vpop.eup %5765 }
 0x553   : > { %2362 = vadd.xlane.f32.xlu2 %v2361_v5  ;;  %5767 = vpow2.f32 %v2359_v6  ;;  %v2268_v10 = vsel %vm1962_vm3, %v6487_v8, 0.0 }
 0x556   : > { %v2543_v7 = vpop.xlane.xlu1 %2542 }
 0x557   : > { %v2547_v9 = vsub.f32 %v2536_v38, %v2543_v7 }
 0x559   : > { %5657 = vrot.lane.b32.xlu0 %v6416_v3, %s7308_s26  ;;  %v2549_v11 = vmul.f32 1.442695, %v2547_v9  ;;  %v6493_v12 = vpop.eup %5767  ;;  %s7421_s26 = sld [smem:[#allocation25_spill]] }
 0x55a   : > { %v2364_v15 = vsel %vm1962_vm3, %v6493_v12, 0.0 }
 0x55b   : > { %2269 = vadd.xlane.f32.xlu2 %v2268_v10  ;;  %5769 = vpow2.f32 %v2549_v11 }
 0x55e   : > { %v2450_v18 = vpop.xlane.xlu1 %2449 }
 0x55f   : > { %v2452_v25 = vsub.f32 %v6460_v41, %v2450_v18  ;;  %v2205_v10 = vld [vmem:[%s7421_s26 + $0x18] sm:$0xff]  ;;  %v2204_v11 = vld [vmem:[%s7421_s26 + $0x10] sm:$0xff] }
 0x560   : > { %2650 = vmatpush.msrb.mxu1 %v2205_v10 }
 0x561   : > { %v5648_v13 = vpop.permute.xlu0 %5647  ;;  %v5770_v17 = vpop.eup %5769  ;;  %v2455_v27 = vmul.f32 1.442695, %v2452_v25 }
 0x562   : > { %v5649_v14 = vunpack.i.l.bf16 %v5648_v13  ;;  %v5650_v16 = vunpack.i.h.bf16 %v5648_v13  ;;  %v2553_v3 = vsel %vm1962_vm3, %v5770_v17, 0.0  ;;  %2651 = vmatpush.msrb.mxu1 %v2204_v11  ;;  %v2202_v13 = vld [vmem:[%s7421_s26] sm:$0xff] }
 0x563   : > { %2365 = vadd.xlane.f32.xlu2 %v2364_v15 }
 0x564   : > { %2301 = vmatpush.msra.mxu0 %v5649_v14 }
 0x566   : > { %2302 = vmatpush.msra.mxu0 %v5650_v16 }
 0x56b   : > { %2554 = vadd.xlane.f32.xlu2 %v2553_v3 }
 0x576   : > { %v5643_v19 = vpop.permute.xlu1 %5642 }
 0x577   : > { %v5644_v20 = vunpack.i.l.bf16 %v5643_v19  ;;  %v5645_v22 = vunpack.i.h.bf16 %v5643_v19 }
 0x579   : > { %2397 = vmatpush.msra.mxu3 %v5644_v20 }
 0x57b   : > { %2398 = vmatpush.msra.mxu3 %v5645_v22 }
 0x58c   : > { %v2546_v23 = vpop.xlane.xlu0 %2545 }
 0x58d   : > { %v2548_v24 = vsub.f32 %v6469_v44, %v2546_v23 }
 0x58f   : > { %v2551_v26 = vmul.f32 1.442695, %v2548_v24 }
 0x591   : > { %5771 = vpow2.f32 %v2551_v26  ;;  %v5724_v26 = vld [vmem:[%s7422_s23] ss:$0 sm:$0xff] }
 0x592   : > { %5773 = vpow2.f32 %v2455_v27 }
 0x597   : > { %v5772_v28 = vpop.eup %5771 }
 0x598   : > { %v2556_v29 = vsel %vm1962_vm3, %v5772_v28, 0.0  ;;  %v5774_v30 = vpop.eup %5773 }
 0x599   : > { %2557 = vadd.xlane.f32.xlu2 %v2556_v29  ;;  %v2460_v31 = vsel %vm1962_vm3, %v5774_v30, 0.0 }
 0x5a1   : > { %2461 = vadd.xlane.f32.xlu2 %v2460_v31 }
 0x5b0   : > { %v2267_v32 = vpop.xlane.xlu0 %2266 }
 0x5b1   : > { %5775 = vrcp.f32 %v2267_v32 }
 0x5b7   : > { %v5776_v33 = vpop.eup %5775 }
 0x5b8   : > { %v6503_v34 = vmul.f32 %v5776_v33, %v6473_v50 }
 0x5ba   : > { %5390 = vmatmul.msk.f32.vlgmr.msra.gmra.mxu0 %vm1962_vm3, %v6503_v34 }
 0x5c0   : > { %v2459_v45 = vpop.xlane.xlu1 %2458 }
 0x5c3   : > { %v5653_v35 = vpop.permute.xlu0 %5652 }
 0x5c4   : > { %v5654_v36 = vunpack.i.l.bf16 %v5653_v35  ;;  %v5655_v37 = vunpack.i.h.bf16 %v5653_v35 }
 0x5c6   : > { %2589 = vmatpush.msrb.mxu3 %v5654_v36  ;;  %v2363_v38 = vpop.xlane.xlu2 %2362  ;;  %v6022_v36 = vmov 32.0  }
 0x5c7   : > { %5777 = vrcp.f32 %v2363_v38 }
 0x5c8   : > { %2590 = vmatpush.msrb.mxu3 %v5655_v37 }
 0x5cb   : > { %v5658_v39 = vpop.permute.xlu0 %5657 }
 0x5cc   : > { %v5659_v40 = vunpack.i.l.bf16 %v5658_v39  ;;  %v5660_v43 = vunpack.i.h.bf16 %v5658_v39 }
 0x5cd   : > { %v5778_v41 = vpop.eup %5777 }
 0x5ce   : > { %v6508_v42 = vmul.f32 %v5778_v41, %v6481_v2  ;;  %2493 = vmatpush.msrb.mxu0 %v5659_v40  ;;  %v2270_v44 = vpop.xlane.xlu2 %2269 }
 0x5cf   : > { %5779 = vrcp.f32 %v2270_v44 }
 0x5d0   : > { %5396 = vmatmul.msk.f32.vlgmr.msra.gmra.mxu3 %vm1962_vm3, %v6508_v42  ;;  %2494 = vmatpush.msrb.mxu0 %v5660_v43  ;;  %5781 = vrcp.f32 %v2459_v45 }
 0x5d5   : > { %v5780_v46 = vpop.eup %5779 }
 0x5d6   : > { %v2366_v47 = vpop.xlane.xlu2 %2365  ;;  %v6513_v48 = vmul.f32 %v5780_v46, %v6487_v8  ;;  %v5782_v49 = vpop.eup %5781 }
 0x5d7   : > { %5783 = vrcp.f32 %v2366_v47  ;;  %v6518_v51 = vmul.f32 %v5782_v49, %v6477_v61 }
 0x5d8   : > { %5391 = vmatmul.msk.f32.gmra.mxu0 %vm1962_vm3, %v6513_v48 }
 0x5dd   : > { %v5784_v50 = vpop.eup %5783 }
 0x5de   : > { %v2555_v52 = vpop.xlane.xlu2 %2554  ;;  %v6521_v53 = vmul.f32 %v5784_v50, %v6493_v12  ;;  %v2203_v12 = vld [vmem:[%s7421_s26 + $0x8] sm:$0xff] }
 0x5df   : > { %5785 = vrcp.f32 %v2555_v52  ;;  %2652 = vmatpush.msrb.mxu1 %v2203_v12 }
 0x5e0   : > { %5397 = vmatmul.msk.f32.gmra.mxu3 %vm1962_vm3, %v6521_v53  ;;  %5402 = vmatmul.msk.f32.vlgmr.msrb.gmra.mxu0 %vm1962_vm3, %v6518_v51 }
 0x5e1   : > { %2653 = vmatpush.msrb.mxu1 %v2202_v13 }
 0x5e5   : > { %v5786_v54 = vpop.eup %5785 }
 0x5e6   : > { %v6527_v55 = vmul.f32 %v5786_v54, %v5770_v17 }
 0x5e8   : > { %5408 = vmatmul.msk.f32.vlgmr.msrb.gmra.mxu3 %vm1962_vm3, %v6527_v55 }
 0x60c   : > { %v2558_v57 = vpop.xlane.xlu2 %2557 }
 0x60d   : > { %5787 = vrcp.f32 %v2558_v57 }
 0x613   : > { %v5788_v58 = vpop.eup %5787 }
 0x614   : > { %v2462_v60 = vpop.xlane.xlu2 %2461  ;;  %v6531_v61 = vmul.f32 %v5788_v58, %v5772_v28 }
 0x615   : > { %5789 = vrcp.f32 %v2462_v60 }
 0x616   : > { %5409 = vmatmul.msk.f32.gmra.mxu3 %vm1962_vm3, %v6531_v61  ;;  %5791 = vrcp.f32 %v6022_v36  ;;  %v2810_v36 = vld [vmem:[%s7426_s0 + $0x10] sm:$0xff] }
 0x61b   : > { %v5790_v62 = vpop.eup %5789 }
 0x61c   : > { %v6535_v0 = vmul.f32 %v5790_v62, %v5774_v30  ;;  %v5792_v37 = vpop.eup %5791 }
 0x61d   : > { %v2699_v38 = vmul.f32 32.0, %v5792_v37  ;;  %vm2703_vm8 = vweird.f32 %v5792_v37 }
 0x61e   : > { %5403 = vmatmul.msk.f32.gmra.mxu0 %vm1962_vm3, %v6535_v0 }
 0x61f   : > { %v2700_v39 = vsub.f32 1.0, %v2699_v38  ;;  %v2808_v38 = vld [vmem:[%s7426_s0] sm:$0xff] }
 0x621   : > { %v2701_v40 = vmul.f32 %v5792_v37, %v2700_v39  ;;  %v5727_v39 = vld [vmem:[%s7427_s6] ss:$0 sm:$0xff] }
 0x623   : > { %v2702_v41 = vadd.f32 %v5792_v37, %v2701_v40 }
 0x637   : > { %v2304_v1 = vpop.f32.mrf.mxu0 }
 0x653   : > { %v2400_v2 = vpop.f32.mrf.mxu3 }
 0x654   : > { %2600 = vrot.lane.b32.xlu0 %v2400_v2, %s7322_s5 }
 0x655   : > { %v2307_v4 = vpop.f32.mrf.mxu0 }
 0x65d   : > { %v2496_v5 = vpop.f32.mrf.mxu0 }
 0x65e   : > { %2608 = vrot.lane.b32.xlu2 %v2496_v5, %s7320_s15 }
 0x663   : > { %v2403_v6 = vpop.f32.mrf.mxu3 }
 0x664   : > { %2602 = vrot.lane.b32.xlu0 %v2403_v6, %s7322_s5  ;;  %s7425_s5 = sld [smem:[#allocation28_spill]] }
 0x66b   : > { %v2592_v7 = vpop.f32.mrf.mxu3 }
 0x66c   : > { %2616 = vrot.lane.b32.xlu0 %v2592_v7, %s7318_s10 }
 0x699   : > { %v2595_v8 = vpop.f32.mrf.mxu3 }
 0x69a   : > { %2618 = vrot.lane.b32.xlu0 %v2595_v8, %s7318_s10  ;;  %s7423_s10 = sld [smem:[#allocation29_spill]] }
 0x69b   : > { %v2499_v9 = vpop.f32.mrf.mxu0 }
 0x69c   : > { %2610 = vrot.lane.b32.xlu1 %v2499_v9, %s7320_s15  ;;  %s7424_s15 = sld [smem:[#allocation27_spill]] }
 0x6a0   : > { %v2756_v57 = vld [vmem:[%s7423_s10 + $0x18] sm:$0xff]  ;;  %v2755_v58 = vld [vmem:[%s7423_s10 + $0x10] sm:$0xff]  ;;  %v2754_v60 = vld [vmem:[%s7423_s10 + $0x8] sm:$0xff] }
 0x6a1   : > { %2779 = vmatpush.msra.mxu0 %v2756_v57  ;;  %v2753_v62 = vld [vmem:[%s7423_s10] sm:$0xff] }
 0x6a2   : > { %v5725_v11 = vld [vmem:[%s7424_s15] ss:$0 sm:$0xff] }
 0x6a3   : > { %2780 = vmatpush.msra.mxu0 %v2755_v58 }
 0x6a5   : > { %2781 = vmatpush.msra.mxu0 %v2754_v60 }
 0x6a7   : > { %2782 = vmatpush.msra.mxu0 %v2753_v62 }
 0x6b8   : > { %v2609_v17 = vpop.permute.xlu2 %2608 }
 0x6c6   : > { %v2601_v14 = vpop.permute.xlu0 %2600 }
 0x6c7   : > { %v2622_v16 = vsel %vm1934_vm2, %v2304_v1, %v2601_v14  ;;  %v5726_v14 = vld [vmem:[%s7425_s5] ss:$0 sm:$0xff] }
 0x6c8   : > { %v2624_v18 = vsel %vm1962_vm3, %v2622_v16, %v2609_v17 }
 0x6d6   : > { %v2603_v15 = vpop.permute.xlu0 %2602 }
 0x6d7   : > { %v2623_v20 = vsel %vm1934_vm2, %v2307_v4, %v2603_v15 }
 0x6de   : > { %v2617_v3 = vpop.permute.xlu0 %2616 }
 0x6df   : > { %v2627_v19 = vsel %vm2626_vm7, %v2624_v18, %v2617_v3 }
 0x6e0   : > { %5410 = vmatmul.msk.f32.vlgmr.msrb.gmra.mxu1 %vm2172_vm6, %v2627_v19 }
 0x70c   : > { %v2619_v23 = vpop.permute.xlu0 %2618 }
 0x70e   : > { %v2611_v22 = vpop.permute.xlu1 %2610 }
 0x70f   : > { %v2625_v24 = vsel %vm1962_vm3, %v2623_v20, %v2611_v22 }
 0x710   : > { %v2628_v25 = vsel %vm2626_vm7, %v2625_v24, %v2619_v23 }
 0x711   : > { %5411 = vmatmul.msk.f32.gmra.mxu1 %vm2172_vm6, %v2628_v25 }
 0x75d   : > { %v2655_v27 = vpop.f32.mrf.mxu1 }
 0x75e   : > { %v2656_v28 = vadd.f32 %v5724_v26, %v2655_v27 }
 0x760   : > { %v2688_v29 = vadd.f32 %v2656_v28, %v6400_v56  ;;  %v6562_v56 = vsel %vm2703_vm8, %v5792_v37, %v2702_v41  ;;  %v2809_v37 = vld [vmem:[%s7426_s0 + $0x8] sm:$0xff] }
 0x762   : > { %v2692_v30 = vsel %vm2172_vm6, %v2688_v29, 0.0 }
 0x763   : > { %2693 = vadd.xlane.f32.xlu2 %v2692_v30  ;;  %v2815_v30 = vld [vmem:[%s7426_s0 + $0x38] sm:$0xff] }
 0x764   : > { %2834 = vmatpush.msrb.mxu2 %v2815_v30  ;;  %v5416_v30 = vld [vmem:[%s7416_s18 + $0x20] sm:$0xff] }
 0x78e   : > { %v2658_v31 = vpop.f32.mrf.mxu1 }
 0x78f   : > { %v2659_v32 = vadd.f32 %v5724_v26, %v2658_v31  ;;  %v2814_v31 = vld [vmem:[%s7426_s0 + $0x30] sm:$0xff] }
 0x790   : > { %2835 = vmatpush.msrb.mxu2 %v2814_v31 }
 0x791   : > { %v2689_v33 = vadd.f32 %v2659_v32, %v6404_v59  ;;  %v2813_v32 = vld [vmem:[%s7426_s0 + $0x28] sm:$0xff] }
 0x792   : > { %2836 = vmatpush.msrb.mxu2 %v2813_v32 }
 0x793   : > { %v2695_v35 = vsel %vm2172_vm6, %v2689_v33, 0.0 }
 0x794   : > { %2696 = vadd.xlane.f32.xlu0 %v2695_v35  ;;  %v2811_v35 = vld [vmem:[%s7426_s0 + $0x18] sm:$0xff] }
 0x7d6   : > { %v2694_v43 = vpop.xlane.xlu2 %2693 }
 0x7d7   : > { %v2705_v44 = vmul.f32 %v6562_v56, %v2694_v43 }
 0x7d9   : > { %v2707_v59 = vsub.f32 %v2688_v29, %v2705_v44 }
 0x7db   : > { %v2709_v45 = vmul.f32 %v2707_v59, %v2707_v59 }
 0x7dd   : > { %v2711_v46 = vsel %vm2172_vm6, %v2709_v45, 0.0 }
 0x7de   : > { %2712 = vadd.xlane.f32.xlu1 %v2711_v46 }
 0x807   : > { %v2697_v47 = vpop.xlane.xlu0 %2696 }
 0x808   : > { %v2706_v49 = vmul.f32 %v6562_v56, %v2697_v47 }
 0x80a   : > { %v2708_v50 = vsub.f32 %v2689_v33, %v2706_v49  ;;  %v2812_v33 = vld [vmem:[%s7426_s0 + $0x20] sm:$0xff] }
 0x80b   : > { %2837 = vmatpush.msrb.mxu2 %v2812_v33 }
 0x80c   : > { %v2710_v52 = vmul.f32 %v2708_v50, %v2708_v50 }
 0x80d   : > { %2838 = vmatpush.msrb.mxu2 %v2811_v35 }
 0x80e   : > { %v2714_v54 = vsel %vm2172_vm6, %v2710_v52, 0.0 }
 0x80f   : > { %2715 = vadd.xlane.f32.xlu2 %v2714_v54  ;;  %2839 = vmatpush.msrb.mxu2 %v2810_v36 }
 0x811   : > { %2840 = vmatpush.msrb.mxu2 %v2809_v37 }
 0x813   : > { %2841 = vmatpush.msrb.mxu2 %v2808_v38 }
 0x851   : > { %v2713_v1 = vpop.xlane.xlu1 %2712 }
 0x852   : > { %v2717_v2 = vmul.f32 %v2713_v1, %v6562_v56 }
 0x854   : > { %v2719_v4 = vadd.f32 1e-05, %v2717_v2 }
 0x856   : > { %5793 = vrsqrt.f32 %v2719_v4  ;;  %vm2727_vm10 = vweird.f32 %v2719_v4 }
 0x85c   : > { %v5794_v5 = vpop.eup %5793 }
 0x85d   : > { %v2722_v6 = vmul.f32 %v5794_v5, %v2719_v4  ;;  %vm2728_vm9 = vweird.f32 %v5794_v5 }
 0x85e   : > { %vm2729_vm11 = vmor %vm2727_vm10, %vm2728_vm9 }
 0x85f   : > { %v2723_v7 = vmul.f32 %v5794_v5, %v2722_v6 }
 0x861   : > { %v2724_v8 = vmul.f32 0.5, %v2723_v7 }
 0x863   : > { %v2725_v9 = vsub.f32 1.5, %v2724_v8  ;;  %v5728_v8 = vld [vmem:[%s7428_s8] ss:$0 sm:$0xff] }
 0x865   : > { %v2726_v10 = vmul.f32 %v5794_v5, %v2725_v9 }
 0x867   : > { %v2730_v12 = vsel %vm2729_vm11, %v5794_v5, %v2726_v10 }
 0x868   : > { %v2741_v13 = vmul.f32 %v2730_v12, %v2707_v59 }
 0x86a   : > { %v2746_v15 = vmul.f32 %v5725_v11, %v2741_v13 }
 0x86c   : > { %v6575_v16 = vadd.f32 %v5726_v14, %v2746_v15 }
 0x86e   : > { %5412 = vmatmul.msk.f32.vlgmr.msra.gmra.mxu0 %vm2172_vm6, %v6575_v16 }
 0x882   : > { %v2716_v17 = vpop.xlane.xlu2 %2715 }
 0x883   : > { %v2718_v3 = vmul.f32 %v2716_v17, %v6562_v56 }
 0x885   : > { %v2720_v18 = vadd.f32 1e-05, %v2718_v3 }
 0x887   : > { %5795 = vrsqrt.f32 %v2720_v18  ;;  %vm2737_vm13 = vweird.f32 %v2720_v18 }
 0x88d   : > { %v5796_v19 = vpop.eup %5795 }
 0x88e   : > { %v2732_v20 = vmul.f32 %v5796_v19, %v2720_v18  ;;  %vm2738_vm12 = vweird.f32 %v5796_v19 }
 0x88f   : > { %vm2739_vm14 = vmor %vm2737_vm13, %vm2738_vm12 }
 0x890   : > { %v2733_v22 = vmul.f32 %v5796_v19, %v2732_v20 }
 0x892   : > { %v2734_v23 = vmul.f32 0.5, %v2733_v22 }
 0x894   : > { %v2735_v24 = vsub.f32 1.5, %v2734_v23 }
 0x896   : > { %v2736_v25 = vmul.f32 %v5796_v19, %v2735_v24 }
 0x898   : > { %v2740_v26 = vsel %vm2739_vm14, %v5796_v19, %v2736_v25 }
 0x899   : > { %v2742_v27 = vmul.f32 %v2740_v26, %v2708_v50 }
 0x89b   : > { %v2747_v28 = vmul.f32 %v5725_v11, %v2742_v27  ;;  %v5419_v27 = vld [vmem:[%s7416_s18 + $0x38] sm:$0xff] }
 0x89c   : > { %2935 = vmatpush.msra.mxu3 %v5419_v27 }
 0x89d   : > { %v2752_v29 = vadd.f32 %v5726_v14, %v2747_v28  ;;  %v5418_v28 = vld [vmem:[%s7416_s18 + $0x30] sm:$0xff] }
 0x89e   : > { %2936 = vmatpush.msra.mxu3 %v5418_v28 }
 0x89f   : > { %5413 = vmatmul.msk.f32.gmra.mxu0 %vm2172_vm6, %v2752_v29 }
 0x8eb   : > { %v2784_v40 = vpop.f32.mrf.mxu0 }
 0x8ec   : > { %v2785_v41 = vadd.f32 %v5727_v39, %v2784_v40 }
 0x8ee   : > { %v2790_v43 = vmul.f32 %v2785_v41, %v2785_v41 }
 0x8f0   : > { %v2792_v44 = vmul.f32 %v2790_v43, %v2785_v41 }
 0x8f2   : > { %v2794_v59 = vmul.f32 0.044715, %v2792_v44 }
 0x8f4   : > { %v2796_v45 = vadd.f32 %v2794_v59, %v2785_v41  ;;  %v5730_v59 = vld [vmem:[%s7430_s12] ss:$0 sm:$0xff] }
 0x8f6   : > { %v2798_v46 = vmul.f32 0.7978846, %v2796_v45 }
 0x8f8   : > { %5797 = vtanh.f32 %v2798_v46 }
 0x8fe   : > { %v5798_v47 = vpop.eup %5797 }
 0x8ff   : > { %v2802_v49 = vadd.f32 1.0, %v5798_v47 }
 0x901   : > { %v2804_v50 = vmul.f32 0.5, %v2802_v49 }
 0x903   : > { %v2806_v52 = vmul.f32 %v2804_v50, %v2785_v41  ;;  %v5729_v41 = vld [vmem:[%s7429_s9] ss:$0 sm:$0xff] }
 0x905   : > { %5414 = vmatmul.msk.f32.vlgmr.msrb.gmra.mxu2 %vm2685_vm15, %v2806_v52 }
 0x91c   : > { %v2787_v54 = vpop.f32.mrf.mxu0 }
 0x91d   : > { %v2788_v57 = vadd.f32 %v5727_v39, %v2787_v54 }
 0x91f   : > { %v2791_v58 = vmul.f32 %v2788_v57, %v2788_v57 }
 0x921   : > { %v2793_v60 = vmul.f32 %v2791_v58, %v2788_v57 }
 0x923   : > { %v2795_v62 = vmul.f32 0.044715, %v2793_v60 }
 0x925   : > { %v2797_v1 = vadd.f32 %v2795_v62, %v2788_v57 }
 0x927   : > { %v2799_v2 = vmul.f32 0.7978846, %v2797_v1 }
 0x929   : > { %5799 = vtanh.f32 %v2799_v2 }
 0x92f   : > { %v5800_v4 = vpop.eup %5799 }
 0x930   : > { %v2803_v5 = vadd.f32 1.0, %v5800_v4 }
 0x932   : > { %v2805_v6 = vmul.f32 0.5, %v2803_v5 }
 0x934   : > { %v2807_v7 = vmul.f32 %v2805_v6, %v2788_v57  ;;  %v5731_v6 = vld [vmem:[%s7419_s7 + $0x1] ss:$0 sm:$0xff]  ;;  %s7435_s7 = smov 112  }
 0x936   : > { %5415 = vmatmul.msk.f32.gmra.mxu2 %vm2685_vm15, %v2807_v7 }
 0x988   : > { %v2843_v9 = vpop.f32.mrf.mxu2 }
 0x989   : > { %v2844_v10 = vadd.f32 %v5728_v8, %v2843_v9 }
 0x98b   : > { %v2849_v11 = vadd.f32 %v2844_v10, %v6575_v16 }
 0x98d   : > { %v2853_v12 = vsel %vm2172_vm6, %v2849_v11, 0.0 }
 0x98e   : > { %2854 = vadd.xlane.f32.xlu0 %v2853_v12 }
 0x9b9   : > { %v2846_v13 = vpop.f32.mrf.mxu2 }
 0x9ba   : > { %v2847_v14 = vadd.f32 %v5728_v8, %v2846_v13 }
 0x9bc   : > { %v2850_v15 = vadd.f32 %v2847_v14, %v2752_v29  ;;  %v5417_v29 = vld [vmem:[%s7416_s18 + $0x28] sm:$0xff]  ;;  %s7434_s18 = smov 80  }
 0x9bd   : > { %2937 = vmatpush.msra.mxu3 %v5417_v29 }
 0x9be   : > { %v2856_v17 = vsel %vm2172_vm6, %v2850_v15, 0.0 }
 0x9bf   : > { %2857 = vadd.xlane.f32.xlu2 %v2856_v17  ;;  %2938 = vmatpush.msra.mxu3 %v5416_v30 }
 0xa01   : > { %v2855_v3 = vpop.xlane.xlu0 %2854 }
 0xa02   : > { %v2859_v18 = vmul.f32 %v2855_v3, %v6562_v56 }
 0xa04   : > { %v2861_v19 = vsub.f32 %v2849_v11, %v2859_v18 }
 0xa06   : > { %v2863_v20 = vmul.f32 %v2861_v19, %v2861_v19 }
 0xa08   : > { %v2865_v16 = vsel %vm2172_vm6, %v2863_v20, 0.0 }
 0xa09   : > { %2866 = vadd.xlane.f32.xlu0 %v2865_v16 }
 0xa32   : > { %v2858_v22 = vpop.xlane.xlu2 %2857 }
 0xa33   : > { %v2860_v23 = vmul.f32 %v2858_v22, %v6562_v56 }
 0xa35   : > { %v2862_v24 = vsub.f32 %v2850_v15, %v2860_v23 }
 0xa37   : > { %v2864_v25 = vmul.f32 %v2862_v24, %v2862_v24 }
 0xa39   : > { %v2868_v26 = vsel %vm2172_vm6, %v2864_v25, 0.0 }
 0xa3a   : > { %2869 = vadd.xlane.f32.xlu2 %v2868_v26 }
 0xa7c   : > { %v2867_v31 = vpop.xlane.xlu0 %2866 }
 0xa7d   : > { %v2871_v32 = vmul.f32 %v2867_v31, %v6562_v56 }
 0xa7f   : > { %v2873_v33 = vadd.f32 1e-05, %v2871_v32 }
 0xa81   : > { %5801 = vrsqrt.f32 %v2873_v33  ;;  %vm2881_vm9 = vweird.f32 %v2873_v33 }
 0xa87   : > { %v5802_v35 = vpop.eup %5801 }
 0xa88   : > { %v2876_v36 = vmul.f32 %v5802_v35, %v2873_v33  ;;  %vm2882_vm8 = vweird.f32 %v5802_v35 }
 0xa89   : > { %vm2883_vm10 = vmor %vm2881_vm9, %vm2882_vm8 }
 0xa8a   : > { %v2877_v37 = vmul.f32 %v5802_v35, %v2876_v36 }
 0xa8c   : > { %v2878_v38 = vmul.f32 0.5, %v2877_v37 }
 0xa8e   : > { %v2879_v39 = vsub.f32 1.5, %v2878_v38 }
 0xa90   : > { %v2880_v40 = vmul.f32 %v5802_v35, %v2879_v39 }
 0xa92   : > { %v2884_v43 = vsel %vm2883_vm10, %v5802_v35, %v2880_v40 }
 0xa93   : > { %v2895_v44 = vmul.f32 %v2884_v43, %v2861_v19 }
 0xa95   : > { %v2900_v45 = vmul.f32 %v5729_v41, %v2895_v44 }
 0xa97   : > { %v6607_v46 = vadd.f32 %v5730_v59, %v2900_v45 }
 0xa99   : > { %5421 = vmatmul.msk.f32.vlgmr.msra.gmra.mxu3 %vm2172_vm6, %v6607_v46 }
 0xaad   : > { %v2870_v47 = vpop.xlane.xlu2 %2869 }
 0xaae   : > { %v2872_v49 = vmul.f32 %v2870_v47, %v6562_v56 }
 0xab0   : > { %v2874_v50 = vadd.f32 1e-05, %v2872_v49 }
 0xab2   : > { %5803 = vrsqrt.f32 %v2874_v50  ;;  %vm2891_vm12 = vweird.f32 %v2874_v50 }
 0xab8   : > { %v5804_v52 = vpop.eup %5803 }
 0xab9   : > { %v2886_v54 = vmul.f32 %v5804_v52, %v2874_v50  ;;  %vm2892_vm11 = vweird.f32 %v5804_v52 }
 0xaba   : > { %vm2893_vm13 = vmor %vm2891_vm12, %vm2892_vm11 }
 0xabb   : > { %v2887_v57 = vmul.f32 %v5804_v52, %v2886_v54 }
 0xabd   : > { %v2888_v58 = vmul.f32 0.5, %v2887_v57 }
 0xabf   : > { %v2889_v60 = vsub.f32 1.5, %v2888_v58 }
 0xac1   : > { %v2890_v62 = vmul.f32 %v5804_v52, %v2889_v60 }
 0xac3   : > { %v2894_v1 = vsel %vm2893_vm13, %v5804_v52, %v2890_v62 }
 0xac4   : > { %v2896_v2 = vmul.f32 %v2894_v1, %v2862_v24 }
 0xac6   : > { %v2901_v4 = vmul.f32 %v5729_v41, %v2896_v2 }
 0xac8   : > { %v6612_v5 = vadd.f32 %v5730_v59, %v2901_v4 }
 0xaca   : > { %5422 = vmatmul.msk.f32.gmra.mxu3 %vm2172_vm6, %v6612_v5 }
 0xb1c   : > { %v2940_v7 = vpop.f32.mrf.mxu3 }
 0xb1d   : > { %v2941_v8 = vadd.f32 %v5731_v6, %v2940_v7 }
 0xb1f   : > { %3055 = vrot.lane.b32.xlu1 %v2941_v8, %s7431_s13  ;;  %v2953_v9 = vmul.f32 %v2941_v8, %v6409_v63 }
 0xb21   : > { %3051 = vrot.lane.b32.xlu2 %v2953_v9, %s7420_s3 }
 0xb27   : > { %2957 = vrot.lane.b32.xlu1 %v2941_v8, %s7432_s14 }
 0xb2f   : > { %3247 = vrot.lane.b32.xlu1 %v2941_v8, %s7433_s16 }
 0xb37   : > { %3151 = vrot.lane.b32.xlu1 %v2941_v8, %s7434_s18 }
 0xb4d   : > { %v2943_v10 = vpop.f32.mrf.mxu3 }
 0xb4e   : > { %v2944_v11 = vadd.f32 %v5731_v6, %v2943_v10 }
 0xb50   : > { %3057 = vrot.lane.b32.xlu0 %v2944_v11, %s7431_s13  ;;  %v2954_v12 = vmul.f32 %v2944_v11, %v6409_v63  ;;  %v6625_v13 = vpack.i.bf16 %v2941_v8, %v2944_v11 }
 0xb52   : > { %3149 = vrot.lane.b32.xlu1 %v2954_v12, %s7435_s7  ;;  %3053 = vrot.lane.b32.xlu2 %v2954_v12, %s7420_s3 }
 0xb58   : > { %2959 = vrot.lane.b32.xlu0 %v2944_v11, %s7432_s14 }
 0xb5a   : > { %3243 = vrot.lane.b32.xlu2 %v2953_v9, %s7436_s19 }
 0xb60   : > { %3249 = vrot.lane.b32.xlu0 %v2944_v11, %s7433_s16 }
 0xb62   : > { %3245 = vrot.lane.b32.xlu2 %v2954_v12, %s7436_s19 }
 0xb68   : > { %3153 = vrot.lane.b32.xlu0 %v2944_v11, %s7434_s18 }
 0xb70   : > { %3147 = vrot.lane.b32.xlu0 %v2953_v9, %s7435_s7 }
 0xb7b   : > { %v3052_v17 = vpop.permute.xlu2 %3051 }
 0xb91   : > { %v3056_v14 = vpop.permute.xlu1 %3055 }
 0xb99   : > { %v2958_v3 = vpop.permute.xlu1 %2957 }
 0xba1   : > { %v3248_v16 = vpop.permute.xlu1 %3247 }
 0xba9   : > { %v3152_v24 = vpop.permute.xlu1 %3151 }
 0xbac   : > { %v3054_v19 = vpop.permute.xlu2 %3053 }
 0xbb4   : > { %v3244_v22 = vpop.permute.xlu2 %3243 }
 0xbbc   : > { %v3246_v25 = vpop.permute.xlu2 %3245 }
 0xbc2   : > { %v3058_v15 = vpop.permute.xlu0 %3057 }
 0xbc3   : > { %5434 = vmatpush.xpose.msk.msra.mxu2 %vm1934_vm2, %v3058_v15 }
 0xbc4   : > { %v3150_v27 = vpop.permute.xlu1 %3149 }
 0xbc7   : > { %5435 = vmatpush.xpose.msk.msra.mxu2 %vm1934_vm2, %v3056_v14 }
 0xbca   : > { %v2960_v18 = vpop.permute.xlu0 %2959  ;;  %5436 = vmatmul.msk.f32.vlgmr.msra.gmra.mxu2 %vm1934_vm2, %v3052_v17 }
 0xbcb   : > { %5428 = vmatpush.xpose.msk.msra.mxu1 %vm1934_vm2, %v2960_v18 }
 0xbcf   : > { %5429 = vmatpush.xpose.msk.msra.mxu1 %vm1934_vm2, %v2958_v3 }
 0xbd2   : > { %5430 = vmatmul.msk.f32.vlgmr.msra.gmra.mxu1 %vm1934_vm2, %v2953_v9  ;;  %v3250_v20 = vpop.permute.xlu0 %3249  ;;  %5437 = vmatmul.msk.f32.gmra.mxu2 %vm1934_vm2, %v3054_v19 }
 0xbd3   : > { %5446 = vmatpush.xpose.msk.msrb.mxu2 %vm1934_vm2, %v3250_v20 }
 0xbd7   : > { %5447 = vmatpush.xpose.msk.msrb.mxu2 %vm1934_vm2, %v3248_v16 }
 0xbda   : > { %v3154_v23 = vpop.permute.xlu0 %3153  ;;  %5431 = vmatmul.msk.f32.gmra.mxu1 %vm1934_vm2, %v2954_v12  ;;  %5448 = vmatmul.msk.f32.vlgmr.msrb.gmra.mxu2 %vm1934_vm2, %v3244_v22 }
 0xbdb   : > { %5440 = vmatpush.xpose.msk.msrb.mxu1 %vm1934_vm2, %v3154_v23 }
 0xbdf   : > { %5441 = vmatpush.xpose.msk.msrb.mxu1 %vm1934_vm2, %v3152_v24 }
 0xbe2   : > { %v3148_v26 = vpop.permute.xlu0 %3147  ;;  %5449 = vmatmul.msk.f32.gmra.mxu2 %vm1934_vm2, %v3246_v25 }
 0xbe3   : > { %5442 = vmatmul.msk.f32.vlgmr.msrb.gmra.mxu1 %vm1934_vm2, %v3148_v26 }
 0xbeb   : > { %5443 = vmatmul.msk.f32.gmra.mxu1 %vm1934_vm2, %v3150_v27 }
 0xc4d   : > { %v3084_v28 = vpop.f32.mrf.mxu2 }
 0xc4e   : > { %v3085_v29 = vadd.f32 %v3084_v28, %v6445_v21 }
 0xc4f   : > { %v2988_v30 = vpop.f32.mrf.mxu1 }
 0xc50   : > { %v2989_v31 = vadd.f32 %v2988_v30, %v6445_v21  ;;  %v3090_v32 = vsel %vm1962_vm3, %v3085_v29, -inf }
 0xc51   : > { %3091 = vmax.xlane.f32.xlu2 %v3090_v32 }
 0xc52   : > { %v2994_v33 = vsel %vm1962_vm3, %v2989_v31, -inf }
 0xc53   : > { %2995 = vmax.xlane.f32.xlu0 %v2994_v33 }
 0xc55   : > { %v3087_v35 = vpop.f32.mrf.mxu2 }
 0xc56   : > { %v3088_v36 = vadd.f32 %v3087_v35, %v6445_v21 }
 0xc57   : > { %v2991_v37 = vpop.f32.mrf.mxu1 }
 0xc58   : > { %v2992_v38 = vadd.f32 %v2991_v37, %v6445_v21  ;;  %v3093_v39 = vsel %vm1962_vm3, %v3088_v36, -inf }
 0xc59   : > { %3094 = vmax.xlane.f32.xlu1 %v3093_v39 }
 0xc5a   : > { %v2997_v40 = vsel %vm1962_vm3, %v2992_v38, -inf }
 0xc5b   : > { %2998 = vmax.xlane.f32.xlu2 %v2997_v40 }
 0xc5d   : > { %v3276_v41 = vpop.f32.mrf.mxu2 }
 0xc5e   : > { %v3277_v43 = vadd.f32 %v3276_v41, %v6445_v21 }
 0xc60   : > { %v3180_v44 = vpop.f32.mrf.mxu1  ;;  %v3282_v59 = vsel %vm1962_vm3, %v3277_v43, -inf }
 0xc61   : > { %v3181_v45 = vadd.f32 %v3180_v44, %v6445_v21  ;;  %3283 = vmax.xlane.f32.xlu0 %v3282_v59 }
 0xc63   : > { %v3186_v47 = vsel %vm1962_vm3, %v3181_v45, -inf }
 0xc64   : > { %3187 = vmax.xlane.f32.xlu1 %v3186_v47 }
 0xc65   : > { %v3279_v49 = vpop.f32.mrf.mxu2 }
 0xc66   : > { %v6664_v50 = vadd.f32 %v3279_v49, %v6445_v21 }
 0xc68   : > { %v3183_v52 = vpop.f32.mrf.mxu1  ;;  %v3285_v54 = vsel %vm1962_vm3, %v6664_v50, -inf }
 0xc69   : > { %v3184_v57 = vadd.f32 %v3183_v52, %v6445_v21  ;;  %3286 = vmax.xlane.f32.xlu2 %v3285_v54 }
 0xc6b   : > { %v3189_v58 = vsel %vm1962_vm3, %v3184_v57, -inf }
 0xc6c   : > { %3190 = vmax.xlane.f32.xlu0 %v3189_v58 }
 0xc80   : > { %5662 = vrot.lane.b32.xlu0 %v6625_v13, %s7437_s20 }
 0xcc4   : > { %v3092_v60 = vpop.xlane.xlu2 %3091 }
 0xcc5   : > { %v3096_v62 = vsub.f32 %v3085_v29, %v3092_v60 }
 0xcc6   : > { %v2996_v1 = vpop.xlane.xlu0 %2995 }
 0xcc7   : > { %v3098_v2 = vmul.f32 1.442695, %v3096_v62  ;;  %v3000_v4 = vsub.f32 %v2989_v31, %v2996_v1 }
 0xcc9   : > { %5805 = vpow2.f32 %v3098_v2  ;;  %v3002_v6 = vmul.f32 1.442695, %v3000_v4 }
 0xccb   : > { %5807 = vpow2.f32 %v3002_v6 }
 0xccc   : > { %v3095_v7 = vpop.xlane.xlu1 %3094 }
 0xccd   : > { %v3097_v11 = vsub.f32 %v3088_v36, %v3095_v7 }
 0xcce   : > { %v2999_v8 = vpop.xlane.xlu2 %2998 }
 0xccf   : > { %v5806_v9 = vpop.eup %5805  ;;  %v3001_v10 = vsub.f32 %v2992_v38, %v2999_v8  ;;  %v3100_v3 = vmul.f32 1.442695, %v3097_v11 }
 0xcd0   : > { %v3102_v12 = vsel %vm1962_vm3, %v5806_v9, 0.0 }
 0xcd1   : > { %v6673_v14 = vpop.eup %5807  ;;  %v3004_v15 = vmul.f32 1.442695, %v3001_v10  ;;  %3103 = vadd.xlane.f32.xlu1 %v3102_v12 }
 0xcd2   : > { %v3006_v17 = vsel %vm1962_vm3, %v6673_v14, 0.0 }
 0xcd3   : > { %5809 = vpow2.f32 %v3004_v15  ;;  %3007 = vadd.xlane.f32.xlu2 %v3006_v17 }
 0xcd4   : > { %v3284_v18 = vpop.xlane.xlu0 %3283  ;;  %5811 = vpow2.f32 %v3100_v3 }
 0xcd5   : > { %v3288_v19 = vsub.f32 %v3277_v43, %v3284_v18 }
 0xcd7   : > { %v3290_v20 = vmul.f32 1.442695, %v3288_v19  ;;  %v3188_v16 = vpop.xlane.xlu1 %3187 }
 0xcd8   : > { %v3192_v23 = vsub.f32 %v3181_v45, %v3188_v16 }
 0xcd9   : > { %v5810_v22 = vpop.eup %5809  ;;  %5813 = vpow2.f32 %v3290_v20 }
 0xcda   : > { %v3009_v24 = vsel %vm1962_vm3, %v5810_v22, 0.0  ;;  %v3194_v25 = vmul.f32 1.442695, %v3192_v23  ;;  %v5812_v26 = vpop.eup %5811 }
 0xcdb   : > { %3010 = vadd.xlane.f32.xlu1 %v3009_v24  ;;  %v3105_v32 = vsel %vm1962_vm3, %v5812_v26, 0.0 }
 0xcdc   : > { %5815 = vpow2.f32 %v3194_v25  ;;  %v3287_v41 = vpop.xlane.xlu2 %3286 }
 0xcdd   : > { %v3289_v43 = vsub.f32 %v6664_v50, %v3287_v41  ;;  %v5425_v41 = vld [vmem:[%s7421_s26 + $0x30] sm:$0xff] }
 0xcdf   : > { %v6678_v27 = vpop.eup %5813  ;;  %v3191_v28 = vpop.xlane.xlu0 %3190  ;;  %v3292_v44 = vmul.f32 1.442695, %v3289_v43  ;;  %v5424_v43 = vld [vmem:[%s7421_s26 + $0x28] sm:$0xff] }
 0xce0   : > { %v3193_v29 = vsub.f32 %v3184_v57, %v3191_v28  ;;  %v3294_v30 = vsel %vm1962_vm3, %v6678_v27, 0.0 }
 0xce1   : > { %3295 = vadd.xlane.f32.xlu0 %v3294_v30  ;;  %v3706_v30 = vld [vmem:[%s7443_s11] sm:$0xff] }
 0xce2   : > { %v3196_v31 = vmul.f32 1.442695, %v3193_v29  ;;  %v6683_v33 = vpop.eup %5815  ;;  %v3707_v29 = vld [vmem:[%s7442_s28 + $0x8] sm:$0xf]  ;;  %s7447_s28 = smov 24  }
 0xce3   : > { %3106 = vadd.xlane.f32.xlu1 %v3105_v32  ;;  %v3198_v36 = vsel %vm1962_vm3, %v6683_v33, 0.0 }
 0xce4   : > { %5817 = vpow2.f32 %v3196_v31  ;;  %v3704_v31 = vld [vmem:[%s1876_s2] sm:$0xff] }
 0xce5   : > { %5819 = vpow2.f32 %v3292_v44  ;;  %v5423_v44 = vld [vmem:[%s7421_s26 + $0x20] sm:$0xff] }
 0xcea   : > { %v6685_v35 = vpop.eup %5817 }
 0xceb   : > { %5667 = vrot.lane.b32.xlu2 %v6625_v13, %s7438_s24  ;;  %3199 = vadd.xlane.f32.xlu1 %v3198_v36  ;;  %v3201_v37 = vsel %vm1962_vm3, %v6685_v35, 0.0  ;;  %v5820_v59 = vpop.eup %5819 }
 0xcec   : > { %3202 = vadd.xlane.f32.xlu0 %v3201_v37  ;;  %v3297_v45 = vsel %vm1962_vm3, %v5820_v59, 0.0 }
 0xcf2   : > { %v5663_v38 = vpop.permute.xlu0 %5662 }
 0xcf3   : > { %v5664_v39 = vunpack.i.l.bf16 %v5663_v38  ;;  %v5665_v40 = vunpack.i.h.bf16 %v5663_v38 }
 0xcf5   : > { %3138 = vmatpush.msrb.mxu3 %v5664_v39 }
 0xcf7   : > { %3139 = vmatpush.msrb.mxu3 %v5665_v40  ;;  %v5426_v40 = vld [vmem:[%s7421_s26 + $0x38] sm:$0xff]  ;;  %s7449_s26 = sld [smem:[#allocation38_spill]] }
 0xcf8   : > { %3390 = vmatpush.msra.mxu1 %v5426_v40 }
 0xcfa   : > { %3391 = vmatpush.msra.mxu1 %v5425_v41 }
 0xcfc   : > { %3392 = vmatpush.msra.mxu1 %v5424_v43 }
 0xcfe   : > { %3393 = vmatpush.msra.mxu1 %v5423_v44 }
 0xd04   : > { %5672 = vrot.lane.b32.xlu1 %v6625_v13, %s7439_s25 }
 0xd0c   : > { %5677 = vrot.lane.b32.xlu1 %v6625_v13, %s7440_s27 }
 0xd14   : > { %3298 = vadd.xlane.f32.xlu2 %v3297_v45  ;;  %v3744_v45 = vld [vmem:[%s7446_s30 + $0x10] sm:$0xff] }
 0xd44   : > { %v3104_v47 = vpop.xlane.xlu1 %3103 }
 0xd45   : > { %5821 = vrcp.f32 %v3104_v47  ;;  %v3743_v47 = vld [vmem:[%s7446_s30 + $0x8] sm:$0xff] }
 0xd46   : > { %v3008_v49 = vpop.xlane.xlu2 %3007 }
 0xd47   : > { %5823 = vrcp.f32 %v3008_v49  ;;  %v3742_v49 = vld [vmem:[%s7446_s30] sm:$0xff] }
 0xd4b   : > { %v5822_v52 = vpop.eup %5821 }
 0xd4c   : > { %v6699_v54 = vmul.f32 %v5822_v52, %v5806_v9 }
 0xd4d   : > { %v5824_v58 = vpop.eup %5823 }
 0xd4e   : > { %5438 = vmatmul.msk.f32.vlgmr.msrb.gmra.mxu3 %vm1962_vm3, %v6699_v54  ;;  %v3011_v50 = vpop.xlane.xlu1 %3010  ;;  %v5668_v57 = vpop.permute.xlu2 %5667  ;;  %v6704_v62 = vmul.f32 %v5824_v58, %v6673_v14 }
 0xd4f   : > { %v5669_v60 = vunpack.i.l.bf16 %v5668_v57  ;;  %5825 = vrcp.f32 %v3011_v50  ;;  %v5670_v13 = vunpack.i.h.bf16 %v5668_v57 }
 0xd51   : > { %3042 = vmatpush.msrb.mxu0 %v5669_v60 }
 0xd53   : > { %3043 = vmatpush.msrb.mxu0 %v5670_v13 }
 0xd54   : > { %5432 = vmatmul.msk.f32.vlgmr.msrb.gmra.mxu0 %vm1962_vm3, %v6704_v62  ;;  %v3296_v8 = vpop.xlane.xlu0 %3295 }
 0xd55   : > { %v5826_v2 = vpop.eup %5825 }
 0xd56   : > { %v3107_v1 = vpop.xlane.xlu1 %3106  ;;  %v6708_v4 = vmul.f32 %v5826_v2, %v5810_v22 }
 0xd57   : > { %5827 = vrcp.f32 %v3107_v1 }
 0xd58   : > { %5829 = vrcp.f32 %v3296_v8 }
 0xd5c   : > { %5433 = vmatmul.msk.f32.gmra.mxu0 %vm1962_vm3, %v6708_v4 }
 0xd5d   : > { %v5828_v6 = vpop.eup %5827 }
 0xd5e   : > { %v6712_v7 = vmul.f32 %v5828_v6, %v5812_v26  ;;  %v3200_v9 = vpop.xlane.xlu1 %3199  ;;  %v5830_v11 = vpop.eup %5829 }
 0xd5f   : > { %5831 = vrcp.f32 %v3200_v9  ;;  %v6717_v15 = vmul.f32 %v5830_v11, %v6678_v27  ;;  %v3203_v17 = vpop.xlane.xlu0 %3202 }
 0xd60   : > { %5439 = vmatmul.msk.f32.gmra.mxu3 %vm1962_vm3, %v6712_v7  ;;  %5833 = vrcp.f32 %v3203_v17 }
 0xd65   : > { %v5832_v18 = vpop.eup %5831 }
 0xd66   : > { %v6722_v16 = vmul.f32 %v5832_v18, %v6683_v33  ;;  %v5834_v22 = vpop.eup %5833  ;;  %v3705_v33 = vld [vmem:[%s1876_s2 + $0x8] sm:$0xff]  ;;  %s7448_s2 = sld [smem:[#allocation8_spill]] }
 0xd67   : > { %v6727_v24 = vmul.f32 %v5834_v22, %v6685_v35 }
 0xd6c   : > { %s1881_s11 = scalar_lea.vmem %s7448_s2, %s6383_s22  ;;  %s7455_s2 = sld [smem:[#allocation36_spill]] }
 0xd6d   : > { %v3709_v17 = vld [vmem:[%s1881_s11 + $0x8] sm:$0xff] }
 0xd76   : > { %v5673_v10 = vpop.permute.xlu1 %5672 }
 0xd77   : > { %v5674_v12 = vunpack.i.l.bf16 %v5673_v10  ;;  %v5675_v14 = vunpack.i.h.bf16 %v5673_v10 }
 0xd79   : > { %3330 = vmatpush.msra.mxu3 %v5674_v12  ;;  %v3708_v12 = vld [vmem:[%s1881_s11] sm:$0xff]  ;;  %s7453_s11 = sld [smem:[#allocation43_spill]] }
 0xd7b   : > { %3331 = vmatpush.msra.mxu3 %v5675_v14 }
 0xd7c   : > { %5450 = vmatmul.msk.f32.vlgmr.msra.gmra.mxu3 %vm1962_vm3, %v6717_v15 }
 0xd7d   : > { %5478 = vmatpush.msk.msrb.mxu3 %vm2137_vm4, %v3707_v29 }
 0xd7e   : > { %v5678_v3 = vpop.permute.xlu1 %5677 }
 0xd7f   : > { %v5679_v19 = vunpack.i.l.bf16 %v5678_v3  ;;  %v5680_v20 = vunpack.i.h.bf16 %v5678_v3  ;;  %3734 = vmatpush.msrb.mxu3 %v3706_v30 }
 0xd81   : > { %3234 = vmatpush.msra.mxu0 %v5679_v19  ;;  %v5732_v19 = vld [vmem:[%s7422_s23 + $0x1] ss:$0 sm:$0xff] }
 0xd83   : > { %3235 = vmatpush.msra.mxu0 %v5680_v20 }
 0xd84   : > { %5444 = vmatmul.msk.f32.vlgmr.msra.gmra.mxu0 %vm1962_vm3, %v6722_v16 }
 0xd87   : > { %v3299_v23 = vpop.xlane.xlu2 %3298 }
 0xd88   : > { %5835 = vrcp.f32 %v3299_v23 }
 0xd8c   : > { %5445 = vmatmul.msk.f32.gmra.mxu0 %vm1962_vm3, %v6727_v24 }
 0xd8e   : > { %v5836_v25 = vpop.eup %5835 }
 0xd8f   : > { %v6731_v26 = vmul.f32 %v5836_v25, %v5820_v59  ;;  %v3745_v59 = vld [vmem:[%s7446_s30 + $0x18] sm:$0xff] }
 0xd90   : > { %3768 = vmatpush.msrb.mxu1 %v3745_v59 }
 0xd91   : > { %5451 = vmatmul.msk.f32.gmra.mxu3 %vm1962_vm3, %v6731_v26 }
 0xd92   : > { %3769 = vmatpush.msrb.mxu1 %v3744_v45 }
 0xd94   : > { %3770 = vmatpush.msrb.mxu1 %v3743_v47 }
 0xd96   : > { %3771 = vmatpush.msrb.mxu1 %v3742_v49 }
 0xd99   : > { %5479 = vmatmul.msk.f32.vlgmr.msrb.gmra.mxu3 %vm2130_vm5, %v3704_v31  ;;  %v5733_v31 = vld [vmem:[%s7449_s26] ss:$0 sm:$0xff]  ;;  %s7454_s26 = sld [smem:[#allocation35_spill]] }
 0xda1   : > { %5480 = vmatmul.msk.f32.gmra.mxu3 %vm2130_vm5, %v3705_v33 }
 0xdd1   : > { %v3141_v27 = vpop.f32.mrf.mxu3  ;;  %v3045_v32 = vpop.f32.mrf.mxu0 }
 0xdd2   : > { %3341 = vrot.lane.b32.xlu1 %v3141_v27, %s7444_s17 }
 0xdd9   : > { %v3048_v35 = vpop.f32.mrf.mxu0 }
 0xde3   : > { %v3144_v28 = vpop.f32.mrf.mxu3 }
 0xde4   : > { %3343 = vrot.lane.b32.xlu2 %v3144_v28, %s7444_s17 }
 0xdff   : > { %v3333_v38 = vpop.f32.mrf.mxu3 }
 0xe01   : > { %v3237_v36 = vpop.f32.mrf.mxu0 }
 0xe02   : > { %3349 = vrot.lane.b32.xlu0 %v3237_v36, %s7445_s29 }
 0xe09   : > { %v3240_v37 = vpop.f32.mrf.mxu0 }
 0xe0a   : > { %3351 = vrot.lane.b32.xlu1 %v3240_v37, %s7445_s29 }
 0xe12   : > { %3357 = vrot.lane.b32.xlu1 %v3333_v38, %s7447_s28 }
 0xe14   : > { %v3336_v39 = vpop.f32.mrf.mxu3 }
 0xe1a   : > { %3359 = vrot.lane.b32.xlu1 %v3336_v39, %s7447_s28 }
 0xe1c   : > { %v3736_v11 = vpop.f32.mrf.mxu3 }
 0xe1d   : > { %v6766_v14 = vadd.f32 %v3736_v11, %v3708_v12 }
 0xe24   : > { %v3739_v3 = vpop.f32.mrf.mxu3 }
 0xe25   : > { %v6770_v18 = vadd.f32 %v3739_v3, %v3709_v17 }
 0xe3e   : > { %v3344_v2 = vpop.permute.xlu2 %3343 }
 0xe3f   : > { %v3364_v6 = vsel %vm1934_vm2, %v3048_v35, %v3344_v2 }
 0xe44   : > { %v3342_v52 = vpop.permute.xlu1 %3341 }
 0xe45   : > { %v3363_v58 = vsel %vm1934_vm2, %v3045_v32, %v3342_v52  ;;  %v5461_v52 = vld [vmem:[%s7423_s10 + $0x38] sm:$0xff] }
 0xe46   : > { %3516 = vmatpush.msrb.mxu0 %v5461_v52 }
 0xe74   : > { %v3350_v57 = vpop.permute.xlu0 %3349 }
 0xe75   : > { %v3365_v60 = vsel %vm1962_vm3, %v3363_v58, %v3350_v57  ;;  %v5459_v57 = vld [vmem:[%s7423_s10 + $0x28] sm:$0xff]  ;;  %v5458_v58 = vld [vmem:[%s7423_s10 + $0x20] sm:$0xff] }
 0xe7c   : > { %v3352_v50 = vpop.permute.xlu1 %3351 }
 0xe7d   : > { %v3366_v8 = vsel %vm1962_vm3, %v3364_v6, %v3352_v50  ;;  %v5460_v50 = vld [vmem:[%s7423_s10 + $0x30] sm:$0xff] }
 0xe7e   : > { %3517 = vmatpush.msrb.mxu0 %v5460_v50 }
 0xe80   : > { %3518 = vmatpush.msrb.mxu0 %v5459_v57 }
 0xe82   : > { %3519 = vmatpush.msrb.mxu0 %v5458_v58 }
 0xe84   : > { %v3358_v13 = vpop.permute.xlu1 %3357 }
 0xe85   : > { %v3367_v1 = vsel %vm2626_vm7, %v3365_v60, %v3358_v13 }
 0xe86   : > { %5452 = vmatmul.msk.f32.vlgmr.msra.gmra.mxu1 %vm2172_vm6, %v3367_v1 }
 0xe8c   : > { %v3360_v9 = vpop.permute.xlu1 %3359 }
 0xe8d   : > { %v3368_v10 = vsel %vm2626_vm7, %v3366_v8, %v3360_v9 }
 0xe8e   : > { %5453 = vmatmul.msk.f32.gmra.mxu1 %vm2172_vm6, %v3368_v10 }
 0xe96   : > { %5481 = vmatmul.msk.f32.vlgmr.msrb.gmra.mxu1 %vm2172_vm6, %v6766_v14 }
 0xe9e   : > { %5482 = vmatmul.msk.f32.gmra.mxu1 %vm2172_vm6, %v6770_v18 }
 0xf03   : > { %v3395_v20 = vpop.f32.mrf.mxu1 }
 0xf04   : > { %v3396_v22 = vadd.f32 %v5732_v19, %v3395_v20 }
 0xf06   : > { %v3428_v23 = vadd.f32 %v3396_v22, %v6607_v46 }
 0xf08   : > { %v3434_v25 = vsel %vm2172_vm6, %v3428_v23, 0.0 }
 0xf09   : > { %3435 = vadd.xlane.f32.xlu0 %v3434_v25 }
 0xf0b   : > { %v3398_v27 = vpop.f32.mrf.mxu1 }
 0xf0c   : > { %v3399_v28 = vadd.f32 %v5732_v19, %v3398_v27  ;;  %v5734_v27 = vld [vmem:[%s7424_s15 + $0x1] ss:$0 sm:$0xff] }
 0xf0e   : > { %v3429_v29 = vadd.f32 %v3399_v28, %v6612_v5 }
 0xf10   : > { %v3437_v30 = vsel %vm2172_vm6, %v3429_v29, 0.0 }
 0xf11   : > { %3438 = vadd.xlane.f32.xlu1 %v3437_v30 }
 0xf13   : > { %v3773_v32 = vpop.f32.mrf.mxu1 }
 0xf14   : > { %v6780_v33 = vadd.f32 %v5733_v31, %v3773_v32  ;;  %v5735_v32 = vld [vmem:[%s7425_s5 + $0x1] ss:$0 sm:$0xff] }
 0xf16   : > { %v6798_v5 = vmul.f32 %v6780_v33, %v6409_v63 }
 0xf1b   : > { %v3776_v35 = vpop.f32.mrf.mxu1 }
 0xf1c   : > { %v6784_v36 = vadd.f32 %v5733_v31, %v3776_v35 }
 0xf1d   : > { %3793 = vrot.lane.b32.xlu0 %v6780_v33, %s7432_s14 }
 0xf1e   : > { %v6790_v46 = vmul.f32 %v6784_v36, %v6409_v63 }
 0xf2a   : > { %3897 = vrot.lane.b32.xlu1 %v6784_v36, %s7431_s13 }
 0xf32   : > { %3893 = vrot.lane.b32.xlu1 %v6790_v46, %s7420_s3 }
 0xf3a   : > { %3993 = vrot.lane.b32.xlu1 %v6780_v33, %s7434_s18 }
 0xf42   : > { %4087 = vrot.lane.b32.xlu1 %v6798_v5, %s7436_s19 }
 0xf7c   : > { %v3436_v37 = vpop.xlane.xlu0 %3435 }
 0xf7d   : > { %v3440_v38 = vmul.f32 %v3436_v37, %v6562_v56 }
 0xf7f   : > { %v3442_v39 = vsub.f32 %v3428_v23, %v3440_v38 }
 0xf81   : > { %v3444_v40 = vmul.f32 %v3442_v39, %v3442_v39 }
 0xf83   : > { %v3446_v41 = vsel %vm2172_vm6, %v3444_v40, 0.0 }
 0xf84   : > { %3447 = vadd.xlane.f32.xlu2 %v3446_v41  ;;  %v3439_v43 = vpop.xlane.xlu1 %3438 }
 0xf85   : > { %v3441_v44 = vmul.f32 %v3439_v43, %v6562_v56 }
 0xf87   : > { %v6805_v59 = vsub.f32 %v3429_v29, %v3441_v44 }
 0xf89   : > { %v3445_v45 = vmul.f32 %v6805_v59, %v6805_v59 }
 0xf8b   : > { %v3449_v47 = vsel %vm2172_vm6, %v3445_v45, 0.0 }
 0xf8c   : > { %3450 = vadd.xlane.f32.xlu0 %v3449_v47 }
 0xf8f   : > { %v3794_v60 = vpop.permute.xlu0 %3793 }
 0xf9c   : > { %3795 = vrot.lane.b32.xlu2 %v6784_v36, %s7432_s14  ;;  %v3898_v49 = vpop.permute.xlu1 %3897 }
 0xf9d   : > { %5489 = vmatpush.xpose.msk.msra.mxu3 %vm1934_vm2, %v3898_v49 }
 0xfa0   : > { %3891 = vrot.lane.b32.xlu0 %v6798_v5, %s7420_s3 }
 0xfa4   : > { %3895 = vrot.lane.b32.xlu2 %v6780_v33, %s7431_s13  ;;  %v3894_v30 = vpop.permute.xlu1 %3893 }
 0xfa8   : > { %4093 = vrot.lane.b32.xlu0 %v6784_v36, %s7433_s16 }
 0xfac   : > { %3995 = vrot.lane.b32.xlu2 %v6784_v36, %s7434_s18  ;;  %v3994_v47 = vpop.permute.xlu1 %3993 }
 0xfb0   : > { %3989 = vrot.lane.b32.xlu0 %v6798_v5, %s7435_s7 }
 0xfb4   : > { %4091 = vrot.lane.b32.xlu2 %v6780_v33, %s7433_s16 }
 0xfb8   : > { %4089 = vrot.lane.b32.xlu0 %v6790_v46, %s7436_s19 }
 0xfbc   : > { %3991 = vrot.lane.b32.xlu2 %v6790_v46, %s7435_s7 }
 0xff7   : > { %v3448_v13 = vpop.xlane.xlu2 %3447 }
 0xff8   : > { %v3452_v1 = vmul.f32 %v3448_v13, %v6562_v56 }
 0xffa   : > { %v3454_v2 = vadd.f32 1e-05, %v3452_v1  ;;  %v5472_v1 = vld [vmem:[%s7426_s0 + $0x78] sm:$0xff] }
 0xffb   : > { %3573 = vmatpush.msra.mxu2 %v5472_v1 }
 0xffc   : > { %5837 = vrsqrt.f32 %v3454_v2  ;;  %vm3462_vm5 = vweird.f32 %v3454_v2 }
 0xfff   : > { %v3796_v6 = vpop.permute.xlu2 %3795  ;;  %v3451_v8 = vpop.xlane.xlu0 %3450 }
0x1000   : > { %v3453_v9 = vmul.f32 %v3451_v8, %v6562_v56  ;;  %5483 = vmatpush.xpose.msk.msra.mxu0 %vm1934_vm2, %v3796_v6  ;;  %v5469_v6 = vld [vmem:[%s7426_s0 + $0x60] sm:$0xff]  ;;  %v5468_v8 = vld [vmem:[%s7426_s0 + $0x58] sm:$0xff] }
0x1002   : > { %v5838_v10 = vpop.eup %5837  ;;  %v3455_v11 = vadd.f32 1e-05, %v3453_v9  ;;  %v5467_v9 = vld [vmem:[%s7426_s0 + $0x50] sm:$0xff] }
0x1003   : > { %v3457_v12 = vmul.f32 %v5838_v10, %v3454_v2  ;;  %vm3463_vm4 = vweird.f32 %v5838_v10  ;;  %v5471_v2 = vld [vmem:[%s7426_s0 + $0x70] sm:$0xff] }
0x1004   : > { %5839 = vrsqrt.f32 %v3455_v11  ;;  %5484 = vmatpush.xpose.msk.msra.mxu0 %vm1934_vm2, %v3794_v60  ;;  %vm3464_vm14 = vmor %vm3462_vm5, %vm3463_vm4  ;;  %vm3472_vm9 = vweird.f32 %v3455_v11  ;;  %3574 = vmatpush.msra.mxu2 %v5471_v2 }
0x1005   : > { %v3458_v17 = vmul.f32 %v5838_v10, %v3457_v12  ;;  %v5736_v12 = vld [vmem:[%s7427_s6 + $0x1] ss:$0 sm:$0xff] }
0x1007   : > { %v3459_v3 = vmul.f32 0.5, %v3458_v17  ;;  %v3896_v19 = vpop.permute.xlu2 %3895 }
0x1008   : > { %5490 = vmatpush.xpose.msk.msra.mxu3 %vm1934_vm2, %v3896_v19 }
0x1009   : > { %v3460_v20 = vsub.f32 1.5, %v3459_v3 }
0x100a   : > { %v5840_v22 = vpop.eup %5839 }
0x100b   : > { %v3461_v23 = vmul.f32 %v5838_v10, %v3460_v20  ;;  %v3467_v25 = vmul.f32 %v5840_v22, %v3455_v11  ;;  %vm3473_vm8 = vweird.f32 %v5840_v22  ;;  %v3786_v11 = vlaneseq }
0x100c   : > { %vm3474_vm10 = vmor %vm3472_vm9, %vm3473_vm8 }
0x100d   : > { %v3465_v28 = vsel %vm3464_vm14, %v5838_v10, %v3461_v23  ;;  %v3468_v29 = vmul.f32 %v5840_v22, %v3467_v25  ;;  %v5465_v10 = vld [vmem:[%s7426_s0 + $0x40] sm:$0xff]  ;;  %v3787_v17 = vshrl.u32 %v3786_v11, 7  ;;  %v3790_v3 = vand.u32 127, %v3786_v11 }
0x100e   : > { %v3476_v31 = vmul.f32 %v3465_v28, %v3442_v39 }
0x100f   : > { %v3469_v35 = vmul.f32 0.5, %v3468_v29  ;;  %v3996_v44 = vpop.permute.xlu2 %3995  ;;  %vm3830_vm11 = vcmp.gt.s32.totalorder %v3790_v3, %v3787_v17 }
0x1010   : > { %v3481_v37 = vmul.f32 %v5734_v27, %v3476_v31 }
0x1011   : > { %v3470_v38 = vsub.f32 1.5, %v3469_v35 }
0x1012   : > { %v3892_v40 = vpop.permute.xlu0 %3891  ;;  %v6840_v41 = vadd.f32 %v5735_v32, %v3481_v37 }
0x1013   : > { %v3471_v43 = vmul.f32 %v5840_v22, %v3470_v38  ;;  %5491 = vmatmul.msk.f32.vlgmr.msra.gmra.mxu3 %vm1934_vm2, %v3892_v40 }
0x1014   : > { %5463 = vmatmul.msk.f32.vlgmr.msrb.gmra.mxu0 %vm2172_vm6, %v6840_v41 }
0x1015   : > { %v3475_v45 = vsel %vm3474_vm10, %v5840_v22, %v3471_v43  ;;  %5495 = vmatpush.xpose.msk.msrb.mxu0 %vm1934_vm2, %v3996_v44  ;;  %v3788_v43 = vadd.s32 8, %v3787_v17 }
0x1016   : > { %v3477_v39 = vmul.f32 %v3475_v45, %v6805_v59  ;;  %v4088_v59 = vpop.permute.xlu1 %4087 }
0x1017   : > { %v4092_v57 = vpop.permute.xlu2 %4091  ;;  %vm3831_vm12 = vcmp.gt.s32.totalorder %v3790_v3, %v3788_v43 }
0x1018   : > { %v3482_v49 = vmul.f32 %v5734_v27, %v3477_v39 }
0x1019   : > { %5496 = vmatpush.xpose.msk.msrb.mxu0 %vm1934_vm2, %v3994_v47 }
0x101a   : > { %v4094_v52 = vpop.permute.xlu0 %4093  ;;  %v6848_v50 = vadd.f32 %v5735_v32, %v3482_v49 }
0x101b   : > { %5492 = vmatmul.msk.f32.gmra.mxu3 %vm1934_vm2, %v3894_v30 }
0x101c   : > { %5501 = vmatpush.xpose.msk.msrb.mxu3 %vm1934_vm2, %v4094_v52  ;;  %5464 = vmatmul.msk.f32.gmra.mxu0 %vm2172_vm6, %v6848_v50 }
0x101f   : > { %v3992_v13 = vpop.permute.xlu2 %3991 }
0x1020   : > { %5502 = vmatpush.xpose.msk.msrb.mxu3 %vm1934_vm2, %v4092_v57 }
0x1022   : > { %v3990_v58 = vpop.permute.xlu0 %3989 }
0x1023   : > { %5503 = vmatmul.msk.f32.vlgmr.msrb.gmra.mxu3 %vm1934_vm2, %v4088_v59 }
0x1024   : > { %5485 = vmatmul.msk.f32.vlgmr.msra.gmra.mxu0 %vm1934_vm2, %v6798_v5  ;;  %v5470_v5 = vld [vmem:[%s7426_s0 + $0x68] sm:$0xff] }
0x1025   : > { %3575 = vmatpush.msra.mxu2 %v5470_v5 }
0x1027   : > { %3576 = vmatpush.msra.mxu2 %v5469_v6 }
0x1029   : > { %3577 = vmatpush.msra.mxu2 %v5468_v8 }
0x102a   : > { %v4090_v60 = vpop.permute.xlu0 %4089 }
0x102b   : > { %5504 = vmatmul.msk.f32.gmra.mxu3 %vm1934_vm2, %v4090_v60  ;;  %3578 = vmatpush.msra.mxu2 %v5467_v9 }
0x102c   : > { %5486 = vmatmul.msk.f32.gmra.mxu0 %vm1934_vm2, %v6790_v46  ;;  %v5466_v46 = vld [vmem:[%s7426_s0 + $0x48] sm:$0xff] }
0x102d   : > { %3579 = vmatpush.msra.mxu2 %v5466_v46 }
0x102f   : > { %3580 = vmatpush.msra.mxu2 %v5465_v10 }
0x1034   : > { %5497 = vmatmul.msk.f32.vlgmr.msrb.gmra.mxu0 %vm1934_vm2, %v3990_v58 }
0x103c   : > { %5498 = vmatmul.msk.f32.gmra.mxu0 %vm1934_vm2, %v3992_v13 }
0x1091   : > { %v3521_v19 = vpop.f32.mrf.mxu0 }
0x1092   : > { %v3522_v20 = vadd.f32 %v5736_v12, %v3521_v19 }
0x1094   : > { %v3527_v22 = vmul.f32 %v3522_v20, %v3522_v20 }
0x1096   : > { %v3529_v23 = vmul.f32 %v3527_v22, %v3522_v20  ;;  %v3924_v25 = vpop.f32.mrf.mxu3 }
0x1097   : > { %v3930_v27 = vsel %vm3830_vm11, -1e+30, %v3924_v25 }
0x1098   : > { %v3531_v28 = vmul.f32 0.044715, %v3529_v23  ;;  %v3932_v29 = vsel %vm1962_vm3, %v3930_v27, -inf }
0x1099   : > { %v3524_v30 = vpop.f32.mrf.mxu0  ;;  %3933 = vmax.xlane.f32.xlu2 %v3932_v29 }
0x109a   : > { %v3533_v31 = vadd.f32 %v3531_v28, %v3522_v20  ;;  %v3525_v32 = vadd.f32 %v5736_v12, %v3524_v30  ;;  %v5681_v30 = vpack.i.bf16 %v6780_v33, %v6784_v36 }
0x109c   : > { %v3535_v35 = vmul.f32 0.7978846, %v3533_v31  ;;  %v3528_v37 = vmul.f32 %v3525_v32, %v3525_v32 }
0x109e   : > { %5841 = vtanh.f32 %v3535_v35  ;;  %v3530_v38 = vmul.f32 %v3528_v37, %v3525_v32  ;;  %v3927_v44 = vpop.f32.mrf.mxu3 }
0x109f   : > { %v3931_v60 = vsel %vm3831_vm12, -1e+30, %v3927_v44 }
0x10a0   : > { %v3532_v40 = vmul.f32 0.044715, %v3530_v38  ;;  %v3935_v8 = vsel %vm1962_vm3, %v3931_v60, -inf }
0x10a1   : > { %v3824_v45 = vpop.f32.mrf.mxu0 }
0x10a2   : > { %v3534_v39 = vadd.f32 %v3532_v40, %v3525_v32  ;;  %v3832_v47 = vsel %vm3830_vm11, -1e+30, %v3824_v45 }
0x10a3   : > { %v3834_v49 = vsel %vm1962_vm3, %v3832_v47, -inf }
0x10a4   : > { %v5842_v52 = vpop.eup %5841  ;;  %3835 = vmax.xlane.f32.xlu1 %v3834_v49  ;;  %v3536_v57 = vmul.f32 0.7978846, %v3534_v39 }
0x10a5   : > { %v3539_v59 = vadd.f32 1.0, %v5842_v52 }
0x10a6   : > { %5843 = vtanh.f32 %v3536_v57  ;;  %v4120_v5 = vpop.f32.mrf.mxu3  ;;  %v5737_v57 = vld [vmem:[%s7428_s8 + $0x1] ss:$0 sm:$0xff] }
0x10a7   : > { %v3541_v58 = vmul.f32 0.5, %v3539_v59  ;;  %v6882_v11 = vsel %vm3830_vm11, -1e+30, %v4120_v5 }
0x10a8   : > { %v4128_v23 = vsel %vm1962_vm3, %v6882_v11, -inf }
0x10a9   : > { %v3543_v13 = vmul.f32 %v3541_v58, %v3522_v20  ;;  %v3827_v1 = vpop.f32.mrf.mxu0 }
0x10aa   : > { %v3833_v2 = vsel %vm3831_vm12, -1e+30, %v3827_v1 }
0x10ab   : > { %5474 = vmatmul.msk.f32.vlgmr.msra.gmra.mxu2 %vm2685_vm15, %v3543_v13  ;;  %v3837_v6 = vsel %vm1962_vm3, %v3833_v2, -inf }
0x10ac   : > { %v5844_v9 = vpop.eup %5843  ;;  %3838 = vmax.xlane.f32.xlu0 %v3837_v6  ;;  %3936 = vmax.xlane.f32.xlu1 %v3935_v8 }
0x10ad   : > { %v3540_v46 = vadd.f32 1.0, %v5844_v9 }
0x10ae   : > { %v4123_v25 = vpop.f32.mrf.mxu3 }
0x10af   : > { %v3542_v10 = vmul.f32 0.5, %v3540_v46  ;;  %v4127_v28 = vsel %vm3831_vm12, -1e+30, %v4123_v25 }
0x10b0   : > { %v4131_v29 = vsel %vm1962_vm3, %v4127_v28, -inf }
0x10b1   : > { %v4022_v12 = vpop.f32.mrf.mxu0  ;;  %v3544_v19 = vmul.f32 %v3542_v10, %v3525_v32 }
0x10b2   : > { %v4028_v20 = vsel %vm3830_vm11, -1e+30, %v4022_v12 }
0x10b3   : > { %5475 = vmatmul.msk.f32.gmra.mxu2 %vm2685_vm15, %v3544_v19  ;;  %v4030_v22 = vsel %vm1962_vm3, %v4028_v20, -inf }
0x10b4   : > { %4031 = vmax.xlane.f32.xlu2 %v4030_v22  ;;  %4129 = vmax.xlane.f32.xlu0 %v4128_v23 }
0x10b9   : > { %v4025_v17 = vpop.f32.mrf.mxu0 }
0x10ba   : > { %v6895_v31 = vsel %vm3831_vm12, -1e+30, %v4025_v17 }
0x10bb   : > { %v4033_v32 = vsel %vm1962_vm3, %v6895_v31, -inf }
0x10bc   : > { %4132 = vmax.xlane.f32.xlu2 %v4131_v29 }
0x10c5   : > { %5682 = vrot.lane.b32.xlu1 %v5681_v30, %s7438_s24  ;;  %s7451_s24 = sld [smem:[#allocation40_spill]] }
0x10ef   : > { %4034 = vmax.xlane.f32.xlu1 %v4033_v32 }
0x1108   : > { %5692 = vrot.lane.b32.xlu1 %v5681_v30, %s7440_s27 }
0x110c   : > { %v3934_v35 = vpop.xlane.xlu2 %3933 }
0x110d   : > { %v3938_v37 = vsub.f32 %v3930_v27, %v3934_v35 }
0x110f   : > { %v3940_v38 = vmul.f32 1.442695, %v3938_v37 }
0x1111   : > { %5845 = vpow2.f32 %v3940_v38 }
0x1117   : > { %v6900_v40 = vpop.eup %5845  ;;  %v3836_v33 = vpop.xlane.xlu1 %3835 }
0x1118   : > { %v3944_v36 = vsel %vm1962_vm3, %v6900_v40, 0.0  ;;  %v3840_v45 = vsub.f32 %v3832_v47, %v3836_v33 }
0x1119   : > { %3945 = vadd.xlane.f32.xlu2 %v3944_v36 }
0x111a   : > { %v3842_v39 = vmul.f32 1.442695, %v3840_v45 }
0x111f   : > { %v3937_v3 = vpop.xlane.xlu1 %3936  ;;  %v3839_v49 = vpop.xlane.xlu0 %3838 }
0x1120   : > { %v3939_v43 = vsub.f32 %v3931_v60, %v3937_v3  ;;  %v3841_v27 = vsub.f32 %v3833_v2, %v3839_v49 }
0x1122   : > { %v3942_v44 = vmul.f32 1.442695, %v3939_v43  ;;  %v3844_v13 = vmul.f32 1.442695, %v3841_v27 }
0x1124   : > { %5847 = vpow2.f32 %v3942_v44 }
0x1125   : > { %5849 = vpow2.f32 %v3842_v39 }
0x1126   : > { %5851 = vpow2.f32 %v3844_v13 }
0x1127   : > { %v4032_v5 = vpop.xlane.xlu2 %4031  ;;  %v4130_v9 = vpop.xlane.xlu0 %4129 }
0x1128   : > { %v4036_v47 = vsub.f32 %v4028_v20, %v4032_v5  ;;  %v4134_v19 = vsub.f32 %v6882_v11, %v4130_v9 }
0x112a   : > { %v6904_v52 = vpop.eup %5847  ;;  %v4038_v2 = vmul.f32 1.442695, %v4036_v47  ;;  %v4136_v22 = vmul.f32 1.442695, %v4134_v19 }
0x112b   : > { %v3947_v59 = vsel %vm1962_vm3, %v6904_v52, 0.0  ;;  %v6911_v60 = vpop.eup %5849 }
0x112c   : > { %3948 = vadd.xlane.f32.xlu0 %v3947_v59  ;;  %v3846_v6 = vsel %vm1962_vm3, %v6911_v60, 0.0  ;;  %v6916_v10 = vpop.eup %5851  ;;  %5853 = vpow2.f32 %v4038_v2 }
0x112d   : > { %v3849_v20 = vsel %vm1962_vm3, %v6916_v10, 0.0  ;;  %5855 = vpow2.f32 %v4136_v22 }
0x112e   : > { %v3582_v58 = vpop.f32.mrf.mxu2 }
0x112f   : > { %v6909_v1 = vadd.f32 %v5737_v57, %v3582_v58  ;;  %v4133_v23 = vpop.xlane.xlu2 %4132 }
0x1130   : > { %v4135_v29 = vsub.f32 %v4127_v28, %v4133_v23 }
0x1131   : > { %5687 = vrot.lane.b32.xlu2 %v5681_v30, %s7437_s20  ;;  %s7452_s20 = sld [smem:[#allocation45_spill]] }
0x1132   : > { %v6922_v25 = vpop.eup %5853 }
0x1133   : > { %v4042_v17 = vsel %vm1962_vm3, %v6922_v25, 0.0  ;;  %v5856_v32 = vpop.eup %5855 }
0x1134   : > { %3847 = vadd.xlane.f32.xlu0 %v3846_v6  ;;  %v4140_v11 = vsel %vm1962_vm3, %v5856_v32, 0.0 }
0x1136   : > { %v3585_v36 = vpop.f32.mrf.mxu2 }
0x1137   : > { %v5683_v8 = vpop.permute.xlu1 %5682  ;;  %v3586_v43 = vadd.f32 %v5737_v57, %v3585_v36 }
0x1138   : > { %v5684_v46 = vunpack.i.l.bf16 %v5683_v8  ;;  %v5685_v12 = vunpack.i.h.bf16 %v5683_v8 }
0x1139   : > { %5697 = vrot.lane.b32.xlu2 %v5681_v30, %s7439_s25  ;;  %v4138_v30 = vmul.f32 1.442695, %v4135_v29  ;;  %v3589_v45 = vadd.f32 %v3586_v43, %v6848_v50  ;;  %s7450_s25 = sld [smem:[#allocation39_spill]] }
0x113a   : > { %3882 = vmatpush.msrb.mxu2 %v5684_v46 }
0x113b   : > { %5857 = vpow2.f32 %v4138_v30  ;;  %v3597_v39 = vsel %vm2172_vm6, %v3589_v45, 0.0 }
0x113c   : > { %3883 = vmatpush.msrb.mxu2 %v5685_v12  ;;  %3850 = vadd.xlane.f32.xlu0 %v3849_v20 }
0x1141   : > { %v6927_v35 = vpop.eup %5857 }
0x1142   : > { %v4143_v37 = vsel %vm1962_vm3, %v6927_v35, 0.0 }
0x1144   : > { %4043 = vadd.xlane.f32.xlu0 %v4042_v17 }
0x114c   : > { %4141 = vadd.xlane.f32.xlu0 %v4140_v11 }
0x1154   : > { %4144 = vadd.xlane.f32.xlu0 %v4143_v37 }
0x1162   : > { %v4035_v38 = vpop.xlane.xlu1 %4034 }
0x1163   : > { %v4037_v33 = vsub.f32 %v6895_v31, %v4035_v38 }
0x1165   : > { %v4040_v28 = vmul.f32 1.442695, %v4037_v33 }
0x1167   : > { %5859 = vpow2.f32 %v4040_v28 }
0x116d   : > { %v5860_v3 = vpop.eup %5859 }
0x116e   : > { %v4045_v44 = vsel %vm1962_vm3, %v5860_v3, 0.0 }
0x116f   : > { %4046 = vadd.xlane.f32.xlu1 %v4045_v44 }
0x1177   : > { %3598 = vadd.xlane.f32.xlu1 %v3597_v39 }
0x117a   : > { %v5693_v49 = vpop.permute.xlu1 %5692 }
0x117b   : > { %v5694_v27 = vunpack.i.l.bf16 %v5693_v49  ;;  %v5695_v59 = vunpack.i.h.bf16 %v5693_v49 }
0x117d   : > { %4078 = vmatpush.msra.mxu2 %v5694_v27 }
0x117f   : > { %4079 = vmatpush.msra.mxu2 %v5695_v59 }
0x118c   : > { %v3946_v58 = vpop.xlane.xlu2 %3945 }
0x118d   : > { %5861 = vrcp.f32 %v3946_v58 }
0x1193   : > { %v5862_v13 = vpop.eup %5861 }
0x1194   : > { %v5688_v31 = vpop.permute.xlu2 %5687  ;;  %v3952_v57 = vmul.f32 %v5862_v13, %v6900_v40  ;;  %v3782_v13 = vld [vmem:[%s7450_s25 + $0x18] sm:$0xff] }
0x1195   : > { %v5689_v5 = vunpack.i.l.bf16 %v5688_v31  ;;  %v5690_v47 = vunpack.i.h.bf16 %v5688_v31  ;;  %4236 = vmatpush.msra.mxu0 %v3782_v13 }
0x1197   : > { %3980 = vmatpush.msra.mxu1 %v5689_v5  ;;  %v3781_v5 = vld [vmem:[%s7450_s25 + $0x10] sm:$0xff] }
0x1198   : > { %4237 = vmatpush.msra.mxu0 %v3781_v5 }
0x1199   : > { %3981 = vmatpush.msra.mxu1 %v5690_v47  ;;  %v3780_v47 = vld [vmem:[%s7450_s25 + $0x8] sm:$0xff] }
0x119a   : > { %5493 = vmatmul.msk.f32.vlgmr.msra.gmra.mxu1 %vm1962_vm3, %v3952_v57  ;;  %4238 = vmatpush.msra.mxu0 %v3780_v47  ;;  %v3588_v57 = vadd.f32 %v6909_v1, %v6840_v41  ;;  %v5739_v47 = vld [vmem:[%s7429_s9 + $0x1] ss:$0 sm:$0xff] }
0x119c   : > { %v5698_v50 = vpop.permute.xlu2 %5697 }
0x119d   : > { %v5699_v6 = vunpack.i.l.bf16 %v5698_v50  ;;  %v5700_v2 = vunpack.i.h.bf16 %v5698_v50  ;;  %v3594_v50 = vsel %vm2172_vm6, %v3588_v57, 0.0 }
0x119f   : > { %4176 = vmatpush.msrb.mxu1 %v5699_v6  ;;  %v3949_v8 = vpop.xlane.xlu0 %3948  ;;  %v3779_v6 = vld [vmem:[%s7450_s25] sm:$0xff] }
0x11a0   : > { %5863 = vrcp.f32 %v3949_v8  ;;  %4239 = vmatpush.msra.mxu0 %v3779_v6 }
0x11a1   : > { %4177 = vmatpush.msrb.mxu1 %v5700_v2 }
0x11a6   : > { %v5864_v9 = vpop.eup %5863 }
0x11a7   : > { %v3848_v46 = vpop.xlane.xlu0 %3847  ;;  %v3953_v12 = vmul.f32 %v5864_v9, %v6904_v52 }
0x11a8   : > { %5865 = vrcp.f32 %v3848_v46 }
0x11a9   : > { %5494 = vmatmul.msk.f32.gmra.mxu1 %vm1962_vm3, %v3953_v12 }
0x11ae   : > { %v5866_v19 = vpop.eup %5865 }
0x11af   : > { %v3854_v40 = vmul.f32 %v5866_v19, %v6911_v60  ;;  %v3851_v20 = vpop.xlane.xlu0 %3850 }
0x11b0   : > { %5867 = vrcp.f32 %v3851_v20 }
0x11b1   : > { %5487 = vmatmul.msk.f32.vlgmr.msrb.gmra.mxu2 %vm1962_vm3, %v3854_v40 }
0x11b6   : > { %v5868_v22 = vpop.eup %5867 }
0x11b7   : > { %v4044_v23 = vpop.xlane.xlu0 %4043  ;;  %v3855_v29 = vmul.f32 %v5868_v22, %v6916_v10 }
0x11b8   : > { %5869 = vrcp.f32 %v4044_v23 }
0x11b9   : > { %5488 = vmatmul.msk.f32.gmra.mxu2 %vm1962_vm3, %v3855_v29 }
0x11be   : > { %v5870_v17 = vpop.eup %5869 }
0x11bf   : > { %v4050_v52 = vmul.f32 %v5870_v17, %v6922_v25  ;;  %v4142_v30 = vpop.xlane.xlu0 %4141 }
0x11c0   : > { %5871 = vrcp.f32 %v4142_v30 }
0x11c1   : > { %5499 = vmatmul.msk.f32.vlgmr.msra.gmra.mxu2 %vm1962_vm3, %v4050_v52 }
0x11c6   : > { %v5872_v11 = vpop.eup %5871 }
0x11c7   : > { %v4148_v60 = vmul.f32 %v5872_v11, %v5856_v32  ;;  %v4145_v37 = vpop.xlane.xlu0 %4144 }
0x11c8   : > { %5873 = vrcp.f32 %v4145_v37 }
0x11c9   : > { %5505 = vmatmul.msk.f32.vlgmr.msrb.gmra.mxu1 %vm1962_vm3, %v4148_v60 }
0x11ce   : > { %v5874_v38 = vpop.eup %5873 }
0x11cf   : > { %v4149_v33 = vmul.f32 %v5874_v38, %v6927_v35 }
0x11d1   : > { %5506 = vmatmul.msk.f32.gmra.mxu1 %vm1962_vm3, %v4149_v33 }
0x11e2   : > { %v4047_v10 = vpop.xlane.xlu1 %4046 }
0x11e3   : > { %5875 = vrcp.f32 %v4047_v10 }
0x11e9   : > { %v5876_v28 = vpop.eup %5875 }
0x11ea   : > { %v3599_v36 = vpop.xlane.xlu1 %3598  ;;  %v4051_v25 = vmul.f32 %v5876_v28, %v5860_v3 }
0x11eb   : > { %v3601_v43 = vmul.f32 %v3599_v36, %v6562_v56 }
0x11ec   : > { %5500 = vmatmul.msk.f32.gmra.mxu2 %vm1962_vm3, %v4051_v25 }
0x11ed   : > { %v6950_v44 = vsub.f32 %v3589_v45, %v3601_v43 }
0x11ef   : > { %v3605_v32 = vmul.f32 %v6950_v44, %v6950_v44 }
0x11f1   : > { %v3609_v39 = vsel %vm2172_vm6, %v3605_v32, 0.0 }
0x11f2   : > { %3610 = vadd.xlane.f32.xlu1 %v3609_v39 }
0x1217   : > { %v3983_v35 = vpop.f32.mrf.mxu1 }
0x1218   : > { %4187 = vrot.lane.b32.xlu2 %v3983_v35, %s7444_s17 }
0x1226   : > { %v3986_v49 = vpop.f32.mrf.mxu1 }
0x1227   : > { %4189 = vrot.lane.b32.xlu2 %v3986_v49, %s7444_s17 }
0x1234   : > { %v3885_v3 = vpop.f32.mrf.mxu2 }
0x123c   : > { %v3888_v27 = vpop.f32.mrf.mxu2 }
0x1244   : > { %v4081_v59 = vpop.f32.mrf.mxu2 }
0x1245   : > { %4195 = vrot.lane.b32.xlu0 %v4081_v59, %s7445_s29 }
0x1246   : > { %v4179_v45 = vpop.f32.mrf.mxu1 }
0x1247   : > { %4203 = vrot.lane.b32.xlu2 %v4179_v45, %s7447_s28 }
0x124e   : > { %v4182_v58 = vpop.f32.mrf.mxu1 }
0x124f   : > { %4205 = vrot.lane.b32.xlu2 %v4182_v58, %s7447_s28 }
0x1265   : > { %v3611_v60 = vpop.xlane.xlu1 %3610 }
0x1266   : > { %v3613_v37 = vmul.f32 %v3611_v60, %v6562_v56 }
0x1268   : > { %v3615_v38 = vadd.f32 1e-05, %v3613_v37 }
0x126a   : > { %5877 = vrsqrt.f32 %v3615_v38  ;;  %vm3632_vm5 = vweird.f32 %v3615_v38 }
0x126f   : > { %v4084_v31 = vpop.f32.mrf.mxu2 }
0x1270   : > { %4197 = vrot.lane.b32.xlu0 %v4084_v31, %s7445_s29  ;;  %v5878_v33 = vpop.eup %5877 }
0x1271   : > { %v3627_v36 = vmul.f32 %v5878_v33, %v3615_v38  ;;  %vm3633_vm13 = vweird.f32 %v5878_v33 }
0x1272   : > { %v4188_v2 = vpop.permute.xlu2 %4187  ;;  %vm3634_vm14 = vmor %vm3632_vm5, %vm3633_vm13 }
0x1273   : > { %v4209_v9 = vsel %vm1934_vm2, %v3885_v3, %v4188_v2  ;;  %v3628_v43 = vmul.f32 %v5878_v33, %v3627_v36 }
0x1275   : > { %v3629_v32 = vmul.f32 0.5, %v3628_v43 }
0x1277   : > { %v3630_v49 = vsub.f32 1.5, %v3629_v32 }
0x1279   : > { %v3631_v59 = vmul.f32 %v5878_v33, %v3630_v49 }
0x127b   : > { %v3635_v13 = vsel %vm3634_vm14, %v5878_v33, %v3631_v59  ;;  %v4344_v59 = vld [vmem:[%s7452_s20 + $0x10] sm:$0xff] }
0x127c   : > { %v3637_v6 = vmul.f32 %v3635_v13, %v6950_v44 }
0x1281   : > { %v4190_v8 = vpop.permute.xlu2 %4189 }
0x1282   : > { %v4210_v20 = vsel %vm1934_vm2, %v3888_v27, %v4190_v8 }
0x129a   : > { %3595 = vadd.xlane.f32.xlu0 %v3594_v50  ;;  %v5740_v50 = vld [vmem:[%s7430_s12 + $0x1] ss:$0 sm:$0xff] }
0x12a1   : > { %v4204_v12 = vpop.permute.xlu2 %4203 }
0x12a9   : > { %v4206_v1 = vpop.permute.xlu2 %4205 }
0x12b7   : > { %v4196_v46 = vpop.permute.xlu0 %4195 }
0x12b8   : > { %v4211_v19 = vsel %vm1962_vm3, %v4209_v9, %v4196_v46  ;;  %v3642_v9 = vmul.f32 %v5739_v47, %v3637_v6  ;;  %v5738_v46 = vld [vmem:[%s7451_s24] ss:$0 sm:$0xff]  ;;  %s7456_s24 = sld [smem:[#allocation41_spill]] }
0x12b9   : > { %v4213_v40 = vsel %vm2626_vm7, %v4211_v19, %v4204_v12 }
0x12ba   : > { %5507 = vmatmul.msk.f32.vlgmr.msra.gmra.mxu0 %vm2172_vm6, %v4213_v40  ;;  %v3647_v12 = vadd.f32 %v5740_v50, %v3642_v9 }
0x12e2   : > { %v4198_v41 = vpop.permute.xlu0 %4197 }
0x12e3   : > { %v4212_v22 = vsel %vm1962_vm3, %v4210_v20, %v4198_v41  ;;  %v3653_v20 = vsel %vm2172_vm6, %v3647_v12, 0.0 }
0x12e4   : > { %v4214_v23 = vsel %vm2626_vm7, %v4212_v22, %v4206_v1 }
0x12e5   : > { %5508 = vmatmul.msk.f32.gmra.mxu0 %vm2172_vm6, %v4214_v23 }
0x130d   : > { %v3596_v29 = vpop.xlane.xlu0 %3595 }
0x130e   : > { %v3600_v17 = vmul.f32 %v3596_v29, %v6562_v56 }
0x1310   : > { %v3602_v52 = vsub.f32 %v3588_v57, %v3600_v17 }
0x1312   : > { %v3604_v30 = vmul.f32 %v3602_v52, %v3602_v52 }
0x1314   : > { %v3606_v11 = vsel %vm2172_vm6, %v3604_v30, 0.0 }
0x1315   : > { %3607 = vadd.xlane.f32.xlu2 %v3606_v11 }
0x1337   : > { %v4241_v19 = vpop.f32.mrf.mxu0 }
0x1338   : > { %v4242_v40 = vadd.f32 %v5738_v46, %v4241_v19 }
0x133a   : > { %v4247_v41 = vadd.f32 %v4242_v40, %v6766_v14 }
0x133c   : > { %v4251_v23 = vsel %vm2172_vm6, %v4247_v41, 0.0 }
0x1362   : > { %v4244_v1 = vpop.f32.mrf.mxu0 }
0x1363   : > { %v4245_v22 = vadd.f32 %v5738_v46, %v4244_v1 }
0x1365   : > { %v4248_v44 = vadd.f32 %v4245_v22, %v6770_v18 }
0x1367   : > { %v4254_v29 = vsel %vm2172_vm6, %v4248_v44, 0.0 }
0x1388   : > { %v3608_v10 = vpop.xlane.xlu2 %3607 }
0x1389   : > { %v3612_v28 = vmul.f32 %v3608_v10, %v6562_v56 }
0x138b   : > { %v3614_v25 = vadd.f32 1e-05, %v3612_v28 }
0x138d   : > { %5879 = vrsqrt.f32 %v3614_v25  ;;  %vm3622_vm8 = vweird.f32 %v3614_v25 }
0x1393   : > { %v5880_v39 = vpop.eup %5879 }
0x1394   : > { %v3617_v35 = vmul.f32 %v5880_v39, %v3614_v25  ;;  %vm3623_vm4 = vweird.f32 %v5880_v39 }
0x1395   : > { %vm3624_vm9 = vmor %vm3622_vm8, %vm3623_vm4 }
0x1396   : > { %v3618_v3 = vmul.f32 %v5880_v39, %v3617_v35 }
0x1398   : > { %v3619_v27 = vmul.f32 0.5, %v3618_v3 }
0x139a   : > { %v3620_v45 = vsub.f32 1.5, %v3619_v27  ;;  %v4345_v27 = vld [vmem:[%s7452_s20 + $0x18] sm:$0xff] }
0x139b   : > { %4368 = vmatpush.msra.mxu3 %v4345_v27 }
0x139c   : > { %v3621_v58 = vmul.f32 %v5880_v39, %v3620_v45  ;;  %v4343_v45 = vld [vmem:[%s7452_s20 + $0x8] sm:$0xff] }
0x139d   : > { %4369 = vmatpush.msra.mxu3 %v4344_v59 }
0x139e   : > { %v3625_v31 = vsel %vm3624_vm9, %v5880_v39, %v3621_v58  ;;  %v4342_v58 = vld [vmem:[%s7452_s20] sm:$0xff] }
0x139f   : > { %v3636_v5 = vmul.f32 %v3625_v31, %v3602_v52  ;;  %4370 = vmatpush.msra.mxu3 %v4343_v45 }
0x13a1   : > { %v3641_v57 = vmul.f32 %v5739_v47, %v3636_v5  ;;  %4371 = vmatpush.msra.mxu3 %v4342_v58  ;;  %v4308_v47 = vld [vmem:[%s7453_s11 + $0x18] sm:$0xff] }
0x13a2   : > { %4331 = vmatpush.msrb.mxu2 %v4308_v47 }
0x13a3   : > { %v3646_v2 = vadd.f32 %v5740_v50, %v3641_v57  ;;  %v4307_v50 = vld [vmem:[%s7453_s11 + $0x10] sm:$0xff] }
0x13a4   : > { %4332 = vmatpush.msrb.mxu2 %v4307_v50 }
0x13a5   : > { %v3650_v8 = vsel %vm2172_vm6, %v3646_v2, 0.0 }
0x13a6   : > { %3651 = vadd.xlane.f32.xlu1 %v3650_v8 }
0x13ae   : > { %3654 = vadd.xlane.f32.xlu1 %v3653_v20 }
0x13b6   : > { %4252 = vadd.xlane.f32.xlu1 %v4251_v23 }
0x13be   : > { %4255 = vadd.xlane.f32.xlu1 %v4254_v29 }
0x1419   : > { %v3652_v17 = vpop.xlane.xlu1 %3651 }
0x141a   : > { %v3656_v52 = vmul.f32 %v3652_v17, %v6562_v56  ;;  %v5741_v17 = vld [vmem:[%s7454_s26] ss:$0 sm:$0xff]  ;;  %s7457_s26 = sld [smem:[#allocation42_spill]] }
0x141c   : > { %v6991_v30 = vsub.f32 %v3646_v2, %v3656_v52  ;;  %v4306_v2 = vld [vmem:[%s7453_s11 + $0x8] sm:$0xff] }
0x141d   : > { %4333 = vmatpush.msrb.mxu2 %v4306_v2 }
0x141e   : > { %v3660_v11 = vmul.f32 %v6991_v30, %v6991_v30 }
0x1420   : > { %v3662_v14 = vsel %vm2172_vm6, %v3660_v11, 0.0 }
0x1421   : > { %3663 = vadd.xlane.f32.xlu0 %v3662_v14  ;;  %v3655_v60 = vpop.xlane.xlu1 %3654 }
0x1422   : > { %v3657_v37 = vmul.f32 %v3655_v60, %v6562_v56  ;;  %v5743_v60 = vld [vmem:[%s7455_s2] ss:$0 sm:$0xff]  ;;  %s7458_s2 = sld [smem:[#allocation46_spill]] }
0x1424   : > { %v6997_v38 = vsub.f32 %v3647_v12, %v3657_v37  ;;  %v4305_v12 = vld [vmem:[%s7453_s11] sm:$0xff] }
0x1425   : > { %4334 = vmatpush.msrb.mxu2 %v4305_v12 }
0x1426   : > { %v3661_v18 = vmul.f32 %v6997_v38, %v6997_v38 }
0x1428   : > { %v3665_v33 = vsel %vm2172_vm6, %v3661_v18, 0.0 }
0x1429   : > { %3666 = vadd.xlane.f32.xlu2 %v3665_v33  ;;  %v4253_v10 = vpop.xlane.xlu1 %4252 }
0x142a   : > { %v4257_v28 = vmul.f32 %v4253_v10, %v6562_v56 }
0x142c   : > { %v7003_v36 = vsub.f32 %v4247_v41, %v4257_v28 }
0x142e   : > { %v4261_v25 = vmul.f32 %v7003_v36, %v7003_v36 }
0x1430   : > { %v4263_v43 = vsel %vm2172_vm6, %v4261_v25, 0.0 }
0x1431   : > { %4264 = vadd.xlane.f32.xlu1 %v4263_v43  ;;  %v4256_v32 = vpop.xlane.xlu1 %4255 }
0x1432   : > { %v4258_v39 = vmul.f32 %v4256_v32, %v6562_v56 }
0x1434   : > { %v7009_v35 = vsub.f32 %v4248_v44, %v4258_v39 }
0x1436   : > { %v4262_v49 = vmul.f32 %v7009_v35, %v7009_v35 }
0x1438   : > { %v4266_v3 = vsel %vm2172_vm6, %v4262_v49, 0.0 }
0x1439   : > { %4267 = vadd.xlane.f32.xlu0 %v4266_v3 }
0x1494   : > { %v3664_v31 = vpop.xlane.xlu0 %3663 }
0x1495   : > { %v3668_v13 = vmul.f32 %v3664_v31, %v6562_v56 }
0x1497   : > { %v3670_v5 = vadd.f32 1e-05, %v3668_v13 }
0x1499   : > { %5881 = vrsqrt.f32 %v3670_v5  ;;  %vm3678_vm11 = vweird.f32 %v3670_v5 }
0x149c   : > { %v3667_v57 = vpop.xlane.xlu2 %3666 }
0x149d   : > { %v3669_v6 = vmul.f32 %v3667_v57, %v6562_v56  ;;  %v5742_v57 = vld [vmem:[%s7456_s24] ss:$0 sm:$0xff]  ;;  %s7459_s24 = sld [smem:[#allocation44_spill]] }
0x149f   : > { %v5882_v8 = vpop.eup %5881  ;;  %v3671_v9 = vadd.f32 1e-05, %v3669_v6 }
0x14a0   : > { %v3673_v46 = vmul.f32 %v5882_v8, %v3670_v5  ;;  %vm3679_vm10 = vweird.f32 %v5882_v8 }
0x14a1   : > { %5883 = vrsqrt.f32 %v3671_v9  ;;  %vm3680_vm12 = vmor %vm3678_vm11, %vm3679_vm10  ;;  %vm3688_vm4 = vweird.f32 %v3671_v9 }
0x14a2   : > { %v3674_v19 = vmul.f32 %v5882_v8, %v3673_v46 }
0x14a4   : > { %v3675_v40 = vmul.f32 0.5, %v3674_v19  ;;  %v4265_v20 = vpop.xlane.xlu1 %4264 }
0x14a5   : > { %v4269_v41 = vmul.f32 %v4265_v20, %v6562_v56 }
0x14a6   : > { %v3676_v1 = vsub.f32 1.5, %v3675_v40 }
0x14a7   : > { %v5884_v22 = vpop.eup %5883  ;;  %v4271_v23 = vadd.f32 1e-05, %v4269_v41 }
0x14a8   : > { %v3677_v44 = vmul.f32 %v5882_v8, %v3676_v1  ;;  %v3683_v29 = vmul.f32 %v5884_v22, %v3671_v9  ;;  %vm3689_vm13 = vweird.f32 %v5884_v22  ;;  %v5745_v1 = vld [vmem:[%s7458_s2] ss:$0 sm:$0xff]  ;;  %s6023_s2 = smov 32  }
0x14a9   : > { %5885 = vrsqrt.f32 %v4271_v23  ;;  %vm3690_vm5 = vmor %vm3688_vm4, %vm3689_vm13  ;;  %vm4279_vm8 = vweird.f32 %v4271_v23 }
0x14aa   : > { %v3681_v52 = vsel %vm3680_vm12, %v5882_v8, %v3677_v44  ;;  %v3684_v11 = vmul.f32 %v5884_v22, %v3683_v29 }
0x14ab   : > { %v3692_v14 = vmul.f32 %v3681_v52, %v6991_v30 }
0x14ac   : > { %v3685_v37 = vmul.f32 0.5, %v3684_v11  ;;  %v4268_v18 = vpop.xlane.xlu0 %4267 }
0x14ad   : > { %v3697_v33 = vmul.f32 %v5741_v17, %v3692_v14  ;;  %v4270_v10 = vmul.f32 %v4268_v18, %v6562_v56 }
0x14ae   : > { %v3686_v28 = vsub.f32 1.5, %v3685_v37 }
0x14af   : > { %v5886_v25 = vpop.eup %5885  ;;  %v4272_v43 = vadd.f32 1e-05, %v4270_v10  ;;  %v3702_v32 = vadd.f32 %v5743_v60, %v3697_v33 }
0x14b0   : > { %v3687_v39 = vmul.f32 %v5884_v22, %v3686_v28  ;;  %v4274_v49 = vmul.f32 %v5886_v25, %v4271_v23  ;;  %vm4280_vm14 = vweird.f32 %v5886_v25 }
0x14b1   : > { %5887 = vrsqrt.f32 %v4272_v43  ;;  %5511 = vmatmul.msk.f32.vlgmr.msra.gmra.mxu3 %vm2172_vm6, %v3702_v32  ;;  %vm4281_vm9 = vmor %vm4279_vm8, %vm4280_vm14  ;;  %vm4289_vm11 = vweird.f32 %v4272_v43 }
0x14b2   : > { %v3691_v30 = vsel %vm3690_vm5, %v5884_v22, %v3687_v39  ;;  %v4275_v3 = vmul.f32 %v5886_v25, %v4274_v49 }
0x14b3   : > { %v3693_v27 = vmul.f32 %v3691_v30, %v6997_v38  ;;  %v5744_v38 = vld [vmem:[%s7457_s26] ss:$0 sm:$0xff]  ;;  %s7469_s26 = sld [smem:[#allocation56_spill]] }
0x14b4   : > { %v4276_v59 = vmul.f32 0.5, %v4275_v3 }
0x14b5   : > { %v3698_v45 = vmul.f32 %v5741_v17, %v3693_v27 }
0x14b6   : > { %v4277_v58 = vsub.f32 1.5, %v4276_v59 }
0x14b7   : > { %v5888_v31 = vpop.eup %5887  ;;  %v3703_v13 = vadd.f32 %v5743_v60, %v3698_v45 }
0x14b8   : > { %v4278_v5 = vmul.f32 %v5886_v25, %v4277_v58  ;;  %v4284_v47 = vmul.f32 %v5888_v31, %v4272_v43  ;;  %vm4290_vm10 = vweird.f32 %v5888_v31 }
0x14b9   : > { %5512 = vmatmul.msk.f32.gmra.mxu3 %vm2172_vm6, %v3703_v13  ;;  %vm4291_vm12 = vmor %vm4289_vm11, %vm4290_vm10 }
0x14ba   : > { %v4282_v50 = vsel %vm4281_vm9, %v5886_v25, %v4278_v5  ;;  %v4285_v6 = vmul.f32 %v5888_v31, %v4284_v47 }
0x14bb   : > { %v4293_v2 = vmul.f32 %v4282_v50, %v7003_v36 }
0x14bc   : > { %v4286_v8 = vmul.f32 0.5, %v4285_v6 }
0x14bd   : > { %v4298_v9 = vmul.f32 %v5742_v57, %v4293_v2 }
0x14be   : > { %v4287_v46 = vsub.f32 1.5, %v4286_v8 }
0x14bf   : > { %v7035_v12 = vadd.f32 %v5744_v38, %v4298_v9 }
0x14c0   : > { %v4288_v19 = vmul.f32 %v5888_v31, %v4287_v46 }
0x14c1   : > { %5509 = vmatmul.msk.f32.vlgmr.msrb.gmra.mxu2 %vm2172_vm6, %v7035_v12 }
0x14c2   : > { %v4292_v40 = vsel %vm4291_vm12, %v5888_v31, %v4288_v19 }
0x14c3   : > { %v4294_v20 = vmul.f32 %v4292_v40, %v7009_v35  ;;  %v5746_v35 = vld [vmem:[%s7459_s24] ss:$0 sm:$0xff]  ;;  %s7470_s24 = sld [smem:[#allocation57_spill]] }
0x14c5   : > { %v4299_v41 = vmul.f32 %v5742_v57, %v4294_v20 }
0x14c7   : > { %v7040_v36 = vadd.f32 %v5744_v38, %v4299_v41 }
0x14c9   : > { %5510 = vmatmul.msk.f32.gmra.mxu2 %vm2172_vm6, %v7040_v36 }
0x1534   : > { %v4373_v22 = vpop.f32.mrf.mxu3 }
0x1535   : > { %v4374_v23 = vadd.f32 %v5745_v1, %v4373_v22 }
0x1537   : > { %4482 = vrot.lane.b32.xlu1 %v4374_v23, %s7420_s3 }
0x153c   : > { %v4376_v44 = vpop.f32.mrf.mxu3 }
0x153d   : > { %v4377_v29 = vadd.f32 %v5745_v1, %v4376_v44 }
0x153f   : > { %4484 = vrot.lane.b32.xlu2 %v4377_v29, %s7420_s3  ;;  %5513 = vmatpush.xpose.msk.msra.mxu1 %vm1934_vm2, %v4377_v29  ;;  %v7048_v17 = vpack.i.bf16 %v4374_v23, %v4377_v29 }
0x1540   : > { %4674 = vrot.lane.b32.xlu1 %v4374_v23, %s7436_s19 }
0x1543   : > { %5514 = vmatpush.xpose.msk.msra.mxu1 %vm1934_vm2, %v4374_v23 }
0x1544   : > { %v4336_v52 = vpop.f32.mrf.mxu2 }
0x1545   : > { %v4337_v11 = vadd.f32 %v5746_v35, %v4336_v52 }
0x1547   : > { %v4384_v14 = vmul.f32 %v4337_v11, %v6409_v63 }
0x1548   : > { %4578 = vrot.lane.b32.xlu1 %v4374_v23, %s7435_s7 }
0x1549   : > { %4478 = vrot.lane.b32.xlu0 %v4384_v14, %s7420_s3  ;;  %5515 = vmatmul.msk.f32.vlgmr.msra.gmra.mxu1 %vm1934_vm2, %v4384_v14 }
0x154c   : > { %v4339_v60 = vpop.f32.mrf.mxu2 }
0x154d   : > { %v4340_v37 = vadd.f32 %v5746_v35, %v4339_v60 }
0x154f   : > { %v4385_v18 = vmul.f32 %v4340_v37, %v6409_v63 }
0x1551   : > { %4576 = vrot.lane.b32.xlu1 %v4385_v18, %s7435_s7  ;;  %4480 = vrot.lane.b32.xlu2 %v4385_v18, %s7420_s3  ;;  %s7462_s3 = sld [smem:[#allocation51_spill]] }
0x1552   : > { %4676 = vrot.lane.b32.xlu0 %v4377_v29, %s7436_s19  ;;  %5516 = vmatmul.msk.f32.gmra.mxu1 %vm1934_vm2, %v4385_v18 }
0x1559   : > { %4670 = vrot.lane.b32.xlu2 %v4384_v14, %s7436_s19 }
0x155a   : > { %4580 = vrot.lane.b32.xlu0 %v4377_v29, %s7435_s7 }
0x1561   : > { %4672 = vrot.lane.b32.xlu2 %v4385_v18, %s7436_s19  ;;  %s7464_s19 = sld [smem:[#allocation50_spill]] }
0x1562   : > { %4574 = vrot.lane.b32.xlu0 %v4384_v14, %s7435_s7  ;;  %s7467_s7 = sld [smem:[#allocation54_spill]] }
0x1599   : > { %v4485_v33 = vpop.permute.xlu2 %4484 }
0x159a   : > { %5519 = vmatpush.xpose.msk.msra.mxu2 %vm1934_vm2, %v4485_v33 }
0x15a9   : > { %v4483_v63 = vpop.permute.xlu1 %4482 }
0x15aa   : > { %5520 = vmatpush.xpose.msk.msra.mxu2 %vm1934_vm2, %v4483_v63 }
0x15ab   : > { %v4481_v28 = vpop.permute.xlu2 %4480 }
0x15b2   : > { %v4675_v43 = vpop.permute.xlu1 %4674 }
0x15b3   : > { %v4671_v49 = vpop.permute.xlu2 %4670 }
0x15ba   : > { %v4579_v59 = vpop.permute.xlu1 %4578 }
0x15bb   : > { %v4479_v10 = vpop.permute.xlu0 %4478  ;;  %v4673_v31 = vpop.permute.xlu2 %4672 }
0x15bc   : > { %5521 = vmatmul.msk.f32.vlgmr.msra.gmra.mxu2 %vm1934_vm2, %v4479_v10 }
0x15c3   : > { %v4577_v5 = vpop.permute.xlu1 %4576 }
0x15c4   : > { %v4677_v25 = vpop.permute.xlu0 %4676  ;;  %5522 = vmatmul.msk.f32.gmra.mxu2 %vm1934_vm2, %v4481_v28 }
0x15c5   : > { %5531 = vmatpush.xpose.msk.msrb.mxu2 %vm1934_vm2, %v4677_v25 }
0x15c6   : > { %v4415_v32 = vpop.f32.mrf.mxu1 }
0x15c7   : > { %v4416_v39 = vadd.f32 %v4415_v32, %v6445_v21 }
0x15c9   : > { %5532 = vmatpush.xpose.msk.msrb.mxu2 %vm1934_vm2, %v4675_v43  ;;  %v4421_v30 = vsel %vm1962_vm3, %v4416_v39, -inf }
0x15ca   : > { %4422 = vmax.xlane.f32.xlu0 %v4421_v30 }
0x15cc   : > { %v4581_v3 = vpop.permute.xlu0 %4580  ;;  %5533 = vmatmul.msk.f32.vlgmr.msrb.gmra.mxu2 %vm1934_vm2, %v4671_v49 }
0x15cd   : > { %5525 = vmatpush.xpose.msk.msrb.mxu1 %vm1934_vm2, %v4581_v3 }
0x15cf   : > { %v4418_v27 = vpop.f32.mrf.mxu1 }
0x15d0   : > { %v4419_v45 = vadd.f32 %v4418_v27, %v6445_v21 }
0x15d1   : > { %5526 = vmatpush.xpose.msk.msrb.mxu1 %vm1934_vm2, %v4579_v59 }
0x15d2   : > { %v4424_v58 = vsel %vm1962_vm3, %v4419_v45, -inf }
0x15d3   : > { %4425 = vmax.xlane.f32.xlu2 %v4424_v58 }
0x15d4   : > { %v4575_v13 = vpop.permute.xlu0 %4574  ;;  %5534 = vmatmul.msk.f32.gmra.mxu2 %vm1934_vm2, %v4673_v31 }
0x15d5   : > { %5527 = vmatmul.msk.f32.vlgmr.msrb.gmra.mxu1 %vm1934_vm2, %v4575_v13 }
0x15dd   : > { %5528 = vmatmul.msk.f32.gmra.mxu1 %vm1934_vm2, %v4577_v5 }
0x163d   : > { %v4423_v47 = vpop.xlane.xlu0 %4422 }
0x163e   : > { %v4427_v57 = vsub.f32 %v4416_v39, %v4423_v47 }
0x163f   : > { %v4511_v50 = vpop.f32.mrf.mxu2 }
0x1640   : > { %v4429_v6 = vmul.f32 1.442695, %v4427_v57  ;;  %v4512_v2 = vadd.f32 %v4511_v50, %v6445_v21 }
0x1642   : > { %5889 = vpow2.f32 %v4429_v6  ;;  %v4517_v38 = vsel %vm1962_vm3, %v4512_v2, -inf }
0x1643   : > { %4518 = vmax.xlane.f32.xlu2 %v4517_v38 }
0x1646   : > { %v4426_v40 = vpop.xlane.xlu2 %4425 }
0x1647   : > { %v4514_v8 = vpop.f32.mrf.mxu2  ;;  %v4428_v1 = vsub.f32 %v4419_v45, %v4426_v40 }
0x1648   : > { %v7084_v9 = vpop.eup %5889  ;;  %v4515_v35 = vadd.f32 %v4514_v8, %v6445_v21 }
0x1649   : > { %v4433_v46 = vsel %vm1962_vm3, %v7084_v9, 0.0  ;;  %v4431_v44 = vmul.f32 1.442695, %v4428_v1 }
0x164a   : > { %v4520_v60 = vsel %vm1962_vm3, %v4515_v35, -inf }
0x164b   : > { %4434 = vadd.xlane.f32.xlu2 %v4433_v46  ;;  %5891 = vpow2.f32 %v4431_v44 }
0x164f   : > { %v4703_v19 = vpop.f32.mrf.mxu2 }
0x1650   : > { %v4704_v18 = vadd.f32 %v4703_v19, %v6445_v21 }
0x1651   : > { %v5892_v33 = vpop.eup %5891 }
0x1652   : > { %v4607_v20 = vpop.f32.mrf.mxu1  ;;  %v4436_v63 = vsel %vm1962_vm3, %v5892_v33, 0.0  ;;  %v4709_v10 = vsel %vm1962_vm3, %v4704_v18, -inf }
0x1653   : > { %v4608_v41 = vadd.f32 %v4607_v20, %v6445_v21 }
0x1655   : > { %v4613_v22 = vsel %vm1962_vm3, %v4608_v41, -inf }
0x1656   : > { %4614 = vmax.xlane.f32.xlu1 %v4613_v22 }
0x1657   : > { %v4706_v23 = vpop.f32.mrf.mxu2 }
0x1658   : > { %v4707_v29 = vadd.f32 %v4706_v23, %v6445_v21 }
0x165a   : > { %v4610_v52 = vpop.f32.mrf.mxu1  ;;  %v4712_v11 = vsel %vm1962_vm3, %v4707_v29, -inf }
0x165b   : > { %v7094_v14 = vadd.f32 %v4610_v52, %v6445_v21  ;;  %4713 = vmax.xlane.f32.xlu2 %v4712_v11 }
0x165d   : > { %v4616_v37 = vsel %vm1962_vm3, %v7094_v14, -inf }
0x165e   : > { %4521 = vmax.xlane.f32.xlu1 %v4520_v60  ;;  %4617 = vmax.xlane.f32.xlu0 %v4616_v37 }
0x1666   : > { %4437 = vadd.xlane.f32.xlu1 %v4436_v63  ;;  %4710 = vmax.xlane.f32.xlu0 %v4709_v10 }
0x1673   : > { %5707 = vrot.lane.b32.xlu2 %v7048_v17, %s7432_s14  ;;  %s7463_s14 = sld [smem:[#allocation49_spill]] }
0x167a   : > { %5702 = vrot.lane.b32.xlu0 %v7048_v17, %s7431_s13  ;;  %s7460_s13 = sld [smem:[#allocation47_spill]] }
0x167f   : > { %5712 = vrot.lane.b32.xlu1 %v7048_v17, %s7433_s16  ;;  %s7465_s16 = sld [smem:[#allocation53_spill]] }
0x16b6   : > { %v4519_v28 = vpop.xlane.xlu2 %4518 }
0x16b7   : > { %v4523_v25 = vsub.f32 %v4512_v2, %v4519_v28 }
0x16b9   : > { %v4525_v43 = vmul.f32 1.442695, %v4523_v25 }
0x16bb   : > { %5893 = vpow2.f32 %v4525_v43 }
0x16be   : > { %v4435_v39 = vpop.xlane.xlu2 %4434 }
0x16c1   : > { %v7108_v21 = vpop.eup %5893 }
0x16c2   : > { %v4529_v32 = vsel %vm1962_vm3, %v7108_v21, 0.0 }
0x16c3   : > { %4530 = vadd.xlane.f32.xlu1 %v4529_v32 }
0x16c9   : > { %v4615_v49 = vpop.xlane.xlu1 %4614 }
0x16ca   : > { %v4619_v30 = vsub.f32 %v4608_v41, %v4615_v49 }
0x16cc   : > { %v4621_v3 = vmul.f32 1.442695, %v4619_v30 }
0x16ce   : > { %5895 = vpow2.f32 %v4621_v3  ;;  %v4714_v27 = vpop.xlane.xlu2 %4713 }
0x16cf   : > { %v4716_v59 = vsub.f32 %v4707_v29, %v4714_v27  ;;  %5897 = vrcp.f32 %v4435_v39 }
0x16d1   : > { %v4719_v45 = vmul.f32 1.442695, %v4716_v59  ;;  %v4618_v58 = vpop.xlane.xlu0 %4617  ;;  %v4522_v31 = vpop.xlane.xlu1 %4521 }
0x16d2   : > { %v4524_v13 = vsub.f32 %v4515_v35, %v4522_v31 }
0x16d3   : > { %5899 = vpow2.f32 %v4719_v45 }
0x16d4   : > { %v7112_v5 = vpop.eup %5895  ;;  %v4527_v47 = vmul.f32 1.442695, %v4524_v13 }
0x16d5   : > { %v4625_v57 = vsel %vm1962_vm3, %v7112_v5, 0.0  ;;  %v5898_v6 = vpop.eup %5897 }
0x16d6   : > { %4626 = vadd.xlane.f32.xlu0 %v4625_v57  ;;  %v5708_v50 = vpop.permute.xlu2 %5707  ;;  %5901 = vpow2.f32 %v4527_v47  ;;  %v4441_v40 = vmul.f32 %v5898_v6, %v7084_v9 }
0x16d7   : > { %v5709_v2 = vunpack.i.l.bf16 %v5708_v50  ;;  %v5710_v8 = vunpack.i.h.bf16 %v5708_v50 }
0x16d9   : > { %v5900_v38 = vpop.eup %5899  ;;  %v4711_v46 = vpop.xlane.xlu0 %4710  ;;  %4469 = vmatpush.msrb.mxu0 %v5709_v2 }
0x16da   : > { %v4438_v19 = vpop.xlane.xlu1 %4437  ;;  %v4715_v20 = vsub.f32 %v4704_v18, %v4711_v46  ;;  %v4724_v41 = vsel %vm1962_vm3, %v5900_v38, 0.0 }
0x16db   : > { %5903 = vrcp.f32 %v4438_v19  ;;  %4725 = vadd.xlane.f32.xlu2 %v4724_v41  ;;  %4470 = vmatpush.msrb.mxu0 %v5710_v8 }
0x16dc   : > { %v4717_v1 = vmul.f32 1.442695, %v4715_v20  ;;  %5517 = vmatmul.msk.f32.vlgmr.msrb.gmra.mxu0 %vm1962_vm3, %v4441_v40  ;;  %v5902_v22 = vpop.eup %5901 }
0x16dd   : > { %v4532_v23 = vsel %vm1962_vm3, %v5902_v22, 0.0 }
0x16de   : > { %5905 = vpow2.f32 %v4717_v1  ;;  %4533 = vadd.xlane.f32.xlu1 %v4532_v23  ;;  %v4381_v23 = vld [vmem:[%s7460_s13 + $0x10] sm:$0xff] }
0x16e1   : > { %v5904_v44 = vpop.eup %5903 }
0x16e2   : > { %v4442_v29 = vmul.f32 %v5904_v44, %v5892_v33  ;;  %v4620_v33 = vsub.f32 %v7094_v14, %v4618_v58  ;;  %v4380_v44 = vld [vmem:[%s7460_s13 + $0x8] sm:$0xff] }
0x16e4   : > { %v5906_v35 = vpop.eup %5905  ;;  %5518 = vmatmul.msk.f32.gmra.mxu0 %vm1962_vm3, %v4442_v29  ;;  %v4623_v10 = vmul.f32 1.442695, %v4620_v33  ;;  %v4379_v29 = vld [vmem:[%s7460_s13] sm:$0xff] }
0x16e5   : > { %v4721_v9 = vsel %vm1962_vm3, %v5906_v35, 0.0 }
0x16e6   : > { %4722 = vadd.xlane.f32.xlu1 %v4721_v9  ;;  %5907 = vpow2.f32 %v4623_v10 }
0x16ec   : > { %v5703_v52 = vpop.permute.xlu0 %5702  ;;  %v5908_v28 = vpop.eup %5907 }
0x16ed   : > { %v5704_v11 = vunpack.i.l.bf16 %v5703_v52  ;;  %v5705_v60 = vunpack.i.h.bf16 %v5703_v52  ;;  %v4628_v25 = vsel %vm1962_vm3, %v5908_v28, 0.0 }
0x16ef   : > { %4565 = vmatpush.msrb.mxu3 %v5704_v11 }
0x16f1   : > { %4566 = vmatpush.msrb.mxu3 %v5705_v60  ;;  %v5713_v37 = vpop.permute.xlu1 %5712 }
0x16f2   : > { %v5714_v18 = vunpack.i.l.bf16 %v5713_v37  ;;  %v5715_v63 = vunpack.i.h.bf16 %v5713_v37 }
0x16f4   : > { %4757 = vmatpush.msra.mxu3 %v5714_v18 }
0x16f6   : > { %4758 = vmatpush.msra.mxu3 %v5715_v63 }
0x16ff   : > { %5717 = vrot.lane.b32.xlu1 %v7048_v17, %s7434_s18  ;;  %s7466_s18 = sld [smem:[#allocation52_spill]] }
0x1729   : > { %4629 = vadd.xlane.f32.xlu1 %v4628_v25 }
0x1736   : > { %v4531_v43 = vpop.xlane.xlu1 %4530 }
0x1737   : > { %5909 = vrcp.f32 %v4531_v43 }
0x173d   : > { %v5910_v32 = vpop.eup %5909 }
0x173e   : > { %v4537_v39 = vmul.f32 %v5910_v32, %v7108_v21 }
0x1740   : > { %5523 = vmatmul.msk.f32.vlgmr.msrb.gmra.mxu3 %vm1962_vm3, %v4537_v39 }
0x1749   : > { %v4627_v58 = vpop.xlane.xlu0 %4626 }
0x174e   : > { %v4726_v14 = vpop.xlane.xlu2 %4725 }
0x1751   : > { %v4534_v49 = vpop.xlane.xlu1 %4533 }
0x1752   : > { %5911 = vrcp.f32 %v4534_v49 }
0x1758   : > { %v5912_v30 = vpop.eup %5911 }
0x1759   : > { %v4723_v3 = vpop.xlane.xlu1 %4722  ;;  %v4538_v17 = vmul.f32 %v5912_v30, %v5902_v22  ;;  %v4472_v19 = vpop.f32.mrf.mxu0  ;;  %v4382_v22 = vld [vmem:[%s7460_s13 + $0x18] sm:$0xff] }
0x175a   : > { %5913 = vrcp.f32 %v4723_v3  ;;  %4817 = vmatpush.msra.mxu1 %v4382_v22 }
0x175b   : > { %5524 = vmatmul.msk.f32.gmra.mxu3 %vm1962_vm3, %v4538_v17  ;;  %5915 = vrcp.f32 %v4726_v14 }
0x175c   : > { %5917 = vrcp.f32 %v4627_v58  ;;  %4818 = vmatpush.msra.mxu1 %v4381_v23  ;;  %v5748_v23 = vld [vmem:[%s7463_s14] ss:$0 sm:$0xff]  ;;  %s7473_s14 = sld [smem:[#allocation62_spill]] }
0x175e   : > { %4819 = vmatpush.msra.mxu1 %v4380_v44 }
0x1760   : > { %v5914_v27 = vpop.eup %5913  ;;  %4820 = vmatpush.msra.mxu1 %v4379_v29  ;;  %v5749_v29 = vld [vmem:[%s7464_s19] ss:$0 sm:$0xff]  ;;  %s7474_s19 = sld [smem:[#allocation60_spill]] }
0x1761   : > { %v4729_v59 = vmul.f32 %v5914_v27, %v5906_v35  ;;  %v5916_v45 = vpop.eup %5915  ;;  %v4475_v40 = vpop.f32.mrf.mxu0 }
0x1762   : > { %v4730_v31 = vmul.f32 %v5916_v45, %v5900_v38  ;;  %v5918_v13 = vpop.eup %5917 }
0x1763   : > { %5535 = vmatmul.msk.f32.vlgmr.msra.gmra.mxu3 %vm1962_vm3, %v4729_v59  ;;  %v4633_v50 = vmul.f32 %v5918_v13, %v7112_v5 }
0x176b   : > { %5536 = vmatmul.msk.f32.gmra.mxu3 %vm1962_vm3, %v4730_v31 }
0x1771   : > { %v5718_v21 = vpop.permute.xlu1 %5717 }
0x1772   : > { %v5719_v47 = vunpack.i.l.bf16 %v5718_v21  ;;  %v5720_v57 = vunpack.i.h.bf16 %v5718_v21 }
0x1774   : > { %4661 = vmatpush.msra.mxu0 %v5719_v47 }
0x1776   : > { %4662 = vmatpush.msra.mxu0 %v5720_v57 }
0x1777   : > { %5529 = vmatmul.msk.f32.vlgmr.msra.gmra.mxu0 %vm1962_vm3, %v4633_v50  ;;  %v4889_v50 = vld [vmem:[%s7462_s3 + $0x18] sm:$0xff] }
0x1778   : > { %4912 = vmatpush.msrb.mxu0 %v4889_v50 }
0x179c   : > { %v4630_v6 = vpop.xlane.xlu1 %4629 }
0x179d   : > { %5919 = vrcp.f32 %v4630_v6  ;;  %v4888_v6 = vld [vmem:[%s7462_s3 + $0x10] sm:$0xff] }
0x179e   : > { %4913 = vmatpush.msrb.mxu0 %v4888_v6 }
0x17a3   : > { %v5920_v2 = vpop.eup %5919 }
0x17a4   : > { %v4634_v8 = vmul.f32 %v5920_v2, %v5908_v28  ;;  %v4887_v2 = vld [vmem:[%s7462_s3 + $0x8] sm:$0xff] }
0x17a5   : > { %4914 = vmatpush.msrb.mxu0 %v4887_v2 }
0x17a6   : > { %5530 = vmatmul.msk.f32.gmra.mxu0 %vm1962_vm3, %v4634_v8  ;;  %v4886_v8 = vld [vmem:[%s7462_s3] sm:$0xff] }
0x17a7   : > { %4915 = vmatpush.msrb.mxu0 %v4886_v8 }
0x17c3   : > { %v4568_v38 = vpop.f32.mrf.mxu3 }
0x17c4   : > { %4768 = vrot.lane.b32.xlu0 %v4568_v38, %s7444_s17 }
0x17de   : > { %v4571_v46 = vpop.f32.mrf.mxu3 }
0x17df   : > { %4770 = vrot.lane.b32.xlu0 %v4571_v46, %s7444_s17  ;;  %s7461_s17 = sld [smem:[#allocation48_spill]] }
0x17e5   : > { %v5747_v43 = vld [vmem:[%s7461_s17] ss:$0 sm:$0xff] }
0x17e6   : > { %v4760_v5 = vpop.f32.mrf.mxu3 }
0x17e7   : > { %4784 = vrot.lane.b32.xlu0 %v4760_v5, %s7447_s28 }
0x17ee   : > { %v4763_v20 = vpop.f32.mrf.mxu3 }
0x17ef   : > { %4786 = vrot.lane.b32.xlu0 %v4763_v20, %s7447_s28  ;;  %s7468_s28 = sld [smem:[#allocation55_spill]] }
0x17f4   : > { %v4664_v41 = vpop.f32.mrf.mxu0 }
0x17f5   : > { %4776 = vrot.lane.b32.xlu2 %v4664_v41, %s7445_s29 }
0x1823   : > { %v4667_v1 = vpop.f32.mrf.mxu0 }
0x1824   : > { %4778 = vrot.lane.b32.xlu2 %v4667_v1, %s7445_s29 }
0x1836   : > { %v4769_v35 = vpop.permute.xlu0 %4768 }
0x1837   : > { %v4790_v11 = vsel %vm1934_vm2, %v4472_v19, %v4769_v35 }
0x184f   : > { %v4777_v52 = vpop.permute.xlu2 %4776 }
0x1850   : > { %v4792_v60 = vsel %vm1962_vm3, %v4790_v11, %v4777_v52 }
0x1851   : > { %v4771_v9 = vpop.permute.xlu0 %4770 }
0x1852   : > { %v4791_v63 = vsel %vm1934_vm2, %v4475_v40, %v4771_v9 }
0x1859   : > { %v4785_v37 = vpop.permute.xlu0 %4784 }
0x185a   : > { %v4794_v18 = vsel %vm2626_vm7, %v4792_v60, %v4785_v37 }
0x185b   : > { %5537 = vmatmul.msk.f32.vlgmr.msra.gmra.mxu1 %vm2172_vm6, %v4794_v18 }
0x1861   : > { %v4787_v10 = vpop.permute.xlu0 %4786 }
0x187e   : > { %v4779_v33 = vpop.permute.xlu2 %4778 }
0x187f   : > { %v4793_v28 = vsel %vm1962_vm3, %v4791_v63, %v4779_v33 }
0x1880   : > { %v4795_v25 = vsel %vm2626_vm7, %v4793_v28, %v4787_v10 }
0x1881   : > { %5538 = vmatmul.msk.f32.gmra.mxu1 %vm2172_vm6, %v4795_v25 }
0x18d8   : > { %v4822_v32 = vpop.f32.mrf.mxu1 }
0x18d9   : > { %v4823_v39 = vadd.f32 %v5747_v43, %v4822_v32 }
0x18db   : > { %v4828_v49 = vadd.f32 %v4823_v39, %v7035_v12 }
0x18dd   : > { %v4832_v30 = vsel %vm2172_vm6, %v4828_v49, 0.0 }
0x18de   : > { %4833 = vadd.xlane.f32.xlu2 %v4832_v30  ;;  %v4948_v30 = vld [vmem:[%s7465_s16 + $0x38] sm:$0xff] }
0x18df   : > { %4967 = vmatpush.msra.mxu2 %v4948_v30 }
0x18fe   : > { %v4825_v3 = vpop.f32.mrf.mxu1 }
0x18ff   : > { %v4826_v17 = vadd.f32 %v5747_v43, %v4825_v3  ;;  %v4947_v3 = vld [vmem:[%s7465_s16 + $0x30] sm:$0xff] }
0x1900   : > { %4968 = vmatpush.msra.mxu2 %v4947_v3 }
0x1901   : > { %v4829_v14 = vadd.f32 %v4826_v17, %v7040_v36  ;;  %v4946_v17 = vld [vmem:[%s7465_s16 + $0x28] sm:$0xff] }
0x1902   : > { %4969 = vmatpush.msra.mxu2 %v4946_v17 }
0x1903   : > { %v4835_v27 = vsel %vm2172_vm6, %v4829_v14, 0.0 }
0x1904   : > { %4836 = vadd.xlane.f32.xlu1 %v4835_v27  ;;  %v4944_v27 = vld [vmem:[%s7465_s16 + $0x18] sm:$0xff] }
0x1951   : > { %v4834_v59 = vpop.xlane.xlu2 %4833 }
0x1952   : > { %v4838_v45 = vmul.f32 %v4834_v59, %v6562_v56  ;;  %v4943_v59 = vld [vmem:[%s7465_s16 + $0x10] sm:$0xff] }
0x1954   : > { %v4840_v58 = vsub.f32 %v4828_v49, %v4838_v45  ;;  %v4942_v45 = vld [vmem:[%s7465_s16 + $0x8] sm:$0xff] }
0x1956   : > { %v4842_v31 = vmul.f32 %v4840_v58, %v4840_v58 }
0x1958   : > { %v4844_v12 = vsel %vm2172_vm6, %v4842_v31, 0.0  ;;  %v5750_v31 = vld [vmem:[%s7466_s18] ss:$0 sm:$0xff]  ;;  %s7475_s18 = sld [smem:[#allocation63_spill]] }
0x1959   : > { %4845 = vadd.xlane.f32.xlu0 %v4844_v12 }
0x1977   : > { %v4837_v21 = vpop.xlane.xlu1 %4836 }
0x1978   : > { %v4839_v13 = vmul.f32 %v4837_v21, %v6562_v56 }
0x197a   : > { %v4841_v47 = vsub.f32 %v4829_v14, %v4839_v13  ;;  %v4945_v14 = vld [vmem:[%s7465_s16 + $0x20] sm:$0xff] }
0x197b   : > { %4970 = vmatpush.msra.mxu2 %v4945_v14 }
0x197c   : > { %v4843_v57 = vmul.f32 %v4841_v47, %v4841_v47 }
0x197d   : > { %4971 = vmatpush.msra.mxu2 %v4944_v27 }
0x197e   : > { %v4847_v36 = vsel %vm2172_vm6, %v4843_v57, 0.0 }
0x197f   : > { %4848 = vadd.xlane.f32.xlu1 %v4847_v36  ;;  %4972 = vmatpush.msra.mxu2 %v4943_v59 }
0x1981   : > { %4973 = vmatpush.msra.mxu2 %v4942_v45 }
0x19cc   : > { %v4846_v38 = vpop.xlane.xlu0 %4845 }
0x19cd   : > { %v4850_v46 = vmul.f32 %v4846_v38, %v6562_v56 }
0x19cf   : > { %v4852_v19 = vadd.f32 1e-05, %v4850_v46 }
0x19d1   : > { %5921 = vrsqrt.f32 %v4852_v19  ;;  %vm4860_vm7 = vweird.f32 %v4852_v19 }
0x19d7   : > { %v5922_v5 = vpop.eup %5921 }
0x19d8   : > { %v4855_v40 = vmul.f32 %v5922_v5, %v4852_v19  ;;  %vm4861_vm2 = vweird.f32 %v5922_v5 }
0x19d9   : > { %vm4862_vm13 = vmor %vm4860_vm7, %vm4861_vm2 }
0x19da   : > { %v4856_v20 = vmul.f32 %v5922_v5, %v4855_v40 }
0x19dc   : > { %v4857_v41 = vmul.f32 0.5, %v4856_v20 }
0x19de   : > { %v4858_v1 = vsub.f32 1.5, %v4857_v41 }
0x19e0   : > { %v4859_v22 = vmul.f32 %v5922_v5, %v4858_v1 }
0x19e2   : > { %v4863_v44 = vsel %vm4862_vm13, %v5922_v5, %v4859_v22 }
0x19e3   : > { %v4874_v35 = vmul.f32 %v4863_v44, %v4840_v58  ;;  %v4941_v58 = vld [vmem:[%s7465_s16] sm:$0xff] }
0x19e4   : > { %4974 = vmatpush.msra.mxu2 %v4941_v58 }
0x19e5   : > { %v4879_v9 = vmul.f32 %v5748_v23, %v4874_v35  ;;  %v5751_v35 = vld [vmem:[%s7467_s7] ss:$0 sm:$0xff]  ;;  %s1886_s7 = scalar_lea.vmem %s7474_s19, %s6383_s22 }
0x19e7   : > { %v7168_v52 = vadd.f32 %v5749_v29, %v4879_v9 }
0x19e9   : > { %5539 = vmatmul.msk.f32.vlgmr.msrb.gmra.mxu0 %vm2172_vm6, %v7168_v52 }
0x19f2   : > { %v4849_v11 = vpop.xlane.xlu1 %4848 }
0x19f3   : > { %v4851_v60 = vmul.f32 %v4849_v11, %v6562_v56 }
0x19f5   : > { %v4853_v37 = vadd.f32 1e-05, %v4851_v60 }
0x19f7   : > { %5923 = vrsqrt.f32 %v4853_v37  ;;  %vm4870_vm5 = vweird.f32 %v4853_v37 }
0x19fd   : > { %v5924_v18 = vpop.eup %5923 }
0x19fe   : > { %v4865_v63 = vmul.f32 %v5924_v18, %v4853_v37  ;;  %vm4871_vm4 = vweird.f32 %v5924_v18 }
0x19ff   : > { %vm4872_vm14 = vmor %vm4870_vm5, %vm4871_vm4 }
0x1a00   : > { %v4866_v33 = vmul.f32 %v5924_v18, %v4865_v63 }
0x1a02   : > { %v4867_v10 = vmul.f32 0.5, %v4866_v33 }
0x1a04   : > { %v4868_v28 = vsub.f32 1.5, %v4867_v10 }
0x1a06   : > { %v4869_v25 = vmul.f32 %v5924_v18, %v4868_v28 }
0x1a08   : > { %v4873_v43 = vsel %vm4872_vm14, %v5924_v18, %v4869_v25 }
0x1a09   : > { %v4875_v32 = vmul.f32 %v4873_v43, %v4841_v47 }
0x1a0b   : > { %v4880_v39 = vmul.f32 %v5748_v23, %v4875_v32 }
0x1a0d   : > { %v4885_v49 = vadd.f32 %v5749_v29, %v4880_v39 }
0x1a0f   : > { %5540 = vmatmul.msk.f32.gmra.mxu0 %vm2172_vm6, %v4885_v49 }
0x1a66   : > { %v4917_v12 = vpop.f32.mrf.mxu0 }
0x1a67   : > { %v4918_v21 = vadd.f32 %v5750_v31, %v4917_v12 }
0x1a69   : > { %v4923_v13 = vmul.f32 %v4918_v21, %v4918_v21 }
0x1a6b   : > { %v4925_v47 = vmul.f32 %v4923_v13, %v4918_v21 }
0x1a6d   : > { %v4927_v57 = vmul.f32 0.044715, %v4925_v47  ;;  %v5752_v47 = vld [vmem:[%s7468_s28] ss:$0 sm:$0xff] }
0x1a6f   : > { %v4929_v36 = vadd.f32 %v4927_v57, %v4918_v21 }
0x1a71   : > { %v4931_v50 = vmul.f32 0.7978846, %v4929_v36 }
0x1a73   : > { %5925 = vtanh.f32 %v4931_v50  ;;  %v5753_v50 = vld [vmem:[%s7469_s26] ss:$0 sm:$0xff] }
0x1a79   : > { %v5926_v6 = vpop.eup %5925 }
0x1a7a   : > { %v4935_v2 = vadd.f32 1.0, %v5926_v6 }
0x1a7c   : > { %v4937_v8 = vmul.f32 0.5, %v4935_v2 }
0x1a7e   : > { %v4939_v38 = vmul.f32 %v4937_v8, %v4918_v21 }
0x1a80   : > { %5541 = vmatmul.msk.f32.vlgmr.msra.gmra.mxu2 %vm2685_vm15, %v4939_v38 }
0x1a8c   : > { %v4920_v46 = vpop.f32.mrf.mxu0 }
0x1a8d   : > { %v4921_v19 = vadd.f32 %v5750_v31, %v4920_v46 }
0x1a8f   : > { %v4924_v5 = vmul.f32 %v4921_v19, %v4921_v19 }
0x1a91   : > { %v4926_v40 = vmul.f32 %v4924_v5, %v4921_v19 }
0x1a93   : > { %v4928_v20 = vmul.f32 0.044715, %v4926_v40 }
0x1a95   : > { %v4930_v41 = vadd.f32 %v4928_v20, %v4921_v19 }
0x1a97   : > { %v4932_v1 = vmul.f32 0.7978846, %v4930_v41 }
0x1a99   : > { %5927 = vtanh.f32 %v4932_v1 }
0x1a9f   : > { %v5928_v22 = vpop.eup %5927 }
0x1aa0   : > { %v4936_v23 = vadd.f32 1.0, %v5928_v22 }
0x1aa2   : > { %v4938_v44 = vmul.f32 0.5, %v4936_v23 }
0x1aa4   : > { %v4940_v29 = vmul.f32 %v4938_v44, %v4921_v19 }
0x1aa6   : > { %5542 = vmatmul.msk.f32.gmra.mxu2 %vm2685_vm15, %v4940_v29 }
0x1b03   : > { %v4976_v9 = vpop.f32.mrf.mxu2 }
0x1b04   : > { %v4977_v11 = vadd.f32 %v5751_v35, %v4976_v9 }
0x1b06   : > { %v4982_v60 = vadd.f32 %v4977_v11, %v7168_v52 }
0x1b08   : > { %v4986_v37 = vsel %vm2172_vm6, %v4982_v60, 0.0 }
0x1b09   : > { %4987 = vadd.xlane.f32.xlu1 %v4986_v37 }
0x1b29   : > { %v4979_v18 = vpop.f32.mrf.mxu2 }
0x1b2a   : > { %v4980_v63 = vadd.f32 %v5751_v35, %v4979_v18 }
0x1b2c   : > { %v4983_v33 = vadd.f32 %v4980_v63, %v4885_v49 }
0x1b2e   : > { %v4989_v10 = vsel %vm2172_vm6, %v4983_v33, 0.0 }
0x1b2f   : > { %4990 = vadd.xlane.f32.xlu1 %v4989_v10  ;;  %v5097_v10 = vld [vmem:[%s6317_s4 + $0x8] sm:$0xff] }
0x1b7c   : > { %v4988_v28 = vpop.xlane.xlu1 %4987 }
0x1b7d   : > { %v4992_v25 = vmul.f32 %v4988_v28, %v6562_v56 }
0x1b7f   : > { %v4994_v43 = vsub.f32 %v4982_v60, %v4992_v25 }
0x1b81   : > { %v4996_v32 = vmul.f32 %v4994_v43, %v4994_v43 }
0x1b83   : > { %v4998_v39 = vsel %vm2172_vm6, %v4996_v32, 0.0 }
0x1b84   : > { %4999 = vadd.xlane.f32.xlu1 %v4998_v39 }
0x1ba2   : > { %v4991_v30 = vpop.xlane.xlu1 %4990 }
0x1ba3   : > { %v4993_v52 = vmul.f32 %v4991_v30, %v6562_v56 }
0x1ba5   : > { %v4995_v3 = vsub.f32 %v4983_v33, %v4993_v52  ;;  %v5754_v52 = vld [vmem:[%s7470_s24] ss:$0 sm:$0xff] }
0x1ba7   : > { %v4997_v17 = vmul.f32 %v4995_v3, %v4995_v3 }
0x1ba9   : > { %v5001_v14 = vsel %vm2172_vm6, %v4997_v17, 0.0 }
0x1baa   : > { %5002 = vadd.xlane.f32.xlu1 %v5001_v14 }
0x1bf7   : > { %v5000_v49 = vpop.xlane.xlu1 %4999 }
0x1bf8   : > { %v5004_v27 = vmul.f32 %v5000_v49, %v6562_v56 }
0x1bfa   : > { %v5006_v59 = vadd.f32 1e-05, %v5004_v27 }
0x1bfc   : > { %5929 = vrsqrt.f32 %v5006_v59  ;;  %vm5014_vm9 = vweird.f32 %v5006_v59 }
0x1c02   : > { %v5930_v45 = vpop.eup %5929 }
0x1c03   : > { %v5009_v58 = vmul.f32 %v5930_v45, %v5006_v59  ;;  %vm5015_vm8 = vweird.f32 %v5930_v45 }
0x1c04   : > { %vm5016_vm10 = vmor %vm5014_vm9, %vm5015_vm8 }
0x1c05   : > { %v5010_v31 = vmul.f32 %v5930_v45, %v5009_v58 }
0x1c07   : > { %v5011_v12 = vmul.f32 0.5, %v5010_v31 }
0x1c09   : > { %v5012_v21 = vsub.f32 1.5, %v5011_v12 }
0x1c0b   : > { %v5013_v13 = vmul.f32 %v5930_v45, %v5012_v21 }
0x1c0d   : > { %v5017_v57 = vsel %vm5016_vm10, %v5930_v45, %v5013_v13 }
0x1c0e   : > { %v5028_v36 = vmul.f32 %v5017_v57, %v4994_v43 }
0x1c10   : > { %v5033_v6 = vmul.f32 %v5752_v47, %v5028_v36 }
0x1c12   : > { %v5038_v2 = vadd.f32 %v5753_v50, %v5033_v6 }
0x1c14   : > { %v5042_v8 = vsel %vm2172_vm6, %v5038_v2, 0.0 }
0x1c15   : > { %5043 = vadd.xlane.f32.xlu2 %v5042_v8 }
0x1c1d   : > { %v5003_v38 = vpop.xlane.xlu1 %5002 }
0x1c1e   : > { %v5005_v46 = vmul.f32 %v5003_v38, %v6562_v56 }
0x1c20   : > { %v5007_v19 = vadd.f32 1e-05, %v5005_v46 }
0x1c22   : > { %5931 = vrsqrt.f32 %v5007_v19  ;;  %vm5024_vm12 = vweird.f32 %v5007_v19 }
0x1c28   : > { %v5932_v5 = vpop.eup %5931 }
0x1c29   : > { %v5019_v40 = vmul.f32 %v5932_v5, %v5007_v19  ;;  %vm5025_vm11 = vweird.f32 %v5932_v5 }
0x1c2a   : > { %vm5026_vm2 = vmor %vm5024_vm12, %vm5025_vm11 }
0x1c2b   : > { %v5020_v20 = vmul.f32 %v5932_v5, %v5019_v40 }
0x1c2d   : > { %v5021_v41 = vmul.f32 0.5, %v5020_v20 }
0x1c2f   : > { %v5022_v1 = vsub.f32 1.5, %v5021_v41 }
0x1c31   : > { %v5023_v22 = vmul.f32 %v5932_v5, %v5022_v1 }
0x1c33   : > { %v5027_v23 = vsel %vm5026_vm2, %v5932_v5, %v5023_v22 }
0x1c34   : > { %v5029_v44 = vmul.f32 %v5027_v23, %v4995_v3 }
0x1c36   : > { %v5034_v29 = vmul.f32 %v5752_v47, %v5029_v44 }
0x1c38   : > { %v5039_v35 = vadd.f32 %v5753_v50, %v5034_v29 }
0x1c3a   : > { %v5045_v9 = vsel %vm2172_vm6, %v5039_v35, 0.0 }
0x1c3b   : > { %5046 = vadd.xlane.f32.xlu0 %v5045_v9 }
0x1c4f   : > { %2661 = vrot.lane.b32.xlu0 %v6508_v42, %s7445_s29 }
0x1c57   : > { %3403 = vrot.lane.b32.xlu0 %v6712_v7, %s7445_s29 }
0x1c5f   : > { %3407 = vrot.lane.b32.xlu0 %v6722_v16, %s6023_s2 }
0x1c67   : > { %2675 = vrot.lane.b32.xlu0 %v6531_v61, %s7440_s27 }
0x1c88   : > { %v5044_v11 = vpop.xlane.xlu2 %5043 }
0x1c89   : > { %v5048_v60 = vmul.f32 %v5044_v11, %v6562_v56 }
0x1c8b   : > { %v5050_v37 = vsub.f32 %v5038_v2, %v5048_v60 }
0x1c8d   : > { %v5052_v18 = vmul.f32 %v5050_v37, %v5050_v37 }
0x1c8f   : > { %v5054_v63 = vsel %vm2172_vm6, %v5052_v18, 0.0 }
0x1c90   : > { %5055 = vadd.xlane.f32.xlu1 %v5054_v63 }
0x1ca9   : > { %2663 = vrot.lane.b32.xlu1 %v6521_v53, %s7445_s29  ;;  %v5099_v53 = vld [vmem:[%s6317_s4 + $0x18] sm:$0xff] }
0x1caa   : > { %5122 = vmatpush.msrb.mxu3 %v5099_v53 }
0x1cae   : > { %v5047_v42 = vpop.xlane.xlu0 %5046 }
0x1caf   : > { %v5049_v7 = vmul.f32 %v5047_v42, %v6562_v56 }
0x1cb1   : > { %v7211_v16 = vsub.f32 %v5039_v35, %v5049_v7  ;;  %2669 = vrot.lane.b32.xlu1 %v6535_v0, %s6023_s2  ;;  %v5098_v0 = vld [vmem:[%s6317_s4 + $0x10] sm:$0xff]  ;;  %v5937_v7 = vld [vmem:[%s7473_s14] ss:$0 sm:$0xff] }
0x1cb2   : > { %5123 = vmatpush.msrb.mxu3 %v5098_v0 }
0x1cb3   : > { %v5053_v61 = vmul.f32 %v7211_v16, %v7211_v16 }
0x1cb4   : > { %5124 = vmatpush.msrb.mxu3 %v5097_v10 }
0x1cb5   : > { %v5057_v33 = vsel %vm2172_vm6, %v5053_v61, 0.0  ;;  %v5938_v61 = vld [vmem:[%s7475_s18] ss:$0 sm:$0xff] }
0x1cb6   : > { %5058 = vadd.xlane.f32.xlu2 %v5057_v33 }
0x1cb9   : > { %2673 = vrot.lane.b32.xlu1 %v6527_v55, %s7440_s27  ;;  %v5096_v55 = vld [vmem:[%s6317_s4] sm:$0xff] }
0x1cba   : > { %5125 = vmatpush.msrb.mxu3 %v5096_v55 }
0x1cc1   : > { %3415 = vrot.lane.b32.xlu1 %v6731_v26, %s7440_s27 }
0x1cce   : > { %3401 = vrot.lane.b32.xlu2 %v6699_v54, %s7445_s29  ;;  %v2662_v54 = vpop.permute.xlu0 %2661  ;;  %s7471_s29 = sld [smem:[#allocation58_spill]] }
0x1ccf   : > { %v2679_v38 = vsel %vm1962_vm3, %v6503_v34, %v2662_v54 }
0x1cd4   : > { %v5755_v14 = vld [vmem:[%s7471_s29] ss:$0 sm:$0xff] }
0x1cd6   : > { %2667 = vrot.lane.b32.xlu2 %v6518_v51, %s6023_s2  ;;  %v3404_v43 = vpop.permute.xlu0 %3403 }
0x1cd7   : > { %v3420_v34 = vsel %vm1962_vm3, %v6708_v4, %v3404_v43 }
0x1cde   : > { %3409 = vrot.lane.b32.xlu2 %v6727_v24, %s6023_s2  ;;  %v3408_v17 = vpop.permute.xlu0 %3407 }
0x1ce6   : > { %3413 = vrot.lane.b32.xlu2 %v6717_v15, %s7440_s27  ;;  %s5552_s27 = sshll.u32 %s7478_s1, 5  ;;  %v2676_v12 = vpop.permute.xlu0 %2675  ;;  %s7472_s1 = sld [smem:[#allocation59_spill]] }
0x1ce7   : > { %s7239_s17 = scalar_lea.vmem %s6332_s21, %s5552_s27 }
0x1cec   : > { %v5756_v18 = vld [vmem:[%s7472_s1] ss:$0 sm:$0xff] }
0x1d03   : > { %v5056_v26 = vpop.xlane.xlu1 %5055 }
0x1d04   : > { %v5060_v28 = vmul.f32 %v5056_v26, %v6562_v56 }
0x1d06   : > { %v5062_v51 = vadd.f32 1e-05, %v5060_v28 }
0x1d08   : > { %5933 = vrsqrt.f32 %v5062_v51  ;;  %vm5070_vm13 = vweird.f32 %v5062_v51 }
0x1d0e   : > { %v5934_v24 = vpop.eup %5933 }
0x1d0f   : > { %v5065_v25 = vmul.f32 %v5934_v24, %v5062_v51  ;;  %vm5071_vm7 = vweird.f32 %v5934_v24 }
0x1d10   : > { %vm5072_vm4 = vmor %vm5070_vm13, %vm5071_vm7 }
0x1d11   : > { %v5066_v15 = vmul.f32 %v5934_v24, %v5065_v25 }
0x1d13   : > { %v5067_v32 = vmul.f32 0.5, %v5066_v15 }
0x1d15   : > { %v5068_v39 = vsub.f32 1.5, %v5067_v32 }
0x1d17   : > { %v5069_v30 = vmul.f32 %v5934_v24, %v5068_v39 }
0x1d19   : > { %v5073_v3 = vsel %vm5072_vm4, %v5934_v24, %v5069_v30 }
0x1d1a   : > { %v5084_v49 = vmul.f32 %v5073_v3, %v5050_v37 }
0x1d1b   : > { %v2664_v27 = vpop.permute.xlu1 %2663 }
0x1d1c   : > { %v5089_v59 = vmul.f32 %v5754_v52, %v5084_v49  ;;  %v2680_v58 = vsel %vm1962_vm3, %v6513_v48, %v2664_v27 }
0x1d1e   : > { %v5094_v45 = vadd.f32 %v5755_v14, %v5089_v59 }
0x1d20   : > { %5543 = vmatmul.msk.f32.vlgmr.msrb.gmra.mxu3 %vm2172_vm6, %v5094_v45 }
0x1d23   : > { %v2670_v31 = vpop.permute.xlu1 %2669 }
0x1d24   : > { %v2682_v21 = vsel %vm2172_vm6, %v2680_v58, %v2670_v31 }
0x1d25   : > { %v2684_v13 = vsel %vm1901_vm0, %v2682_v21, %v2676_v12 }
0x1d26   : > { %2687 = vst.msk [vmem:[%s7239_s17 + $0x8] sm:$0xff] %vm2685_vm15, %v2684_v13 }
0x1d29   : > { %v5059_v47 = vpop.xlane.xlu2 %5058 }
0x1d2a   : > { %v5061_v57 = vmul.f32 %v5059_v47, %v6562_v56 }
0x1d2b   : > { %v2674_v8 = vpop.permute.xlu1 %2673 }
0x1d2c   : > { %v5063_v36 = vadd.f32 1e-05, %v5061_v57 }
0x1d2e   : > { %5935 = vrsqrt.f32 %v5063_v36  ;;  %vm5080_vm14 = vweird.f32 %v5063_v36 }
0x1d31   : > { %v3402_v50 = vpop.permute.xlu2 %3401 }
0x1d32   : > { %v3419_v11 = vsel %vm1962_vm3, %v6704_v62, %v3402_v50 }
0x1d33   : > { %v3416_v23 = vpop.permute.xlu1 %3415  ;;  %v3421_v60 = vsel %vm2172_vm6, %v3419_v11, %v3408_v17 }
0x1d34   : > { %v5936_v6 = vpop.eup %5935 }
0x1d35   : > { %v5075_v48 = vmul.f32 %v5936_v6, %v5063_v36  ;;  %vm5081_vm5 = vweird.f32 %v5936_v6 }
0x1d36   : > { %vm5082_vm8 = vmor %vm5080_vm14, %vm5081_vm5 }
0x1d37   : > { %v5076_v2 = vmul.f32 %v5936_v6, %v5075_v48 }
0x1d39   : > { %v5077_v46 = vmul.f32 0.5, %v5076_v2  ;;  %v2668_v19 = vpop.permute.xlu2 %2667 }
0x1d3a   : > { %v2681_v5 = vsel %vm2172_vm6, %v2679_v38, %v2668_v19 }
0x1d3b   : > { %v5078_v40 = vsub.f32 1.5, %v5077_v46  ;;  %v2683_v20 = vsel %vm1901_vm0, %v2681_v5, %v2674_v8 }
0x1d3c   : > { %2686 = vst.msk [vmem:[%s7239_s17] sm:$0xff] %vm2685_vm15, %v2683_v20 }
0x1d3d   : > { %v5079_v56 = vmul.f32 %v5936_v6, %v5078_v40 }
0x1d3f   : > { %v5083_v41 = vsel %vm5082_vm8, %v5936_v6, %v5079_v56 }
0x1d40   : > { %v5085_v1 = vmul.f32 %v5083_v41, %v7211_v16 }
0x1d41   : > { %v3410_v22 = vpop.permute.xlu2 %3409 }
0x1d42   : > { %v3422_v44 = vsel %vm2172_vm6, %v3420_v34, %v3410_v22  ;;  %v5090_v29 = vmul.f32 %v5754_v52, %v5085_v1 }
0x1d43   : > { %v3424_v35 = vsel %vm1901_vm0, %v3422_v44, %v3416_v23 }
0x1d44   : > { %5455 = vst.msk [vmem:[%s7239_s17 + $0x18] sm:$0xff] %vm2685_vm15, %v3424_v35  ;;  %v5095_v9 = vadd.f32 %v5755_v14, %v5090_v29 }
0x1d46   : > { %5544 = vmatmul.msk.f32.gmra.mxu3 %vm2172_vm6, %v5095_v9 }
0x1d49   : > { %v3414_v4 = vpop.permute.xlu2 %3413 }
0x1d4a   : > { %v3423_v37 = vsel %vm1901_vm0, %v3421_v60, %v3414_v4 }
0x1d4b   : > { %5454 = vst.msk [vmem:[%s7239_s17 + $0x10] sm:$0xff] %vm2685_vm15, %v3423_v37 }
0x1da3   : > { %v5127_v63 = vpop.f32.mrf.mxu3 }
0x1da4   : > { %v5128_v42 = vadd.f32 %v5756_v18, %v5127_v63 }
0x1da6   : > { %v5134_v16 = vmul.f32 %v5937_v7, %v5128_v42 }
0x1da8   : > { %v5137_v33 = vadd.f32 %v5938_v61, %v5134_v16 }
0x1daa   : > { %5139 = vst.msk [vmem:[%s1886_s7] sm:$0xff] %vm1930_vm1, %v5137_v33 }
0x1dc9   : > { %v5130_v62 = vpop.f32.mrf.mxu3 }
0x1dca   : > { %v5131_v53 = vadd.f32 %v5756_v18, %v5130_v62 }
0x1dcc   : > { %v5135_v0 = vmul.f32 %v5937_v7, %v5131_v53 }
0x1dce   : > { %v5138_v10 = vadd.f32 %v5938_v61, %v5135_v0 }
0x1dd0   : > { %5140 = vst.msk [vmem:[%s1886_s7 + $0x8] sm:$0xff] %vm1930_vm1, %v5138_v10 }
0x1dd1 PF: > { %s7476_s28 = sld [smem:[#allocation61_spill]] }
0x1dd7   : > { %s132_s28 = sadd.s32 1, %s7476_s28  }
0x1dd8   : > { %p129_p4 = scmp.ge.s32.totalorder %s132_s28, 4  }
0x1dda   :  { %131 = sbr.rel (!%p129_p4) target bundleno = 131 (0x83), region = 389 }

</bundles_post_ra>
